<compile_context>
chip_gen: v7x
topology: tpu7x:2x2x1
jax: 0.10.0
libtpu: 0.0.40
codegen_flags: <defaults>
</compile_context>

<pallas_src>
import jax
import jax.numpy as jnp
from jax.experimental import pallas as pl
from jax.experimental.pallas import tpu as pltpu


def _round_up(x, m):
    return (x + m - 1) // m * m


def conv1x1_kernel(w_ref, x_ref, o_ref):
    # w_ref: (Cout, Cin) gate-scaled weight, resident in VMEM (fetched once)
    # x_ref: (Cin, tile_p) column tile of the NCHW-flattened feature map
    # o_ref: (Cout, tile_p)
    o_ref[...] = jnp.dot(
        w_ref[...], x_ref[...], preferred_element_type=jnp.float32
    ).astype(o_ref.dtype)


def sigmoid_mul_conv1x1(x_nchw, s_nc11, w_oi11, *, tile_p=512, compute_dtype=None):
    """x_nchw: (1, Cin, H, W); s_nc11: (1, Cin, 1, 1); w_oi11: (Cout, Cin, 1, 1).
    Returns (1, Cout, H, W) = Conv2d_1x1(sigmoid(s) * x).
    compute_dtype=None keeps the input dtype; jnp.bfloat16 halves HBM traffic."""
    N, Cin, H, W = x_nchw.shape
    Cout, Cin_w, kh, kw = w_oi11.shape
    assert (kh, kw) == (1, 1) and Cin_w == Cin
    # Gate-into-weight fold is only exact for a single sample (matches trace).
    assert N == 1, "per-sample gates require N == 1 for the weight fold"
    P = N * H * W

    dt = jnp.dtype(compute_dtype) if compute_dtype is not None else jnp.dtype(x_nchw.dtype)
    itemsize = dt.itemsize

    # Pure metadata views (no transposes, no copies): NCHW with N==1 is already
    # channel-major, i.e. (Cin, P).
    x_cp = x_nchw.reshape(Cin, P).astype(dt)
    w2 = w_oi11.reshape(Cout, Cin)

    # Fold the sigmoid gate into the weight once (f32 math, then one rounding
    # to the compute dtype; Cin*Cout elementwise, done by XLA).
    gate = jax.nn.sigmoid(s_nc11.astype(jnp.float32)).reshape(1, Cin)
    w_scaled = (w2.astype(jnp.float32) * gate).astype(dt)

    # Weight tile as laid out in VMEM (lane dim padded 528 -> 640).
    weight_bytes = Cout * _round_up(Cin, 128) * itemsize

    # ---- tile_p / grid policy (perf feedback) --------------------------------
    if P <= 512:
        # Tiny spatial extent: single step. The op is launch/DMA-latency bound;
        # splitting it would only add ~0.35 us/step overhead and duplicate the
        # weight fetch. (tile_p == full dim, so non-multiple-of-128 is legal.)
        tile_p = P
    else:
        tile_p = max(128, (min(tile_p, P) // 128) * 128)
        # Cap tile_p so resident weight + double-buffered x/out tiles stay well
        # under v7x's 64 MiB per-core VMEM.
        max_tile_p = ((48 << 20) - weight_bytes) // (2 * (Cin + Cout) * itemsize)
        max_tile_p = max(256, (max_tile_p // 128) * 128)
        tile_p = min(tile_p, max_tile_p)
        # Want >= 4 pipeline steps (but never below 256-wide lanes) so the
        # one-time weight fetch and per-step x/out DMAs hide behind the MXU.
        while tile_p > 256 and pl.cdiv(P, tile_p) < 4:
            tile_p -= 128
    grid_steps = pl.cdiv(P, tile_p)

    # ---- megacore policy (v7x) ----------------------------------------------
    # Only shard across the two TensorCores when each core's x+out traffic
    # dwarfs the weight stream it would duplicate (~P >= 5K columns for f32).
    # On v5e/v6e (single TC) this choice is a no-op.
    per_core_data_bytes = (P * (Cin + Cout) * itemsize) // 2
    parallel_ok = grid_steps >= 2 and per_core_data_bytes >= 8 * weight_bytes
    dim_sem = ("parallel",) if parallel_ok else ("arbitrary",)

    # ---- VMEM budget ----------------------------------------------------------
    # Resident weight + double-buffered x and out tiles, 2x safety + headroom.
    # Floor 32 MiB (raises v5e's 16 MiB scoped default), cap 56 MiB (v7x has
    # 64 MiB physical per core).
    vmem_needed = (weight_bytes
                   + 2 * Cin * tile_p * itemsize
                   + 2 * Cout * tile_p * itemsize)
    vmem_limit = int(min(max(2 * vmem_needed + (4 << 20), 32 << 20), 56 << 20))

    cost = pl.CostEstimate(
        flops=2 * P * Cin * Cout,
        transcendentals=0,
        bytes_accessed=(Cin * P + Cout * Cin + Cout * P) * itemsize,
    )

    out_cp = pl.pallas_call(
        conv1x1_kernel,
        out_shape=jax.ShapeDtypeStruct((Cout, P), dt),
        grid_spec=pltpu.PrefetchScalarGridSpec(
            num_scalar_prefetch=0,
            grid=(grid_steps,),
            in_specs=[
                pl.BlockSpec((Cout, Cin), lambda j: (0, 0)),    # resident weight
                pl.BlockSpec((Cin, tile_p), lambda j: (0, j)),  # x column tile
            ],
            out_specs=pl.BlockSpec((Cout, tile_p), lambda j: (0, j)),
        ),
        compiler_params=pltpu.CompilerParams(
            dimension_semantics=dim_sem,
            vmem_limit_bytes=vmem_limit,
        ),
        cost_estimate=cost,
    )(w_scaled, x_cp)

    # Pure metadata reshape back to NCHW.
    return out_cp.reshape(N, Cout, H, W)


if __name__ == "__main__":
    # Shapes from the traced module: Conv2d(528, 528, 1x1) applied to a
    # (1, 528, 56, 56) feature map gated by a (1, 528, 1, 1) SE logit.
    N, C, H, W = 1, 528, 56, 56

    key = jax.random.PRNGKey(0)
    k1, k2, k3 = jax.random.split(key, 3)
    x11 = jax.random.normal(k1, (N, C, H, W), dtype=jnp.float32)      # feature map
    x15 = jax.random.normal(k2, (N, C, 1, 1), dtype=jnp.float32)      # SE gate logits
    w = jax.random.normal(k3, (C, C, 1, 1), dtype=jnp.float32) * 0.02  # OIHW 1x1, no bias

    # f32 path: P = 3136 -> tile_p = 512, grid = (7,), single-TC ("arbitrary").
    out = sigmoid_mul_conv1x1(x11, x15, w, tile_p=512)
    out = jax.block_until_ready(out)

    # Pure-JAX reference matching the PyTorch module.
    scaled_ref = jax.nn.sigmoid(x15) * x11                             # (N, C, H, W)
    ref = jnp.einsum("oc,nchw->nohw", w.reshape(C, C), scaled_ref,
                     precision=jax.lax.Precision.HIGHEST)
    assert out.shape == (N, C, H, W)
    assert jnp.allclose(out, ref, atol=1e-3, rtol=1e-3), "f32 mismatch vs reference"

    # Optional bf16 path (halves HBM traffic of this memory-bound kernel).
    out_bf16 = sigmoid_mul_conv1x1(x11, x15, w, tile_p=512,
                                   compute_dtype=jnp.bfloat16)
    out_bf16 = jax.block_until_ready(out_bf16)
    assert jnp.allclose(out_bf16.astype(jnp.float32), ref,
                        atol=6e-2, rtol=6e-2), "bf16 mismatch vs reference"

    print("KERNEL_OK")
</pallas_src>

<mosaic_0001>
module attributes {stable_mosaic.version = 11 : i64} {
  func.func @conv1x1_kernel(%arg0: i32, %arg1: memref<528x528xf32, #tpu.memory_space<vmem>>, %arg2: memref<528x512xf32, #tpu.memory_space<vmem>>, %arg3: memref<528x512xf32, #tpu.memory_space<vmem>>) attributes {dimension_semantics = [#tpu.dimension_semantics<arbitrary>], iteration_bounds = array<i64: 7>, scalar_prefetch = 0 : i64, scratch_operands = 0 : i64, tpu.core_type = #tpu.core_type<tc>, window_params = [{pipeline_mode = #tpu.pipeline_mode<synchronous>, transform_indices = @transform_0, window_bounds = array<i64: 528, 528>}, {transform_indices = @transform_1, window_bounds = array<i64: 528, 512>}, {transform_indices = @transform_2, window_bounds = array<i64: 528, 512>}]} {
    %c0 = arith.constant 0 : index
    %c0_0 = arith.constant 0 : index
    %0 = vector.load %arg1[%c0, %c0_0] : memref<528x528xf32, #tpu.memory_space<vmem>>, vector<528x528xf32>
    %c0_1 = arith.constant 0 : index
    %c0_2 = arith.constant 0 : index
    %1 = vector.load %arg2[%c0_1, %c0_2] : memref<528x512xf32, #tpu.memory_space<vmem>>, vector<528x512xf32>
    %cst = arith.constant dense<0.000000e+00> : vector<528x512xf32>
    %2 = tpu.matmul %0, %1, %cst {dimension_numbers = #tpu.dot_dimension_numbers<[1], [0], [0], [1], [0, 0, 1, 1], [], []>} : vector<528x528xf32>, vector<528x512xf32>, vector<528x512xf32> -> vector<528x512xf32>
    %c0_3 = arith.constant 0 : index
    %c0_4 = arith.constant 0 : index
    %3 = vector.load %arg3[%c0_3, %c0_4] : memref<528x512xf32, #tpu.memory_space<vmem>>, vector<528x512xf32>
    tpu.vector_store %arg3[%c0_3, %c0_4], %2 {strides = array<i32>} : memref<528x512xf32, #tpu.memory_space<vmem>>, vector<528x512xf32>,
    return
  }
  func.func @transform_0(%arg0: i32) -> (i32, i32) {
    %c0_i32 = arith.constant 0 : i32
    %c0_i32_0 = arith.constant 0 : i32
    %c0_i32_1 = arith.constant 0 : i32
    return %c0_i32, %c0_i32_0 : i32, i32
  }
  func.func @transform_1(%arg0: i32) -> (i32, i32) {
    %c0_i32 = arith.constant 0 : i32
    %c0_i32_0 = arith.constant 0 : i32
    return %c0_i32, %arg0 : i32, i32
  }
  func.func @transform_2(%arg0: i32) -> (i32, i32) {
    %c0_i32 = arith.constant 0 : i32
    %c0_i32_0 = arith.constant 0 : i32
    return %c0_i32, %arg0 : i32, i32
  }
}

</mosaic_0001>

<bundles_post_ra>
// kernel: tpu_custom_call.1
= control target key start
LH: loop header
LB: loop body
LE: loop exit
PB: predicated region body
PF: predicated region fallthrough
CT: control target
= control target key end

     0   :  { %7 = vsyncpa [#allocation3], 0  ;;  %s6303_s0 = inlined_call_operand.hbm [shape: f32[528,528], index: 0, kind: input, shape index: {}]   ;;  %s6304_s1 = inlined_call_operand.hbm [shape: f32[528,3136], index: 1, kind: input, shape index: {}]   ;;  %s6305_s2 = inlined_call_operand.hbm [shape: f32[528,3136], index: 2, kind: output, shape index: {}]  }
   0x1   :  { %8 = vsyncpa [#allocation6], 0 }
   0x2   :  { %10 = vsyncpa [#allocation6 + $0x1], 0 }
   0x3   :  { %11 = vsyncpa [#allocation4], 0 }
   0x4   :  { %13 = vsyncpa [#allocation4 + $0x1], 0  ;;  %s5281_s9 = smov 0   ;;  %s5283_s10 = smov 0  }
   0x5   :  { %s5285_s11 = smov 0   ;;  %s5287_s12 = smov 0  }
   0x6 LB: > { %s5302_s13 = sadd.s32 4294967295, %s5254_s12   ;;  %s4123_s14 = sadd.s32 4294967294, %s5254_s12   ;;  %s5254_s12 = sphi %s5287_s12, %s6325_s12   ;;  %s5250_s11 = sphi %s5285_s11, %s6324_s11   ;;  %s5246_s10 = sphi %s5283_s10, %s6323_s10   ;;  %s5242_s9 = sphi %s5281_s9, %s6322_s9  }
   0x7   : > { %s5306_s15 = sadd.s32 1, %s5254_s12   ;;  %s47_s16 = sadd.s32 1, %s5250_s11 }
   0x8   : > { %s44_s17 = ssub.s32 %s5254_s12, %s5306_s15  ;;  %p54_p0 = scmp.ne.s32.totalorder %s5250_s11, %s5246_s10 }
   0x9   : > { %p45_p1 = scmp.eq.s32.totalorder %s44_s17, 0  ;;  %p55_p2 = scmp.eq.s32.totalorder %s5254_s12, 0 }
   0xa   : > { %p60_p3 = scmp.ne.s32.totalorder %s5246_s10, %s5242_s9  ;;  %p6306_p4 = scmp.eq.s32.totalorder %s5302_s13, 0 }
   0xb   : > { %s5318_s18 = scalar_select %p45_p1, %s5250_s11, %s47_s16  }
   0xc   : > { %p5320_p5 = por %p55_p2, %p54_p0  ;;  %p5326_p6 = por %p6306_p4, %p60_p3 }
   0xd   : > { %p84_p7 = scmp.eq.s32.totalorder %s5302_s13, 6  ;;  %p90_p8 = scmp.eq.s32.totalorder %s4123_s14, 6 }
   0xe   : > { %s6309_s19 = scalar_select %p5320_p5, 1, 0 }
   0xf   : > { %s6310_s20 = scalar_select %p5326_p6, 1, 0 }
  0x10   : > { %p4124_p9 = scmp.ge.s32.totalorder %s5254_s12, 1  ;;  %p97_p10 = scmp.lt.s32.totalorder %s5254_s12, 8 }
  0x11   : > { %p5333_p11 = por %p84_p7, %p54_p0  ;;  %p5337_p12 = por %p90_p8, %p60_p3 }
  0x12   : > { %p5341_p13 = pnand %p4124_p9, %p97_p10  ;;  %s5256_s24 = smov [#allocation2]  }
  0x13   : > { %s6311_s21 = scalar_select %p5333_p11, 1, 0 }
  0x14   : > { %s6312_s22 = scalar_select %p5337_p12, 1, 0 }
  0x15   : > { %s6313_s23 = scalar_select %p5341_p13, 1, 0 }
  0x16   : > { %p5077_p1 = pneg %p5341_p13  ;;  %s109_s25 = sshll.u32 %s5256_s24, 4  ;;  %s110_s25 = int_to_ptr.vmem [resolvable:$true] %s109_s25 }
  0x17   : > { %s5128_s29 = scalar_lea.hbm %s6303_s0, 42240 }
  0x18   : > { %p5349_p2 = pnand %p5077_p1, %p6306_p4  ;;  %p5129_p0 = scmp.ne.s32.totalorder %s6303_s0, %s5128_s29 }
  0x19   : > { %p5135_p9 = scmp.lt.u32.totalorder %s5128_s29, %s6303_s0 }
  0x1a   : > { %p5130_p3 = pneg %p5349_p2 }
  0x1c   : > { %p5131_p7 = pnand %p5130_p3, %p5129_p0 }
  0x1e   : > { %p5132_p8 = pneg %p5131_p7 }
  0x20   : > { %p5137_p10 = pnand %p5135_p9, %p5132_p8 }
  0x22   : > { %5140 = shalt.err (!%p5137_p10)
}
  0x23   : > { %s5141_s6 = scalar_lea.vmem %s110_s25, 42240  ;;  %p5149_p11 = scmp.lt.s32.totalorder %s110_s25, %s110_s25 }
  0x24   : > { %p5142_p1 = scmp.ne.s32.totalorder %s110_s25, %s5141_s6  ;;  %p5150_p6 = scmp.lt.s32.totalorder %s5141_s6, %s5141_s6 }
  0x26   : > { %p5144_p4 = pnand %p5142_p1, %p5130_p3  ;;  %p5151_p13 = por %p5150_p6, %p5149_p11 }
  0x28   : > { %p5145_p12 = pneg %p5144_p4 }
  0x2a   : > { %p5152_p5 = pnand %p5151_p13, %p5145_p12 }
  0x2c   : > { %5155 = shalt.err (!%p5152_p5)
}
  0x2d   : > { %s5257_s7 = smov 640   ;;  %s5258_s8 = smov 40  }
  0x2e   : > { %5080 = dma.hbm_to_vmem [thread:$0]  (!%p5349_p2), %s6303_s0, 42240, %s110_s25, [#allocation3], %s5257_s7, %s5257_s7, %s5258_s8  }
  0x2f   : > { %p4126_p0 = scmp.ge.s32.totalorder %s5254_s12, 7 }
  0x30   : > { %p6315_p7 = scmp.ne.s32.totalorder (!%p4126_p0), %s6309_s19, 0 }
  0x31   : > { %119 = sbr.rel (%p4126_p0) target bundleno = 92 (0x5c), region = 20 }
  0x38   : > { %122 = sbr.rel (!%p6315_p7) target bundleno = 92 (0x5c), region = 24  ;;  %s123_s17 = sand.u32 (%p6315_p7), 1, %s5250_s11  }
  0x39   : > { %s4127_s24 = sshll.u32 (%p6315_p7), %s5254_s12, 2  ;;  %s5069_s27 = smul.u32 (%p6315_p7), 2112, %s123_s17 }
  0x3a   : > { %s129_s28 = ssub.s32 (%p6315_p7), 25, %s4127_s24  ;;  %s5380_s29 = scalar_lea.sflag (%p6315_p7), [#allocation6], %s123_s17 }
  0x3b   : > { %p130_p4 = scmp.lt.s32.totalorder (%p6315_p7), %s129_s28, 4  ;;  %s127_s30 = scalar_lea.vmem (%p6315_p7), [#allocation5], %s5069_s27 }
  0x3f   : > { %s6327_s28 = smov (!%p130_p4, %s129_s28), 4 }
  0x40   : > { %s5377_s26 = smul.u32 8448, %s6327_s28 }
  0x42   : > { %s134_s25 = ssub.s32 33792, %s5377_s26 }
  0x43   : > { %135 = vsyncadd %s5380_s29, %s134_s25  ;;  %p4128_p5 = scmp.ne.s32.totalorder %s5377_s26, 0  ;;  %s4275_s19 = sshll.u32 %s5254_s12, 9 }
  0x44   : > { %s5388_s5 = scalar_lea.hbm %s6304_s1, %s4275_s19  ;;  %s4130_s6 = sshll.u32 %s6327_s28, 3 }
  0x45   : > { %s141_s7 = sshll.u32 %s127_s30, 4  ;;  %s5156_s8 = scalar_lea.hbm %s5388_s5, %s5377_s26  ;;  %s5391_s7 = int_to_ptr.vmem [resolvable:$true] %s141_s7 }
  0x46   : > { %p5157_p6 = scmp.ne.s32.totalorder %s5388_s5, %s5156_s8  ;;  %s5160_s17 = scalar_lea.hbm %s6304_s1, 211200 }
  0x47   : > { %p5161_p13 = scmp.lt.u32.totalorder %s5388_s5, %s6304_s1  ;;  %p5162_p2 = scmp.lt.u32.totalorder %s5160_s17, %s5156_s8 }
  0x48   : > { %p5158_p11 = pnand %p5157_p6, %p4128_p5  ;;  %p5164_p8 = scmp.lt.u32.totalorder %s5156_s8, %s5388_s5 }
  0x49   : > { %p5163_p3 = por %p5162_p2, %p5161_p13 }
  0x4a   : > { %p5159_p12 = pneg %p5158_p11 }
  0x4b   : > { %p5165_p9 = por %p5164_p8, %p5163_p3 }
  0x4d   : > { %p5166_p10 = pnand %p5165_p9, %p5159_p12 }
  0x4f   : > { %5169 = shalt.err (!%p5166_p10)
}
  0x50   : > { %s5170_s25 = scalar_lea.vmem %s5391_s7, %s5377_s26  ;;  %s5259_s30 = smov [#allocation5]  }
  0x51   : > { %p5171_p1 = scmp.ne.s32.totalorder %s5391_s7, %s5170_s25  ;;  %s5174_s19 = sshll.u32 %s5259_s30, 4  ;;  %s5175_s19 = int_to_ptr.vmem [resolvable:$false] %s5174_s19 }
  0x52   : > { %s5176_s3 = scalar_lea.vmem %s5175_s19, 67584  ;;  %p5177_p4 = scmp.lt.s32.totalorder %s5391_s7, %s5175_s19 }
  0x53   : > { %p5172_p0 = pnand %p5171_p1, %p4128_p5  ;;  %p5178_p6 = scmp.lt.s32.totalorder %s5176_s3, %s5170_s25 }
  0x55   : > { %p5173_p7 = pneg %p5172_p0  ;;  %p5179_p11 = por %p5178_p6, %p5177_p4 }
  0x57   : > { %p5180_p13 = pnand %p5179_p11, %p5173_p7 }
  0x59   : > { %5183 = shalt.err (!%p5180_p13)
}
  0x5a   : > { %s5260_s4 = smov 3200   ;;  %s5261_s8 = smov 512  }
  0x5b   : > { %147 = dma.hbm_to_vmem [thread:$0]  (%p4128_p5), %s5388_s5, %s5377_s26, %s5391_s7, %s5380_s29, %s5260_s4, %s5261_s8, %s4130_s6  }
  0x5c PF: > { %p6316_p12 = scmp.ne.s32.totalorder %s6313_s23, 0 }
  0x5d   : > { %p6317_p2 = scmp.eq.s32.totalorder (!%p6316_p12), %s5302_s13, 0 }
  0x5e   : > { %153 = sbr.rel (%p6316_p12) target bundleno = 1208 (0x4b8), region = 28 }
  0x65   : > { %5229 = dma.done.wait (%p6317_p2), [#allocation3], 42240   ;;  %p6318_p3 = pmov %p6317_p2 }
  0x66   : > { %s5427_s14 = sand.u32 1, %s5246_s10   ;;  %p6319_p5 = scmp.ne.s32.totalorder %s6310_s20, 0 }
  0x67   : > { %5231 = vsyncadd (%p6318_p3), [#allocation3], 4294925056  ;;  %s5070_s28 = smul.u32 2112, %s5427_s14  ;;  %s160_s26 = scalar_lea.sflag [#allocation6], %s5427_s14 }
  0x69   : > { %s5433_s29 = scalar_lea.vmem [#allocation5], %s5070_s28 }
  0x6a   : > { %5233 = dma.done.wait (%p6319_p5), %s160_s26, 33792  }
  0x6b   : > { %5235 = vsyncadd (%p6319_p5), %s160_s26, 4294933504  ;;  %v525_v0 = vld [vmem:[%s5433_s29 + $0x8] sm:$0xff]  ;;  %v527_v2 = vld [vmem:[%s5433_s29 + $0x18] sm:$0xff]  ;;  %vm788_vm0 = vcmask 130048   ;;  %s5919_s20 = scalar_lea.vmem [#allocation7], %s5070_s28  ;;  %s4018_s23 = scalar_lea.sflag [#allocation4], %s5427_s14 }
  0x6c   : > { %v529_v1 = vld [vmem:[%s5433_s29 + $0x28] sm:$0xff]  ;;  %v531_v4 = vld [vmem:[%s5433_s29 + $0x38] sm:$0xff]  ;;  %v524_v5 = vld [vmem:[%s5433_s29] sm:$0xff]  ;;  %p6320_p8 = scmp.ne.s32.totalorder %s6311_s21, 0 }
  0x6d   : > { %v4277_v3 = vpack.c.bf16 %v529_v1, %v525_v0  ;;  %v528_v6 = vld [vmem:[%s5433_s29 + $0x20] sm:$0xff]  ;;  %v4409_v7 = vpack.c.bf16 %v531_v4, %v527_v2  ;;  %v526_v9 = vld [vmem:[%s5433_s29 + $0x10] sm:$0xff]  ;;  %v533_v11 = vld [vmem:[%s5433_s29 + $0x48] sm:$0xff]  ;;  %s4267_s5 = sshll.u32 (%p6320_p8), %s5302_s13, 2 }
  0x6e   : > { %v4279_v8 = vpack.c.bf16 %v528_v6, %v524_v5  ;;  %v530_v10 = vld [vmem:[%s5433_s29 + $0x30] sm:$0xff]  ;;  %v537_v13 = vld [vmem:[%s5433_s29 + $0x68] sm:$0xff]  ;;  %v535_v14 = vld [vmem:[%s5433_s29 + $0x58] sm:$0xff]  ;;  %s4026_s6 = ssub.s32 (%p6320_p8), 25, %s4267_s5 }
  0x6f   : > { %4278 = vmatprep.subr.bf16.mxu0 %v4277_v3  ;;  %v4411_v12 = vpack.c.bf16 %v530_v10, %v526_v9  ;;  %v539_v15 = vld [vmem:[%s5433_s29 + $0x78] sm:$0xff]  ;;  %4410 = vmatprep.subr.bf16.mxu1 %v4409_v7  ;;  %v4281_v16 = vpack.c.bf16 %v537_v13, %v533_v11  ;;  %v532_v18 = vld [vmem:[%s5433_s29 + $0x40] sm:$0xff]  ;;  %v534_v20 = vld [vmem:[%s5433_s29 + $0x50] sm:$0xff]  ;;  %p4027_p9 = scmp.lt.s32.totalorder (%p6320_p8), %s4026_s6, 4 }
  0x70   : > { %4280 = vmatpush1.bf16.msra.mxu0 %v4279_v8  ;;  %v4413_v17 = vpack.c.bf16 %v539_v15, %v535_v14  ;;  %v536_v19 = vld [vmem:[%s5433_s29 + $0x60] sm:$0xff]  ;;  %v538_v22 = vld [vmem:[%s5433_s29 + $0x70] sm:$0xff]  ;;  %v541_v23 = vld [vmem:[%s5433_s29 + $0x88] sm:$0xff] }
  0x71   : > { %4412 = vmatpush1.bf16.msra.mxu1 %v4411_v12  ;;  %v4283_v21 = vpack.c.bf16 %v536_v19, %v532_v18  ;;  %v545_v24 = vld [vmem:[%s5433_s29 + $0xa8] sm:$0xff]  ;;  %4282 = vmatprep.subr.bf16.mxu0 %v4281_v16  ;;  %v4415_v25 = vpack.c.bf16 %v538_v22, %v534_v20  ;;  %v543_v27 = vld [vmem:[%s5433_s29 + $0x98] sm:$0xff]  ;;  %v540_v29 = vld [vmem:[%s5433_s29 + $0x80] sm:$0xff] }
  0x72   : > { %4414 = vmatprep.subr.bf16.mxu1 %v4413_v17  ;;  %v4285_v26 = vpack.c.bf16 %v545_v24, %v541_v23  ;;  %v547_v28 = vld [vmem:[%s5433_s29 + $0xb8] sm:$0xff]  ;;  %v544_v31 = vld [vmem:[%s5433_s29 + $0xa0] sm:$0xff]  ;;  %v542_v32 = vld [vmem:[%s5433_s29 + $0x90] sm:$0xff] }
  0x73   : > { %v4417_v30 = vpack.c.bf16 %v547_v28, %v543_v27  ;;  %v546_v33 = vld [vmem:[%s5433_s29 + $0xb0] sm:$0xff]  ;;  %v4287_v34 = vpack.c.bf16 %v544_v31, %v540_v29  ;;  %v549_v35 = vld [vmem:[%s5433_s29 + $0xc8] sm:$0xff]  ;;  %v551_v37 = vld [vmem:[%s5433_s29 + $0xd8] sm:$0xff] }
  0x74   : > { %4284 = vmatpush1.bf16.msra.mxu0 %v4283_v21  ;;  %v553_v36 = vld [vmem:[%s5433_s29 + $0xe8] sm:$0xff]  ;;  %v4419_v38 = vpack.c.bf16 %v546_v33, %v542_v32  ;;  %v555_v40 = vld [vmem:[%s5433_s29 + $0xf8] sm:$0xff]  ;;  %v548_v41 = vld [vmem:[%s5433_s29 + $0xc0] sm:$0xff] }
  0x75   : > { %4416 = vmatpush1.bf16.msra.mxu1 %v4415_v25  ;;  %4286 = vmatprep.subr.bf16.mxu0 %v4285_v26  ;;  %v4289_v39 = vpack.c.bf16 %v553_v36, %v549_v35  ;;  %v552_v42 = vld [vmem:[%s5433_s29 + $0xe0] sm:$0xff]  ;;  %v4421_v43 = vpack.c.bf16 %v555_v40, %v551_v37  ;;  %v550_v44 = vld [vmem:[%s5433_s29 + $0xd0] sm:$0xff]  ;;  %v557_v46 = vld [vmem:[%s5433_s29 + $0x108] sm:$0xff] }
  0x76   : > { %4418 = vmatprep.subr.bf16.mxu1 %v4417_v30  ;;  %v554_v45 = vld [vmem:[%s5433_s29 + $0xf0] sm:$0xff]  ;;  %v561_v47 = vld [vmem:[%s5433_s29 + $0x128] sm:$0xff]  ;;  %v559_v48 = vld [vmem:[%s5433_s29 + $0x118] sm:$0xff]  ;;  %v4291_v50 = vpack.c.bf16 %v552_v42, %v548_v41 }
  0x77   : > { %v563_v49 = vld [vmem:[%s5433_s29 + $0x138] sm:$0xff]  ;;  %v4423_v51 = vpack.c.bf16 %v554_v45, %v550_v44  ;;  %v4293_v52 = vpack.c.bf16 %v561_v47, %v557_v46  ;;  %v556_v53 = vld [vmem:[%s5433_s29 + $0x100] sm:$0xff]  ;;  %v558_v55 = vld [vmem:[%s5433_s29 + $0x110] sm:$0xff] }
  0x78   : > { %4288 = vmatpush1.bf16.msra.mxu0 %v4287_v34  ;;  %v560_v54 = vld [vmem:[%s5433_s29 + $0x120] sm:$0xff]  ;;  %v4425_v56 = vpack.c.bf16 %v563_v49, %v559_v48  ;;  %v562_v57 = vld [vmem:[%s5433_s29 + $0x130] sm:$0xff]  ;;  %v565_v58 = vld [vmem:[%s5433_s29 + $0x148] sm:$0xff] }
  0x79   : > { %4420 = vmatpush1.bf16.msra.mxu1 %v4419_v38  ;;  %4290 = vmatprep.subr.bf16.mxu0 %v4289_v39  ;;  %v569_v59 = vld [vmem:[%s5433_s29 + $0x168] sm:$0xff]  ;;  %v567_v60 = vld [vmem:[%s5433_s29 + $0x158] sm:$0xff]  ;;  %v4295_v62 = vpack.c.bf16 %v560_v54, %v556_v53  ;;  %v4427_v63 = vpack.c.bf16 %v562_v57, %v558_v55  ;;  %v564_v1 = vld [vmem:[%s5433_s29 + $0x140] sm:$0xff] }
  0x7a   : > { %4422 = vmatprep.subr.bf16.mxu1 %v4421_v43  ;;  %v571_v61 = vld [vmem:[%s5433_s29 + $0x178] sm:$0xff]  ;;  %v4297_v0 = vpack.c.bf16 %v569_v59, %v565_v58  ;;  %v568_v2 = vld [vmem:[%s5433_s29 + $0x160] sm:$0xff]  ;;  %v566_v3 = vld [vmem:[%s5433_s29 + $0x150] sm:$0xff] }
  0x7b   : > { %v4429_v4 = vpack.c.bf16 %v571_v61, %v567_v60  ;;  %v570_v5 = vld [vmem:[%s5433_s29 + $0x170] sm:$0xff]  ;;  %v573_v6 = vld [vmem:[%s5433_s29 + $0x188] sm:$0xff]  ;;  %v575_v8 = vld [vmem:[%s5433_s29 + $0x198] sm:$0xff]  ;;  %v4299_v10 = vpack.c.bf16 %v568_v2, %v564_v1 }
  0x7c   : > { %4292 = vmatpush1.bf16.msra.mxu0 %v4291_v50  ;;  %v577_v7 = vld [vmem:[%s5433_s29 + $0x1a8] sm:$0xff]  ;;  %v579_v9 = vld [vmem:[%s5433_s29 + $0x1b8] sm:$0xff]  ;;  %v4431_v11 = vpack.c.bf16 %v570_v5, %v566_v3  ;;  %v572_v13 = vld [vmem:[%s5433_s29 + $0x180] sm:$0xff] }
  0x7d   : > { %4424 = vmatpush1.bf16.msra.mxu1 %v4423_v51  ;;  %4294 = vmatprep.subr.bf16.mxu0 %v4293_v52  ;;  %v4301_v12 = vpack.c.bf16 %v577_v7, %v573_v6  ;;  %v576_v14 = vld [vmem:[%s5433_s29 + $0x1a0] sm:$0xff]  ;;  %v574_v15 = vld [vmem:[%s5433_s29 + $0x190] sm:$0xff]  ;;  %v4433_v16 = vpack.c.bf16 %v579_v9, %v575_v8  ;;  %v581_v18 = vld [vmem:[%s5433_s29 + $0x1c8] sm:$0xff] }
  0x7e   : > { %4426 = vmatprep.subr.bf16.mxu1 %v4425_v56  ;;  %v578_v17 = vld [vmem:[%s5433_s29 + $0x1b0] sm:$0xff]  ;;  %v585_v19 = vld [vmem:[%s5433_s29 + $0x1e8] sm:$0xff]  ;;  %v583_v20 = vld [vmem:[%s5433_s29 + $0x1d8] sm:$0xff]  ;;  %v4303_v22 = vpack.c.bf16 %v576_v14, %v572_v13 }
  0x7f   : > { %v587_v21 = vld [vmem:[%s5433_s29 + $0x1f8] sm:$0xff]  ;;  %v4435_v23 = vpack.c.bf16 %v578_v17, %v574_v15  ;;  %v4305_v24 = vpack.c.bf16 %v585_v19, %v581_v18  ;;  %v580_v25 = vld [vmem:[%s5433_s29 + $0x1c0] sm:$0xff]  ;;  %v582_v27 = vld [vmem:[%s5433_s29 + $0x1d0] sm:$0xff] }
  0x80   : > { %4296 = vmatpush1.bf16.msra.mxu0 %v4295_v62  ;;  %v584_v26 = vld [vmem:[%s5433_s29 + $0x1e0] sm:$0xff]  ;;  %v4437_v28 = vpack.c.bf16 %v587_v21, %v583_v20  ;;  %v586_v29 = vld [vmem:[%s5433_s29 + $0x1f0] sm:$0xff]  ;;  %v589_v30 = vld [vmem:[%s5433_s29 + $0x208] sm:$0xff] }
  0x81   : > { %4428 = vmatpush1.bf16.msra.mxu1 %v4427_v63  ;;  %4298 = vmatprep.subr.bf16.mxu0 %v4297_v0  ;;  %v593_v31 = vld [vmem:[%s5433_s29 + $0x228] sm:$0xff]  ;;  %v591_v32 = vld [vmem:[%s5433_s29 + $0x218] sm:$0xff]  ;;  %v4307_v34 = vpack.c.bf16 %v584_v26, %v580_v25  ;;  %v4439_v35 = vpack.c.bf16 %v586_v29, %v582_v27  ;;  %v588_v37 = vld [vmem:[%s5433_s29 + $0x200] sm:$0xff] }
  0x82   : > { %4430 = vmatprep.subr.bf16.mxu1 %v4429_v4  ;;  %v595_v33 = vld [vmem:[%s5433_s29 + $0x238] sm:$0xff]  ;;  %v4309_v36 = vpack.c.bf16 %v593_v31, %v589_v30  ;;  %v592_v38 = vld [vmem:[%s5433_s29 + $0x220] sm:$0xff]  ;;  %v590_v39 = vld [vmem:[%s5433_s29 + $0x210] sm:$0xff] }
  0x83   : > { %v4441_v40 = vpack.c.bf16 %v595_v33, %v591_v32  ;;  %v594_v41 = vld [vmem:[%s5433_s29 + $0x230] sm:$0xff]  ;;  %v597_v42 = vld [vmem:[%s5433_s29 + $0x248] sm:$0xff]  ;;  %v599_v44 = vld [vmem:[%s5433_s29 + $0x258] sm:$0xff]  ;;  %v4311_v46 = vpack.c.bf16 %v592_v38, %v588_v37 }
  0x84   : > { %4300 = vmatpush1.bf16.msra.mxu0 %v4299_v10  ;;  %v601_v43 = vld [vmem:[%s5433_s29 + $0x268] sm:$0xff]  ;;  %v603_v45 = vld [vmem:[%s5433_s29 + $0x278] sm:$0xff]  ;;  %v4443_v47 = vpack.c.bf16 %v594_v41, %v590_v39  ;;  %v596_v49 = vld [vmem:[%s5433_s29 + $0x240] sm:$0xff] }
  0x85   : > { %4432 = vmatpush1.bf16.msra.mxu1 %v4431_v11  ;;  %4302 = vmatprep.subr.bf16.mxu0 %v4301_v12  ;;  %v4313_v48 = vpack.c.bf16 %v601_v43, %v597_v42  ;;  %v600_v50 = vld [vmem:[%s5433_s29 + $0x260] sm:$0xff]  ;;  %v598_v51 = vld [vmem:[%s5433_s29 + $0x250] sm:$0xff]  ;;  %v4445_v52 = vpack.c.bf16 %v603_v45, %v599_v44  ;;  %v605_v54 = vld [vmem:[%s5433_s29 + $0x288] sm:$0xff] }
  0x86   : > { %4434 = vmatprep.subr.bf16.mxu1 %v4433_v16  ;;  %v602_v53 = vld [vmem:[%s5433_s29 + $0x270] sm:$0xff]  ;;  %v609_v55 = vld [vmem:[%s5433_s29 + $0x2a8] sm:$0xff]  ;;  %v607_v56 = vld [vmem:[%s5433_s29 + $0x298] sm:$0xff]  ;;  %v4315_v58 = vpack.c.bf16 %v600_v50, %v596_v49 }
  0x87   : > { %v611_v57 = vld [vmem:[%s5433_s29 + $0x2b8] sm:$0xff]  ;;  %v4447_v59 = vpack.c.bf16 %v602_v53, %v598_v51  ;;  %v4317_v60 = vpack.c.bf16 %v609_v55, %v605_v54  ;;  %v604_v61 = vld [vmem:[%s5433_s29 + $0x280] sm:$0xff]  ;;  %v606_v63 = vld [vmem:[%s5433_s29 + $0x290] sm:$0xff] }
  0x88   : > { %4304 = vmatpush1.bf16.msra.mxu0 %v4303_v22  ;;  %v608_v62 = vld [vmem:[%s5433_s29 + $0x2a0] sm:$0xff]  ;;  %v4449_v0 = vpack.c.bf16 %v611_v57, %v607_v56  ;;  %v610_v1 = vld [vmem:[%s5433_s29 + $0x2b0] sm:$0xff]  ;;  %v613_v2 = vld [vmem:[%s5433_s29 + $0x2c8] sm:$0xff] }
  0x89   : > { %4436 = vmatpush1.bf16.msra.mxu1 %v4435_v23  ;;  %4306 = vmatprep.subr.bf16.mxu0 %v4305_v24  ;;  %v617_v3 = vld [vmem:[%s5433_s29 + $0x2e8] sm:$0xff]  ;;  %v615_v4 = vld [vmem:[%s5433_s29 + $0x2d8] sm:$0xff]  ;;  %v4319_v6 = vpack.c.bf16 %v608_v62, %v604_v61  ;;  %v612_v7 = vld [vmem:[%s5433_s29 + $0x2c0] sm:$0xff]  ;;  %v4451_v8 = vpack.c.bf16 %v610_v1, %v606_v63 }
  0x8a   : > { %4438 = vmatprep.subr.bf16.mxu1 %v4437_v28  ;;  %v619_v5 = vld [vmem:[%s5433_s29 + $0x2f8] sm:$0xff]  ;;  %v4321_v9 = vpack.c.bf16 %v617_v3, %v613_v2  ;;  %v616_v10 = vld [vmem:[%s5433_s29 + $0x2e0] sm:$0xff]  ;;  %v614_v11 = vld [vmem:[%s5433_s29 + $0x2d0] sm:$0xff] }
  0x8b   : > { %v618_v12 = vld [vmem:[%s5433_s29 + $0x2f0] sm:$0xff]  ;;  %v4453_v13 = vpack.c.bf16 %v619_v5, %v615_v4  ;;  %v621_v14 = vld [vmem:[%s5433_s29 + $0x308] sm:$0xff]  ;;  %v195_v16 = vld [vmem:[#allocation2 + $0x8] sm:$0xff]  ;;  %v4323_v19 = vpack.c.bf16 %v616_v10, %v612_v7 }
  0x8c   : > { %4308 = vmatpush1.bf16.msra.mxu0 %v4307_v34  ;;  %v625_v15 = vld [vmem:[%s5433_s29 + $0x328] sm:$0xff]  ;;  %v623_v17 = vld [vmem:[%s5433_s29 + $0x318] sm:$0xff]  ;;  %1051 = vmatprep.mubr.f32.mxu0 %v195_v16  ;;  %v4455_v20 = vpack.c.bf16 %v618_v12, %v614_v11  ;;  %v620_v22 = vld [vmem:[%s5433_s29 + $0x300] sm:$0xff] }
  0x8d   : > { %4440 = vmatpush1.bf16.msra.mxu1 %v4439_v35  ;;  %4310 = vmatprep.subr.bf16.mxu0 %v4309_v36  ;;  %v627_v18 = vld [vmem:[%s5433_s29 + $0x338] sm:$0xff]  ;;  %v4325_v21 = vpack.c.bf16 %v625_v15, %v621_v14  ;;  %v624_v23 = vld [vmem:[%s5433_s29 + $0x320] sm:$0xff]  ;;  %v622_v24 = vld [vmem:[%s5433_s29 + $0x310] sm:$0xff] }
  0x8e   : > { %4442 = vmatprep.subr.bf16.mxu1 %v4441_v40  ;;  %2434 = vmatprep.mubr.f32.mxu1 %v195_v16  ;;  %v4457_v25 = vpack.c.bf16 %v627_v18, %v623_v17  ;;  %v626_v26 = vld [vmem:[%s5433_s29 + $0x330] sm:$0xff]  ;;  %v629_v27 = vld [vmem:[%s5433_s29 + $0x348] sm:$0xff]  ;;  %v631_v29 = vld [vmem:[%s5433_s29 + $0x358] sm:$0xff]  ;;  %v4327_v31 = vpack.c.bf16 %v624_v23, %v620_v22 }
  0x8f   : > { %v633_v28 = vld [vmem:[%s5433_s29 + $0x368] sm:$0xff]  ;;  %v635_v30 = vld [vmem:[%s5433_s29 + $0x378] sm:$0xff]  ;;  %v4459_v32 = vpack.c.bf16 %v626_v26, %v622_v24  ;;  %v628_v34 = vld [vmem:[%s5433_s29 + $0x340] sm:$0xff] }
  0x90   : > { %4312 = vmatpush1.bf16.msra.mxu0 %v4311_v46  ;;  %v4329_v33 = vpack.c.bf16 %v633_v28, %v629_v27  ;;  %v632_v35 = vld [vmem:[%s5433_s29 + $0x360] sm:$0xff]  ;;  %v630_v36 = vld [vmem:[%s5433_s29 + $0x350] sm:$0xff]  ;;  %v4461_v37 = vpack.c.bf16 %v635_v30, %v631_v29  ;;  %v637_v39 = vld [vmem:[%s5433_s29 + $0x388] sm:$0xff] }
  0x91   : > { %4444 = vmatpush1.bf16.msra.mxu1 %v4443_v47  ;;  %4314 = vmatprep.subr.bf16.mxu0 %v4313_v48  ;;  %v634_v38 = vld [vmem:[%s5433_s29 + $0x370] sm:$0xff]  ;;  %v641_v40 = vld [vmem:[%s5433_s29 + $0x3a8] sm:$0xff]  ;;  %v639_v41 = vld [vmem:[%s5433_s29 + $0x398] sm:$0xff]  ;;  %v4331_v43 = vpack.c.bf16 %v632_v35, %v628_v34 }
  0x92   : > { %4446 = vmatprep.subr.bf16.mxu1 %v4445_v52  ;;  %v643_v42 = vld [vmem:[%s5433_s29 + $0x3b8] sm:$0xff]  ;;  %v4463_v44 = vpack.c.bf16 %v634_v38, %v630_v36  ;;  %v4333_v45 = vpack.c.bf16 %v641_v40, %v637_v39  ;;  %v636_v46 = vld [vmem:[%s5433_s29 + $0x380] sm:$0xff]  ;;  %v638_v48 = vld [vmem:[%s5433_s29 + $0x390] sm:$0xff] }
  0x93   : > { %v640_v47 = vld [vmem:[%s5433_s29 + $0x3a0] sm:$0xff]  ;;  %v4465_v49 = vpack.c.bf16 %v643_v42, %v639_v41  ;;  %v642_v50 = vld [vmem:[%s5433_s29 + $0x3b0] sm:$0xff]  ;;  %v645_v51 = vld [vmem:[%s5433_s29 + $0x3c8] sm:$0xff] }
  0x94   : > { %4316 = vmatpush1.bf16.msra.mxu0 %v4315_v58  ;;  %v649_v52 = vld [vmem:[%s5433_s29 + $0x3e8] sm:$0xff]  ;;  %v647_v53 = vld [vmem:[%s5433_s29 + $0x3d8] sm:$0xff]  ;;  %v4335_v55 = vpack.c.bf16 %v640_v47, %v636_v46  ;;  %v4467_v56 = vpack.c.bf16 %v642_v50, %v638_v48  ;;  %v644_v58 = vld [vmem:[%s5433_s29 + $0x3c0] sm:$0xff] }
  0x95   : > { %4448 = vmatpush1.bf16.msra.mxu1 %v4447_v59  ;;  %4318 = vmatprep.subr.bf16.mxu0 %v4317_v60  ;;  %v651_v54 = vld [vmem:[%s5433_s29 + $0x3f8] sm:$0xff]  ;;  %v4337_v57 = vpack.c.bf16 %v649_v52, %v645_v51  ;;  %v648_v59 = vld [vmem:[%s5433_s29 + $0x3e0] sm:$0xff]  ;;  %v646_v60 = vld [vmem:[%s5433_s29 + $0x3d0] sm:$0xff] }
  0x96   : > { %4450 = vmatprep.subr.bf16.mxu1 %v4449_v0  ;;  %v4469_v61 = vpack.c.bf16 %v651_v54, %v647_v53  ;;  %v650_v62 = vld [vmem:[%s5433_s29 + $0x3f0] sm:$0xff]  ;;  %v653_v63 = vld [vmem:[%s5433_s29 + $0x408] sm:$0xff]  ;;  %v655_v1 = vld [vmem:[%s5433_s29 + $0x418] sm:$0xff]  ;;  %v4339_v3 = vpack.c.bf16 %v648_v59, %v644_v58 }
  0x97   : > { %v657_v0 = vld [vmem:[%s5433_s29 + $0x428] sm:$0xff]  ;;  %v659_v2 = vld [vmem:[%s5433_s29 + $0x438] sm:$0xff]  ;;  %v4471_v4 = vpack.c.bf16 %v650_v62, %v646_v60  ;;  %v656_v7 = vld [vmem:[%s5433_s29 + $0x420] sm:$0xff] }
  0x98   : > { %4320 = vmatpush1.bf16.msra.mxu0 %v4319_v6  ;;  %v4341_v5 = vpack.c.bf16 %v657_v0, %v653_v63  ;;  %v652_v6 = vld [vmem:[%s5433_s29 + $0x400] sm:$0xff]  ;;  %v658_v10 = vld [vmem:[%s5433_s29 + $0x430] sm:$0xff]  ;;  %v661_v11 = vld [vmem:[%s5433_s29 + $0x448] sm:$0xff] }
  0x99   : > { %4452 = vmatpush1.bf16.msra.mxu1 %v4451_v8  ;;  %4322 = vmatprep.subr.bf16.mxu0 %v4321_v9  ;;  %v4473_v8 = vpack.c.bf16 %v659_v2, %v655_v1  ;;  %v654_v9 = vld [vmem:[%s5433_s29 + $0x410] sm:$0xff]  ;;  %v665_v12 = vld [vmem:[%s5433_s29 + $0x468] sm:$0xff]  ;;  %v4343_v14 = vpack.c.bf16 %v656_v7, %v652_v6  ;;  %v663_v15 = vld [vmem:[%s5433_s29 + $0x458] sm:$0xff] }
  0x9a   : > { %4454 = vmatprep.subr.bf16.mxu1 %v4453_v13  ;;  %v194_v13 = vld [vmem:[#allocation2] sm:$0xff]  ;;  %v667_v16 = vld [vmem:[%s5433_s29 + $0x478] sm:$0xff]  ;;  %v4475_v17 = vpack.c.bf16 %v658_v10, %v654_v9  ;;  %v200_v18 = vld [vmem:[#allocation2 + $0x30] sm:$0xff] }
  0x9b   : > { %v662_v22 = vld [vmem:[%s5433_s29 + $0x450] sm:$0xff]  ;;  %v4477_v23 = vpack.c.bf16 %v667_v16, %v663_v15  ;;  %v673_v26 = vld [vmem:[%s5433_s29 + $0x4a8] sm:$0xff]  ;;  %v199_v27 = vld [vmem:[#allocation2 + $0x28] sm:$0xff] }
  0x9c   : > { %4324 = vmatpush1.bf16.msra.mxu0 %v4323_v19  ;;  %v4345_v19 = vpack.c.bf16 %v665_v12, %v661_v11  ;;  %v666_v24 = vld [vmem:[%s5433_s29 + $0x470] sm:$0xff]  ;;  %v671_v28 = vld [vmem:[%s5433_s29 + $0x498] sm:$0xff]  ;;  %v205_v30 = vld [vmem:[#allocation2 + $0x58] sm:$0xff] }
  0x9d   : > { %4456 = vmatpush1.bf16.msra.mxu1 %v4455_v20  ;;  %4326 = vmatprep.subr.bf16.mxu0 %v4325_v21  ;;  %v660_v20 = vld [vmem:[%s5433_s29 + $0x440] sm:$0xff]  ;;  %v675_v29 = vld [vmem:[%s5433_s29 + $0x4b8] sm:$0xff]  ;;  %v670_v36 = vld [vmem:[%s5433_s29 + $0x490] sm:$0xff] }
  0x9e   : > { %4458 = vmatprep.subr.bf16.mxu1 %v4457_v25  ;;  %v664_v21 = vld [vmem:[%s5433_s29 + $0x460] sm:$0xff]  ;;  %v669_v25 = vld [vmem:[%s5433_s29 + $0x488] sm:$0xff]  ;;  %v674_v38 = vld [vmem:[%s5433_s29 + $0x4b0] sm:$0xff] }
  0x9f   : > { %v668_v34 = vld [vmem:[%s5433_s29 + $0x480] sm:$0xff]  ;;  %v677_v39 = vld [vmem:[%s5433_s29 + $0x4c8] sm:$0xff]  ;;  %v679_v42 = vld [vmem:[%s5433_s29 + $0x4d8] sm:$0xff]  ;;  %v4483_v46 = vpack.c.bf16 %v674_v38, %v670_v36 }
  0xa0   : > { %4328 = vmatpush1.bf16.msra.mxu0 %v4327_v31  ;;  %v4347_v31 = vpack.c.bf16 %v664_v21, %v660_v20  ;;  %v672_v35 = vld [vmem:[%s5433_s29 + $0x4a0] sm:$0xff]  ;;  %v681_v40 = vld [vmem:[%s5433_s29 + $0x4e8] sm:$0xff]  ;;  %v678_v50 = vld [vmem:[%s5433_s29 + $0x4d0] sm:$0xff] }
  0xa1   : > { %4460 = vmatpush1.bf16.msra.mxu1 %v4459_v32  ;;  %4330 = vmatprep.subr.bf16.mxu0 %v4329_v33  ;;  %v4479_v32 = vpack.c.bf16 %v666_v24, %v662_v22  ;;  %v4349_v33 = vpack.c.bf16 %v673_v26, %v669_v25  ;;  %v204_v41 = vld [vmem:[#allocation2 + $0x50] sm:$0xff]  ;;  %v4353_v47 = vpack.c.bf16 %v681_v40, %v677_v39  ;;  %v682_v52 = vld [vmem:[%s5433_s29 + $0x4f0] sm:$0xff]  ;;  %v685_v53 = vld [vmem:[%s5433_s29 + $0x508] sm:$0xff] }
  0xa2   : > { %4462 = vmatprep.subr.bf16.mxu1 %v4461_v37  ;;  %v4481_v37 = vpack.c.bf16 %v675_v29, %v671_v28  ;;  %v676_v48 = vld [vmem:[%s5433_s29 + $0x4c0] sm:$0xff]  ;;  %v689_v54 = vld [vmem:[%s5433_s29 + $0x528] sm:$0xff]  ;;  %v215_v58 = vld [vmem:[#allocation2 + $0xa8] sm:$0xff]  ;;  %v4487_v60 = vpack.c.bf16 %v682_v52, %v678_v50 }
  0xa3   : > { %v684_v62 = vld [vmem:[%s5433_s29 + $0x500] sm:$0xff]  ;;  %v686_v0 = vld [vmem:[%s5433_s29 + $0x510] sm:$0xff]  ;;  %v695_v6 = vld [vmem:[%s5433_s29 + $0x558] sm:$0xff] }
  0xa4   : > { %4332 = vmatpush1.bf16.msra.mxu0 %v4331_v43  ;;  %v683_v43 = vld [vmem:[%s5433_s29 + $0x4f8] sm:$0xff]  ;;  %v688_v63 = vld [vmem:[%s5433_s29 + $0x520] sm:$0xff]  ;;  %v690_v2 = vld [vmem:[%s5433_s29 + $0x530] sm:$0xff] }
  0xa5   : > { %4464 = vmatpush1.bf16.msra.mxu1 %v4463_v44  ;;  %4334 = vmatprep.subr.bf16.mxu0 %v4333_v45  ;;  %v210_v44 = vld [vmem:[#allocation2 + $0x80] sm:$0xff]  ;;  %v4351_v45 = vpack.c.bf16 %v672_v35, %v668_v34  ;;  %v4485_v51 = vpack.c.bf16 %v683_v43, %v679_v42  ;;  %v699_v7 = vld [vmem:[%s5433_s29 + $0x578] sm:$0xff]  ;;  %v4359_v9 = vpack.c.bf16 %v688_v63, %v684_v62  ;;  %v692_v12 = vld [vmem:[%s5433_s29 + $0x540] sm:$0xff] }
  0xa6   : > { %4466 = vmatprep.subr.bf16.mxu1 %v4465_v49  ;;  %v680_v49 = vld [vmem:[%s5433_s29 + $0x4e0] sm:$0xff]  ;;  %v4491_v10 = vpack.c.bf16 %v690_v2, %v686_v0  ;;  %v4493_v15 = vpack.c.bf16 %v699_v7, %v695_v6  ;;  %v698_v16 = vld [vmem:[%s5433_s29 + $0x570] sm:$0xff]  ;;  %v703_v20 = vld [vmem:[%s5433_s29 + $0x598] sm:$0xff] }
  0xa7   : > { %v4355_v59 = vpack.c.bf16 %v680_v49, %v676_v48  ;;  %v707_v21 = vld [vmem:[%s5433_s29 + $0x5b8] sm:$0xff]  ;;  %v225_v22 = vld [vmem:[#allocation2 + $0xf8] sm:$0xff]  ;;  %v700_v26 = vld [vmem:[%s5433_s29 + $0x580] sm:$0xff] }
  0xa8   : > { %4336 = vmatpush1.bf16.msra.mxu0 %v4335_v55  ;;  %v209_v55 = vld [vmem:[#allocation2 + $0x78] sm:$0xff]  ;;  %v702_v28 = vld [vmem:[%s5433_s29 + $0x590] sm:$0xff]  ;;  %v4497_v29 = vpack.c.bf16 %v707_v21, %v703_v20  ;;  %v711_v34 = vld [vmem:[%s5433_s29 + $0x5d8] sm:$0xff] }
  0xa9   : > { %4468 = vmatpush1.bf16.msra.mxu1 %v4467_v56  ;;  %4338 = vmatprep.subr.bf16.mxu0 %v4337_v57  ;;  %v687_v56 = vld [vmem:[%s5433_s29 + $0x518] sm:$0xff]  ;;  %v230_v36 = vld [vmem:[#allocation2 + $0x120] sm:$0xff]  ;;  %v708_v40 = vld [vmem:[%s5433_s29 + $0x5c0] sm:$0xff] }
  0xaa   : > { %4470 = vmatprep.subr.bf16.mxu1 %v4469_v61  ;;  %v691_v57 = vld [vmem:[%s5433_s29 + $0x538] sm:$0xff]  ;;  %v4357_v61 = vpack.c.bf16 %v689_v54, %v685_v53  ;;  %v710_v42 = vld [vmem:[%s5433_s29 + $0x5d0] sm:$0xff]  ;;  %v716_v54 = vld [vmem:[%s5433_s29 + $0x600] sm:$0xff] }
  0xab   : > { %v4489_v1 = vpack.c.bf16 %v691_v57, %v687_v56  ;;  %v715_v35 = vld [vmem:[%s5433_s29 + $0x5f8] sm:$0xff]  ;;  %v718_v56 = vld [vmem:[%s5433_s29 + $0x610] sm:$0xff]  ;;  %v240_v0 = vld [vmem:[#allocation2 + $0x170] sm:$0xff] }
  0xac   : > { %4340 = vmatpush1.bf16.msra.mxu0 %v4339_v3  ;;  %v693_v3 = vld [vmem:[%s5433_s29 + $0x548] sm:$0xff]  ;;  %v4501_v43 = vpack.c.bf16 %v715_v35, %v711_v34  ;;  %v719_v48 = vld [vmem:[%s5433_s29 + $0x618] sm:$0xff]  ;;  %v726_v7 = vld [vmem:[%s5433_s29 + $0x650] sm:$0xff] }
  0xad   : > { %4472 = vmatpush1.bf16.msra.mxu1 %v4471_v4  ;;  %4342 = vmatprep.subr.bf16.mxu0 %v4341_v5  ;;  %v697_v4 = vld [vmem:[%s5433_s29 + $0x568] sm:$0xff]  ;;  %v214_v5 = vld [vmem:[#allocation2 + $0xa0] sm:$0xff]  ;;  %v723_v49 = vld [vmem:[%s5433_s29 + $0x638] sm:$0xff] }
  0xae   : > { %4474 = vmatprep.subr.bf16.mxu1 %v4473_v8  ;;  %v220_v8 = vld [vmem:[#allocation2 + $0xd0] sm:$0xff]  ;;  %v4361_v11 = vpack.c.bf16 %v697_v4, %v693_v3  ;;  %v235_v50 = vld [vmem:[#allocation2 + $0x148] sm:$0xff]  ;;  %v4505_v57 = vpack.c.bf16 %v723_v49, %v719_v48  ;;  %v741_v34 = vld [vmem:[%s5433_s29 + $0x6c8] sm:$0xff] }
  0xaf   : > { %1052 = vmatmul.mubr.f32.vlgmr.msra.gmra.mrb[0].mxu0 %v194_v13  ;;  %v727_v62 = vld [vmem:[%s5433_s29 + $0x658] sm:$0xff]  ;;  %v724_v4 = vld [vmem:[%s5433_s29 + $0x640] sm:$0xff]  ;;  %v745_v35 = vld [vmem:[%s5433_s29 + $0x6e8] sm:$0xff] }
  0xb0   : > { %2435 = vmatmul.mubr.f32.vlgmr.msra.gmra.mrb[0].mxu1 %v194_v13  ;;  %4344 = vmatpush1.bf16.msra.mxu0 %v4343_v14  ;;  %v696_v13 = vld [vmem:[%s5433_s29 + $0x560] sm:$0xff]  ;;  %v694_v14 = vld [vmem:[%s5433_s29 + $0x550] sm:$0xff]  ;;  %v731_v63 = vld [vmem:[%s5433_s29 + $0x678] sm:$0xff] }
  0xb1   : > { %4476 = vmatpush1.bf16.msra.mxu1 %v4475_v17  ;;  %1057 = vmatprep.mubr.f32.mxu0 %v200_v18  ;;  %v701_v17 = vld [vmem:[%s5433_s29 + $0x588] sm:$0xff]  ;;  %v4495_v24 = vpack.c.bf16 %v698_v16, %v694_v14  ;;  %v4509_v6 = vpack.c.bf16 %v731_v63, %v727_v62  ;;  %v250_v14 = vld [vmem:[#allocation2 + $0x1c0] sm:$0xff]  ;;  %v732_v20 = vld [vmem:[%s5433_s29 + $0x680] sm:$0xff] }
  0xb2   : > { %2440 = vmatprep.mubr.f32.mxu1 %v200_v18  ;;  %4346 = vmatprep.subr.bf16.mxu0 %v4345_v19  ;;  %v705_v18 = vld [vmem:[%s5433_s29 + $0x5a8] sm:$0xff]  ;;  %v219_v19 = vld [vmem:[#allocation2 + $0xc8] sm:$0xff]  ;;  %v736_v21 = vld [vmem:[%s5433_s29 + $0x6a0] sm:$0xff] }
  0xb3   : > { %1058 = vmatmul.mubr.f32.gmra.mrb[2].mxu0 %v199_v27  ;;  %4478 = vmatprep.subr.bf16.mxu1 %v4477_v23  ;;  %v4363_v23 = vpack.c.bf16 %v696_v13, %v692_v12  ;;  %v4365_v25 = vpack.c.bf16 %v705_v18, %v701_v17  ;;  %v244_v13 = vld [vmem:[#allocation2 + $0x190] sm:$0xff]  ;;  %v737_v16 = vld [vmem:[%s5433_s29 + $0x6a8] sm:$0xff]  ;;  %v735_v17 = vld [vmem:[%s5433_s29 + $0x698] sm:$0xff] }
  0xb4   : > { %2441 = vmatmul.mubr.f32.gmra.mrb[2].mxu1 %v199_v27  ;;  %1063 = vmatprep.mubr.f32.mxu0 %v205_v30  ;;  %v704_v27 = vld [vmem:[%s5433_s29 + $0x5a0] sm:$0xff]  ;;  %v275_v48 = vld [vmem:[#allocation2 + $0x288] sm:$0xff]  ;;  %v274_v49 = vld [vmem:[#allocation2 + $0x280] sm:$0xff] }
  0xb5   : > { %2446 = vmatprep.mubr.f32.mxu1 %v205_v30  ;;  %4348 = vmatpush1.bf16.msra.mxu0 %v4347_v31  ;;  %v706_v30 = vld [vmem:[%s5433_s29 + $0x5b0] sm:$0xff]  ;;  %v709_v31 = vld [vmem:[%s5433_s29 + $0x5c8] sm:$0xff]  ;;  %v752_v62 = vld [vmem:[%s5433_s29 + $0x720] sm:$0xff] }
  0xb6   : > { %4480 = vmatpush1.bf16.msra.mxu1 %v4479_v32  ;;  %4350 = vmatprep.subr.bf16.mxu0 %v4349_v33  ;;  %v713_v32 = vld [vmem:[%s5433_s29 + $0x5e8] sm:$0xff]  ;;  %v224_v33 = vld [vmem:[#allocation2 + $0xf0] sm:$0xff]  ;;  %v4499_v38 = vpack.c.bf16 %v706_v30, %v702_v28  ;;  %v255_v28 = vld [vmem:[#allocation2 + $0x1e8] sm:$0xff] }
  0xb7   : > { %1064 = vmatmul.mubr.f32.gmra.mrb[4].mxu0 %v204_v41  ;;  %4482 = vmatprep.subr.bf16.mxu1 %v4481_v37  ;;  %v4367_v37 = vpack.c.bf16 %v704_v27, %v700_v26  ;;  %v4369_v39 = vpack.c.bf16 %v713_v32, %v709_v31  ;;  %v249_v27 = vld [vmem:[#allocation2 + $0x1b8] sm:$0xff]  ;;  %v260_v30 = vld [vmem:[#allocation2 + $0x210] sm:$0xff]  ;;  %v259_v31 = vld [vmem:[#allocation2 + $0x208] sm:$0xff] }
  0xb8   : > { %2447 = vmatmul.mubr.f32.gmra.mrb[4].mxu1 %v204_v41  ;;  %1069 = vmatprep.mubr.f32.mxu0 %v210_v44  ;;  %v712_v41 = vld [vmem:[%s5433_s29 + $0x5e0] sm:$0xff]  ;;  %v265_v32 = vld [vmem:[#allocation2 + $0x238] sm:$0xff]  ;;  %v750_v63 = vld [vmem:[%s5433_s29 + $0x710] sm:$0xff] }
  0xb9   : > { %2452 = vmatprep.mubr.f32.mxu1 %v210_v44  ;;  %4352 = vmatpush1.bf16.msra.mxu0 %v4351_v45  ;;  %v714_v44 = vld [vmem:[%s5433_s29 + $0x5f0] sm:$0xff]  ;;  %v717_v45 = vld [vmem:[%s5433_s29 + $0x608] sm:$0xff] }
  0xba   : > { %4484 = vmatpush1.bf16.msra.mxu1 %v4483_v46  ;;  %4354 = vmatprep.subr.bf16.mxu0 %v4353_v47  ;;  %v721_v46 = vld [vmem:[%s5433_s29 + $0x628] sm:$0xff]  ;;  %v4503_v52 = vpack.c.bf16 %v714_v44, %v710_v42  ;;  %v744_v42 = vld [vmem:[%s5433_s29 + $0x6e0] sm:$0xff]  ;;  %v746_v44 = vld [vmem:[%s5433_s29 + $0x6f0] sm:$0xff] }
  0xbb   : > { %1070 = vmatmul.mubr.f32.gmra.mrb[6].mxu0 %v209_v55  ;;  %4486 = vmatprep.subr.bf16.mxu1 %v4485_v51  ;;  %v229_v47 = vld [vmem:[#allocation2 + $0x118] sm:$0xff]  ;;  %v4371_v51 = vpack.c.bf16 %v712_v41, %v708_v40  ;;  %v4373_v53 = vpack.c.bf16 %v721_v46, %v717_v45  ;;  %v740_v40 = vld [vmem:[%s5433_s29 + $0x6c0] sm:$0xff] }
  0xbc   : > { %2453 = vmatmul.mubr.f32.gmra.mrb[6].mxu1 %v209_v55  ;;  %1075 = vmatprep.mubr.f32.mxu0 %v215_v58  ;;  %v720_v55 = vld [vmem:[%s5433_s29 + $0x620] sm:$0xff]  ;;  %v4387_v45 = vpack.c.bf16 %v744_v42, %v740_v40  ;;  %v770_v42 = vld [vmem:[%s5433_s29 + $0x7b0] sm:$0xff] }
  0xbd   : > { %2458 = vmatprep.mubr.f32.mxu1 %v215_v58  ;;  %4356 = vmatpush1.bf16.msra.mxu0 %v4355_v59  ;;  %v722_v58 = vld [vmem:[%s5433_s29 + $0x630] sm:$0xff]  ;;  %v725_v59 = vld [vmem:[%s5433_s29 + $0x648] sm:$0xff] }
  0xbe   : > { %4488 = vmatpush1.bf16.msra.mxu1 %v4487_v60  ;;  %4358 = vmatprep.subr.bf16.mxu0 %v4357_v61  ;;  %v729_v60 = vld [vmem:[%s5433_s29 + $0x668] sm:$0xff]  ;;  %v234_v61 = vld [vmem:[#allocation2 + $0x140] sm:$0xff]  ;;  %v4507_v2 = vpack.c.bf16 %v722_v58, %v718_v56  ;;  %v751_v56 = vld [vmem:[%s5433_s29 + $0x718] sm:$0xff] }
  0xbf   : > { %1076 = vmatmul.mubr.f32.gmra.mrb[8].mxu0 %v214_v5  ;;  %4490 = vmatprep.subr.bf16.mxu1 %v4489_v1  ;;  %v4375_v1 = vpack.c.bf16 %v720_v55, %v716_v54  ;;  %v4377_v3 = vpack.c.bf16 %v729_v60, %v725_v59  ;;  %v749_v54 = vld [vmem:[%s5433_s29 + $0x708] sm:$0xff]  ;;  %v755_v59 = vld [vmem:[%s5433_s29 + $0x738] sm:$0xff]  ;;  %v748_v60 = vld [vmem:[%s5433_s29 + $0x700] sm:$0xff] }
  0xc0   : > { %2459 = vmatmul.mubr.f32.gmra.mrb[8].mxu1 %v214_v5  ;;  %1081 = vmatprep.mubr.f32.mxu0 %v220_v8  ;;  %v728_v5 = vld [vmem:[%s5433_s29 + $0x660] sm:$0xff]  ;;  %v753_v55 = vld [vmem:[%s5433_s29 + $0x728] sm:$0xff] }
  0xc1   : > { %2464 = vmatprep.mubr.f32.mxu1 %v220_v8  ;;  %4360 = vmatpush1.bf16.msra.mxu0 %v4359_v9  ;;  %v730_v8 = vld [vmem:[%s5433_s29 + $0x670] sm:$0xff]  ;;  %v239_v9 = vld [vmem:[#allocation2 + $0x168] sm:$0xff]  ;;  %v4389_v58 = vpack.c.bf16 %v753_v55, %v749_v54  ;;  %v777_v54 = vld [vmem:[%s5433_s29 + $0x7e8] sm:$0xff] }
  0xc2   : > { %4492 = vmatpush1.bf16.msra.mxu1 %v4491_v10  ;;  %4362 = vmatprep.subr.bf16.mxu0 %v4361_v11  ;;  %v245_v10 = vld [vmem:[#allocation2 + $0x198] sm:$0xff]  ;;  %v4379_v11 = vpack.c.bf16 %v728_v5, %v724_v4  ;;  %v4511_v12 = vpack.c.bf16 %v730_v8, %v726_v7  ;;  %v295_v4 = vld [vmem:[#allocation2 + $0x328] sm:$0xff]  ;;  %v294_v5 = vld [vmem:[#allocation2 + $0x320] sm:$0xff] }
  0xc3   : > { %1082 = vmatmul.mubr.f32.gmra.mrb[10].mxu0 %v219_v19  ;;  %4494 = vmatprep.subr.bf16.mxu1 %v4493_v15  ;;  %v733_v15 = vld [vmem:[%s5433_s29 + $0x688] sm:$0xff]  ;;  %v299_v7 = vld [vmem:[#allocation2 + $0x348] sm:$0xff] }
  0xc4   : > { %2465 = vmatmul.mubr.f32.gmra.mrb[10].mxu1 %v219_v19  ;;  %1087 = vmatprep.mubr.f32.mxu0 %v225_v22  ;;  %v4381_v18 = vpack.c.bf16 %v737_v16, %v733_v15  ;;  %v739_v19 = vld [vmem:[%s5433_s29 + $0x6b8] sm:$0xff]  ;;  %v305_v8 = vld [vmem:[#allocation2 + $0x378] sm:$0xff] }
  0xc5   : > { %2470 = vmatprep.mubr.f32.mxu1 %v225_v22  ;;  %4364 = vmatpush1.bf16.msra.mxu0 %v4363_v23  ;;  %v4513_v22 = vpack.c.bf16 %v739_v19, %v735_v17  ;;  %v4383_v23 = vpack.c.bf16 %v736_v21, %v732_v20  ;;  %v763_v15 = vld [vmem:[%s5433_s29 + $0x778] sm:$0xff]  ;;  %v756_v17 = vld [vmem:[%s5433_s29 + $0x740] sm:$0xff]  ;;  %v309_v19 = vld [vmem:[#allocation2 + $0x398] sm:$0xff] }
  0xc6   : > { %4496 = vmatpush1.bf16.msra.mxu1 %v4495_v24  ;;  %4366 = vmatprep.subr.bf16.mxu0 %v4365_v25  ;;  %v734_v24 = vld [vmem:[%s5433_s29 + $0x690] sm:$0xff] }
  0xc7   : > { %1088 = vmatmul.mubr.f32.gmra.mrb[12].mxu0 %v224_v33  ;;  %4498 = vmatprep.subr.bf16.mxu1 %v4497_v29  ;;  %v738_v25 = vld [vmem:[%s5433_s29 + $0x6b0] sm:$0xff] }
  0xc8   : > { %2471 = vmatmul.mubr.f32.gmra.mrb[12].mxu1 %v224_v33  ;;  %1093 = vmatprep.mubr.f32.mxu0 %v230_v36  ;;  %v4515_v26 = vpack.c.bf16 %v738_v25, %v734_v24  ;;  %v254_v29 = vld [vmem:[#allocation2 + $0x1e0] sm:$0xff]  ;;  %v264_v33 = vld [vmem:[#allocation2 + $0x230] sm:$0xff] }
  0xc9   : > { %2476 = vmatprep.mubr.f32.mxu1 %v230_v36  ;;  %4368 = vmatpush1.bf16.msra.mxu0 %v4367_v37  ;;  %v743_v36 = vld [vmem:[%s5433_s29 + $0x6d8] sm:$0xff]  ;;  %v270_v37 = vld [vmem:[#allocation2 + $0x260] sm:$0xff] }
  0xca   : > { %4500 = vmatpush1.bf16.msra.mxu1 %v4499_v38  ;;  %4370 = vmatprep.subr.bf16.mxu0 %v4369_v39  ;;  %v4385_v38 = vpack.c.bf16 %v745_v35, %v741_v34  ;;  %v747_v39 = vld [vmem:[%s5433_s29 + $0x6f8] sm:$0xff]  ;;  %v758_v21 = vld [vmem:[%s5433_s29 + $0x750] sm:$0xff] }
  0xcb   : > { %1094 = vmatmul.mubr.f32.gmra.mrb[14].mxu0 %v229_v47  ;;  %4502 = vmatprep.subr.bf16.mxu1 %v4501_v43  ;;  %v4517_v41 = vpack.c.bf16 %v747_v39, %v743_v36  ;;  %v742_v43 = vld [vmem:[%s5433_s29 + $0x6d0] sm:$0xff]  ;;  %v767_v34 = vld [vmem:[%s5433_s29 + $0x798] sm:$0xff]  ;;  %v329_v39 = vld [vmem:[#allocation2 + $0x438] sm:$0xff] }
  0xcc   : > { %2477 = vmatmul.mubr.f32.gmra.mrb[14].mxu1 %v229_v47  ;;  %1099 = vmatprep.mubr.f32.mxu0 %v235_v50  ;;  %v4519_v46 = vpack.c.bf16 %v746_v44, %v742_v43  ;;  %v269_v47 = vld [vmem:[#allocation2 + $0x258] sm:$0xff]  ;;  %v314_v25 = vld [vmem:[#allocation2 + $0x3c0] sm:$0xff]  ;;  %v771_v35 = vld [vmem:[%s5433_s29 + $0x7b8] sm:$0xff] }
  0xcd   : > { %2482 = vmatprep.mubr.f32.mxu1 %v235_v50  ;;  %4372 = vmatpush1.bf16.msra.mxu0 %v4371_v51  ;;  %v280_v50 = vld [vmem:[#allocation2 + $0x2b0] sm:$0xff]  ;;  %v279_v51 = vld [vmem:[#allocation2 + $0x2a8] sm:$0xff]  ;;  %v4529_v36 = vpack.c.bf16 %v771_v35, %v767_v34  ;;  %v425_v34 = vld [vmem:[#allocation2 + $0x738] sm:$0xff] }
  0xce   : > { %4504 = vmatpush1.bf16.msra.mxu1 %v4503_v52  ;;  %4374 = vmatprep.subr.bf16.mxu0 %v4373_v53  ;;  %v285_v52 = vld [vmem:[#allocation2 + $0x2d8] sm:$0xff]  ;;  %v284_v53 = vld [vmem:[#allocation2 + $0x2d0] sm:$0xff]  ;;  %v335_v43 = vld [vmem:[#allocation2 + $0x468] sm:$0xff] }
  0xcf   : > { %1100 = vmatmul.mubr.f32.gmra.mrb[16].mxu0 %v234_v61  ;;  %4506 = vmatprep.subr.bf16.mxu1 %v4505_v57  ;;  %v290_v57 = vld [vmem:[#allocation2 + $0x300] sm:$0xff]  ;;  %v424_v35 = vld [vmem:[#allocation2 + $0x730] sm:$0xff] }
  0xd0   : > { %2483 = vmatmul.mubr.f32.gmra.mrb[16].mxu1 %v234_v61  ;;  %1105 = vmatprep.mubr.f32.mxu0 %v240_v0  ;;  %v4521_v61 = vpack.c.bf16 %v755_v59, %v751_v56  ;;  %v775_v56 = vld [vmem:[%s5433_s29 + $0x7d8] sm:$0xff] }
  0xd1   : > { %2488 = vmatprep.mubr.f32.mxu1 %v240_v0  ;;  %4376 = vmatpush1.bf16.msra.mxu0 %v4375_v1  ;;  %v754_v0 = vld [vmem:[%s5433_s29 + $0x730] sm:$0xff]  ;;  %v4391_v1 = vpack.c.bf16 %v752_v62, %v748_v60  ;;  %v776_v60 = vld [vmem:[%s5433_s29 + $0x7e0] sm:$0xff] }
  0xd2   : > { %4508 = vmatpush1.bf16.msra.mxu1 %v4507_v2  ;;  %4378 = vmatprep.subr.bf16.mxu0 %v4377_v3  ;;  %v4523_v2 = vpack.c.bf16 %v754_v0, %v750_v63  ;;  %v289_v3 = vld [vmem:[#allocation2 + $0x2f8] sm:$0xff]  ;;  %v778_v62 = vld [vmem:[%s5433_s29 + $0x7f0] sm:$0xff] }
  0xd3   : > { %1106 = vmatmul.mubr.f32.gmra.mrb[18].mxu0 %v239_v9  ;;  %4510 = vmatprep.subr.bf16.mxu1 %v4509_v6  ;;  %v300_v6 = vld [vmem:[#allocation2 + $0x350] sm:$0xff] }
  0xd4   : > { %2489 = vmatmul.mubr.f32.gmra.mrb[18].mxu1 %v239_v9  ;;  %1111 = vmatprep.mubr.f32.mxu0 %v245_v10  ;;  %v304_v9 = vld [vmem:[#allocation2 + $0x370] sm:$0xff] }
  0xd5   : > { %2494 = vmatprep.mubr.f32.mxu1 %v245_v10  ;;  %4380 = vmatpush1.bf16.msra.mxu0 %v4379_v11  ;;  %v757_v10 = vld [vmem:[%s5433_s29 + $0x748] sm:$0xff] }
  0xd6   : > { %4512 = vmatpush1.bf16.msra.mxu1 %v4511_v12  ;;  %4382 = vmatprep.subr.bf16.mxu0 %v4381_v18  ;;  %v761_v11 = vld [vmem:[%s5433_s29 + $0x768] sm:$0xff]  ;;  %v310_v12 = vld [vmem:[#allocation2 + $0x3a0] sm:$0xff]  ;;  %v760_v18 = vld [vmem:[%s5433_s29 + $0x760] sm:$0xff] }
  0xd7   : > { %1112 = vmatmul.mubr.f32.gmra.mrb[20].mxu0 %v244_v13  ;;  %4514 = vmatprep.subr.bf16.mxu1 %v4513_v22  ;;  %v4395_v20 = vpack.c.bf16 %v760_v18, %v756_v17  ;;  %v762_v22 = vld [vmem:[%s5433_s29 + $0x770] sm:$0xff]  ;;  %v379_v17 = vld [vmem:[#allocation2 + $0x5c8] sm:$0xff]  ;;  %v385_v18 = vld [vmem:[#allocation2 + $0x5f8] sm:$0xff] }
  0xd8   : > { %2495 = vmatmul.mubr.f32.gmra.mrb[20].mxu1 %v244_v13  ;;  %1117 = vmatprep.mubr.f32.mxu0 %v250_v14  ;;  %v4393_v13 = vpack.c.bf16 %v761_v11, %v757_v10  ;;  %v4527_v24 = vpack.c.bf16 %v762_v22, %v758_v21  ;;  %v783_v11 = vld [vmem:[%s5433_s29 + $0x818] sm:$0xff]  ;;  %v389_v21 = vld [vmem:[#allocation2 + $0x618] sm:$0xff] }
  0xd9   : > { %2500 = vmatprep.mubr.f32.mxu1 %v250_v14  ;;  %4384 = vmatpush1.bf16.msra.mxu0 %v4383_v23  ;;  %v759_v14 = vld [vmem:[%s5433_s29 + $0x758] sm:$0xff] }
  0xda   : > { %4516 = vmatpush1.bf16.msra.mxu1 %v4515_v26  ;;  %4386 = vmatprep.subr.bf16.mxu0 %v4385_v38  ;;  %v4525_v16 = vpack.c.bf16 %v763_v15, %v759_v14  ;;  %v315_v23 = vld [vmem:[#allocation2 + $0x3c8] sm:$0xff]  ;;  %v320_v26 = vld [vmem:[#allocation2 + $0x3f0] sm:$0xff]  ;;  %v374_v15 = vld [vmem:[#allocation2 + $0x5a0] sm:$0xff] }
  0xdb   : > { %1118 = vmatmul.mubr.f32.gmra.mrb[22].mxu0 %v249_v27  ;;  %4518 = vmatprep.subr.bf16.mxu1 %v4517_v41  ;;  %v768_v38 = vld [vmem:[%s5433_s29 + $0x7a0] sm:$0xff]  ;;  %v766_v41 = vld [vmem:[%s5433_s29 + $0x790] sm:$0xff]  ;;  %v395_v22 = vld [vmem:[#allocation2 + $0x648] sm:$0xff] }
  0xdc   : > { %2501 = vmatmul.mubr.f32.gmra.mrb[22].mxu1 %v249_v27  ;;  %1123 = vmatprep.mubr.f32.mxu0 %v255_v28  ;;  %v319_v27 = vld [vmem:[#allocation2 + $0x3e8] sm:$0xff]  ;;  %v4531_v44 = vpack.c.bf16 %v770_v42, %v766_v41  ;;  %v445_v42 = vld [vmem:[#allocation2 + $0x7d8] sm:$0xff] }
  0xdd   : > { %2506 = vmatprep.mubr.f32.mxu1 %v255_v28  ;;  %4388 = vmatpush1.bf16.msra.mxu0 %v4387_v45  ;;  %v325_v28 = vld [vmem:[#allocation2 + $0x418] sm:$0xff]  ;;  %v334_v45 = vld [vmem:[#allocation2 + $0x460] sm:$0xff]  ;;  %v439_v41 = vld [vmem:[#allocation2 + $0x7a8] sm:$0xff] }
  0xde   : > { %4520 = vmatpush1.bf16.msra.mxu1 %v4519_v46  ;;  %4390 = vmatprep.subr.bf16.mxu0 %v4389_v58  ;;  %v340_v46 = vld [vmem:[#allocation2 + $0x490] sm:$0xff] }
  0xdf   : > { %1124 = vmatmul.mubr.f32.gmra.mrb[24].mxu0 %v254_v29  ;;  %4522 = vmatprep.subr.bf16.mxu1 %v4521_v61  ;;  %v772_v58 = vld [vmem:[%s5433_s29 + $0x7c0] sm:$0xff]  ;;  %v774_v61 = vld [vmem:[%s5433_s29 + $0x7d0] sm:$0xff] }
  0xe0   : > { %2507 = vmatmul.mubr.f32.gmra.mrb[24].mxu1 %v254_v29  ;;  %1129 = vmatprep.mubr.f32.mxu0 %v260_v30  ;;  %v324_v29 = vld [vmem:[#allocation2 + $0x410] sm:$0xff]  ;;  %v4403_v63 = vpack.c.bf16 %v776_v60, %v772_v58  ;;  %v4535_v0 = vpack.c.bf16 %v778_v62, %v774_v61  ;;  %v485_v58 = vld [vmem:[#allocation2 + $0x918] sm:$0xff]  ;;  %v490_v60 = vld [vmem:[#allocation2 + $0x940] sm:$0xff] }
  0xe1   : > { %2512 = vmatprep.mubr.f32.mxu1 %v260_v30  ;;  %4392 = vmatpush1.bf16.msra.mxu0 %v4391_v1  ;;  %v765_v30 = vld [vmem:[%s5433_s29 + $0x788] sm:$0xff]  ;;  %v354_v1 = vld [vmem:[#allocation2 + $0x500] sm:$0xff]  ;;  %v495_v62 = vld [vmem:[#allocation2 + $0x968] sm:$0xff] }
  0xe2   : > { %4524 = vmatpush1.bf16.msra.mxu1 %v4523_v2  ;;  %4394 = vmatprep.subr.bf16.mxu0 %v4393_v13  ;;  %v360_v2 = vld [vmem:[#allocation2 + $0x530] sm:$0xff]  ;;  %v375_v13 = vld [vmem:[#allocation2 + $0x5a8] sm:$0xff]  ;;  %v489_v61 = vld [vmem:[#allocation2 + $0x938] sm:$0xff] }
  0xe3   : > { %1130 = vmatmul.mubr.f32.gmra.mrb[26].mxu0 %v259_v31  ;;  %4526 = vmatprep.subr.bf16.mxu1 %v4525_v16  ;;  %v380_v16 = vld [vmem:[#allocation2 + $0x5d0] sm:$0xff] }
  0xe4   : > { %2513 = vmatmul.mubr.f32.gmra.mrb[26].mxu1 %v259_v31  ;;  %1135 = vmatprep.mubr.f32.mxu0 %v265_v32  ;;  %v769_v31 = vld [vmem:[%s5433_s29 + $0x7a8] sm:$0xff] }
  0xe5   : > { %2518 = vmatprep.mubr.f32.mxu1 %v265_v32  ;;  %4396 = vmatpush1.bf16.msra.mxu0 %v4395_v20  ;;  %v330_v32 = vld [vmem:[#allocation2 + $0x440] sm:$0xff] }
  0xe6   : > { %4528 = vmatpush1.bf16.msra.mxu1 %v4527_v24  ;;  %v390_v20 = vld [vmem:[#allocation2 + $0x620] sm:$0xff]  ;;  %v400_v24 = vld [vmem:[#allocation2 + $0x670] sm:$0xff] }
  0xe7   : > { %1136 = vmatmul.mubr.f32.gmra.mrb[28].mxu0 %v264_v33  ;;  %4530 = vmatprep.subr.bf16.mxu1 %v4529_v36  ;;  %v430_v36 = vld [vmem:[#allocation2 + $0x760] sm:$0xff] }
  0xe8   : > { %2519 = vmatmul.mubr.f32.gmra.mrb[28].mxu1 %v264_v33  ;;  %1141 = vmatprep.mubr.f32.mxu0 %v270_v37  ;;  %v4397_v33 = vpack.c.bf16 %v769_v31, %v765_v30  ;;  %v415_v30 = vld [vmem:[#allocation2 + $0x6e8] sm:$0xff]  ;;  %v414_v31 = vld [vmem:[#allocation2 + $0x6e0] sm:$0xff] }
  0xe9   : > { %2524 = vmatprep.mubr.f32.mxu1 %v270_v37  ;;  %v764_v37 = vld [vmem:[%s5433_s29 + $0x780] sm:$0xff] }
  0xea   : > { %4398 = vmatprep.subr.bf16.mxu0 %v4397_v33  ;;  %v4399_v40 = vpack.c.bf16 %v768_v38, %v764_v37  ;;  %4532 = vmatpush1.bf16.msra.mxu1 %v4531_v44  ;;  %v419_v33 = vld [vmem:[#allocation2 + $0x708] sm:$0xff]  ;;  %v429_v37 = vld [vmem:[#allocation2 + $0x758] sm:$0xff]  ;;  %v450_v44 = vld [vmem:[#allocation2 + $0x800] sm:$0xff] }
  0xeb   : > { %1142 = vmatmul.mubr.f32.gmra.mrb[30].mxu0 %v269_v47  ;;  %v435_v38 = vld [vmem:[#allocation2 + $0x788] sm:$0xff] }
  0xec   : > { %2525 = vmatmul.mubr.f32.gmra.mrb[30].mxu1 %v269_v47  ;;  %1147 = vmatprep.mubr.f32.mxu0 %v275_v48  ;;  %v339_v47 = vld [vmem:[#allocation2 + $0x488] sm:$0xff] }
  0xed   : > { %2530 = vmatprep.mubr.f32.mxu1 %v275_v48  ;;  %4400 = vmatpush1.bf16.msra.mxu0 %v4399_v40  ;;  %v345_v48 = vld [vmem:[#allocation2 + $0x4b8] sm:$0xff]  ;;  %v440_v40 = vld [vmem:[#allocation2 + $0x7b0] sm:$0xff] }
  0xef   : > { %1148 = vmatmul.mubr.f32.gmra.mrb[32].mxu0 %v274_v49 }
  0xf0   : > { %2531 = vmatmul.mubr.f32.gmra.mrb[32].mxu1 %v274_v49  ;;  %1153 = vmatprep.mubr.f32.mxu0 %v280_v50  ;;  %v344_v49 = vld [vmem:[#allocation2 + $0x4b0] sm:$0xff] }
  0xf1   : > { %2536 = vmatprep.mubr.f32.mxu1 %v280_v50  ;;  %v350_v50 = vld [vmem:[#allocation2 + $0x4e0] sm:$0xff] }
  0xf3   : > { %1154 = vmatmul.mubr.f32.gmra.mrb[34].mxu0 %v279_v51 }
  0xf4   : > { %2537 = vmatmul.mubr.f32.gmra.mrb[34].mxu1 %v279_v51  ;;  %1159 = vmatprep.mubr.f32.mxu0 %v285_v52  ;;  %v349_v51 = vld [vmem:[#allocation2 + $0x4d8] sm:$0xff] }
  0xf5   : > { %2542 = vmatprep.mubr.f32.mxu1 %v285_v52  ;;  %v355_v52 = vld [vmem:[#allocation2 + $0x508] sm:$0xff] }
  0xf7   : > { %1160 = vmatmul.mubr.f32.gmra.mrb[36].mxu0 %v284_v53 }
  0xf8   : > { %2543 = vmatmul.mubr.f32.gmra.mrb[36].mxu1 %v284_v53  ;;  %1165 = vmatprep.mubr.f32.mxu0 %v290_v57  ;;  %v773_v53 = vld [vmem:[%s5433_s29 + $0x7c8] sm:$0xff] }
  0xf9   : > { %2548 = vmatprep.mubr.f32.mxu1 %v290_v57  ;;  %v4401_v55 = vpack.c.bf16 %v777_v54, %v773_v53  ;;  %v779_v57 = vld [vmem:[%s5433_s29 + $0x7f8] sm:$0xff]  ;;  %v469_v53 = vld [vmem:[#allocation2 + $0x898] sm:$0xff] }
  0xfa   : > { %v4533_v59 = vpack.c.bf16 %v779_v57, %v775_v56  ;;  %v475_v54 = vld [vmem:[#allocation2 + $0x8c8] sm:$0xff]  ;;  %v480_v56 = vld [vmem:[#allocation2 + $0x8f0] sm:$0xff] }
  0xfb   : > { %1166 = vmatmul.mubr.f32.gmra.mrb[38].mxu0 %v289_v3  ;;  %4402 = vmatprep.subr.bf16.mxu0 %v4401_v55  ;;  %v474_v55 = vld [vmem:[#allocation2 + $0x8c0] sm:$0xff]  ;;  %v479_v57 = vld [vmem:[#allocation2 + $0x8e8] sm:$0xff] }
  0xfc   : > { %2549 = vmatmul.mubr.f32.gmra.mrb[38].mxu1 %v289_v3  ;;  %1171 = vmatprep.mubr.f32.mxu0 %v295_v4  ;;  %v359_v3 = vld [vmem:[#allocation2 + $0x528] sm:$0xff] }
  0xfd   : > { %2554 = vmatprep.mubr.f32.mxu1 %v295_v4  ;;  %4534 = vmatprep.subr.bf16.mxu1 %v4533_v59  ;;  %v365_v4 = vld [vmem:[#allocation2 + $0x558] sm:$0xff]  ;;  %v484_v59 = vld [vmem:[#allocation2 + $0x910] sm:$0xff] }
  0xfe   : > { %4404 = vmatpush1.bf16.msra.mxu0 %v4403_v63  ;;  %4536 = vmatpush1.bf16.msra.mxu1 %v4535_v0  ;;  %v494_v63 = vld [vmem:[#allocation2 + $0x960] sm:$0xff]  ;;  %v500_v0 = vld [vmem:[#allocation2 + $0x990] sm:$0xff] }
  0xff   : > { %1172 = vmatmul.mubr.f32.gmra.mrb[40].mxu0 %v294_v5 }
 0x100   : > { %2555 = vmatmul.mubr.f32.gmra.mrb[40].mxu1 %v294_v5  ;;  %1177 = vmatprep.mubr.f32.mxu0 %v300_v6  ;;  %v364_v5 = vld [vmem:[#allocation2 + $0x550] sm:$0xff] }
 0x101   : > { %2560 = vmatprep.mubr.f32.mxu1 %v300_v6  ;;  %v370_v6 = vld [vmem:[#allocation2 + $0x580] sm:$0xff] }
 0x103   : > { %1178 = vmatmul.mubr.f32.gmra.mrb[42].mxu0 %v299_v7 }
 0x104   : > { %2561 = vmatmul.mubr.f32.gmra.mrb[42].mxu1 %v299_v7  ;;  %1183 = vmatprep.mubr.f32.mxu0 %v305_v8  ;;  %v781_v7 = vld [vmem:[%s5433_s29 + $0x808] sm:$0xff] }
 0x105   : > { %2566 = vmatprep.mubr.f32.mxu1 %v305_v8  ;;  %v785_v8 = vld [vmem:[%s5433_s29 + $0x828] sm:$0xff] }
 0x106   : > { %v4405_v10 = vpack.c.bf16 %v785_v8, %v781_v7  ;;  %v514_v7 = vld [vmem:[#allocation2 + $0xa00] sm:$0xff]  ;;  %v520_v8 = vld [vmem:[#allocation2 + $0xa30] sm:$0xff] }
 0x107   : > { %1184 = vmatmul.mubr.f32.gmra.mrb[44].mxu0 %v304_v9 }
 0x108   : > { %2567 = vmatmul.mubr.f32.gmra.mrb[44].mxu1 %v304_v9  ;;  %1189 = vmatprep.mubr.f32.mxu0 %v310_v12  ;;  %v369_v9 = vld [vmem:[#allocation2 + $0x578] sm:$0xff] }
 0x109   : > { %2572 = vmatprep.mubr.f32.mxu1 %v310_v12  ;;  %v787_v12 = vld [vmem:[%s5433_s29 + $0x838] sm:$0xff]  ;;  %4406 = vmatprep.subr.bf16.mxu0 %v4405_v10  ;;  %v197_v10 = vld [vmem:[#allocation2 + $0x18] sm:$0xff] }
 0x10a   : > { %v4537_v14 = vpack.c.bf16 %v787_v12, %v783_v11  ;;  %v780_v11 = vld [vmem:[%s5433_s29 + $0x800] sm:$0xff] }
 0x10b   : > { %1190 = vmatmul.mubr.f32.gmra.mrb[46].mxu0 %v309_v19  ;;  %v784_v12 = vld [vmem:[%s5433_s29 + $0x820] sm:$0xff] }
 0x10c   : > { %2573 = vmatmul.mubr.f32.gmra.mrb[46].mxu1 %v309_v19  ;;  %1195 = vmatprep.mubr.f32.mxu0 %v315_v23  ;;  %v384_v19 = vld [vmem:[#allocation2 + $0x5f0] sm:$0xff] }
 0x10d   : > { %2578 = vmatprep.mubr.f32.mxu1 %v315_v23  ;;  %4538 = vmatprep.subr.bf16.mxu1 %v4537_v14  ;;  %v394_v23 = vld [vmem:[#allocation2 + $0x640] sm:$0xff] }
 0x10e   : > { %v786_v14 = vld [vmem:[%s5433_s29 + $0x830] sm:$0xff] }
 0x10f   : > { %1196 = vmatmul.mubr.f32.gmra.mrb[48].mxu0 %v314_v25 }
 0x110   : > { %2579 = vmatmul.mubr.f32.gmra.mrb[48].mxu1 %v314_v25  ;;  %1201 = vmatprep.mubr.f32.mxu0 %v320_v26  ;;  %v399_v25 = vld [vmem:[#allocation2 + $0x668] sm:$0xff] }
 0x111   : > { %2584 = vmatprep.mubr.f32.mxu1 %v320_v26  ;;  %v405_v26 = vld [vmem:[#allocation2 + $0x698] sm:$0xff] }
 0x113   : > { %1202 = vmatmul.mubr.f32.gmra.mrb[50].mxu0 %v319_v27 }
 0x114   : > { %2585 = vmatmul.mubr.f32.gmra.mrb[50].mxu1 %v319_v27  ;;  %1207 = vmatprep.mubr.f32.mxu0 %v325_v28  ;;  %v404_v27 = vld [vmem:[#allocation2 + $0x690] sm:$0xff] }
 0x115   : > { %2590 = vmatprep.mubr.f32.mxu1 %v325_v28  ;;  %v410_v28 = vld [vmem:[#allocation2 + $0x6c0] sm:$0xff] }
 0x117   : > { %1208 = vmatmul.mubr.f32.gmra.mrb[52].mxu0 %v324_v29 }
 0x118   : > { %2591 = vmatmul.mubr.f32.gmra.mrb[52].mxu1 %v324_v29  ;;  %1213 = vmatprep.mubr.f32.mxu0 %v330_v32  ;;  %v409_v29 = vld [vmem:[#allocation2 + $0x6b8] sm:$0xff] }
 0x119   : > { %2596 = vmatprep.mubr.f32.mxu1 %v330_v32  ;;  %v420_v32 = vld [vmem:[#allocation2 + $0x710] sm:$0xff] }
 0x11b   : > { %1214 = vmatmul.mubr.f32.gmra.mrb[54].mxu0 %v329_v39 }
 0x11c   : > { %2597 = vmatmul.mubr.f32.gmra.mrb[54].mxu1 %v329_v39  ;;  %1219 = vmatprep.mubr.f32.mxu0 %v335_v43  ;;  %v434_v39 = vld [vmem:[#allocation2 + $0x780] sm:$0xff] }
 0x11d   : > { %2602 = vmatprep.mubr.f32.mxu1 %v335_v43  ;;  %v444_v43 = vld [vmem:[#allocation2 + $0x7d0] sm:$0xff] }
 0x11f   : > { %1220 = vmatmul.mubr.f32.gmra.mrb[56].mxu0 %v334_v45 }
 0x120   : > { %2603 = vmatmul.mubr.f32.gmra.mrb[56].mxu1 %v334_v45  ;;  %1225 = vmatprep.mubr.f32.mxu0 %v340_v46  ;;  %v449_v45 = vld [vmem:[#allocation2 + $0x7f8] sm:$0xff] }
 0x121   : > { %2608 = vmatprep.mubr.f32.mxu1 %v340_v46  ;;  %v455_v46 = vld [vmem:[#allocation2 + $0x828] sm:$0xff] }
 0x123   : > { %1226 = vmatmul.mubr.f32.gmra.mrb[58].mxu0 %v339_v47 }
 0x124   : > { %2609 = vmatmul.mubr.f32.gmra.mrb[58].mxu1 %v339_v47  ;;  %1231 = vmatprep.mubr.f32.mxu0 %v345_v48  ;;  %v454_v47 = vld [vmem:[#allocation2 + $0x820] sm:$0xff] }
 0x125   : > { %2614 = vmatprep.mubr.f32.mxu1 %v345_v48  ;;  %v460_v48 = vld [vmem:[#allocation2 + $0x850] sm:$0xff] }
 0x127   : > { %1232 = vmatmul.mubr.f32.gmra.mrb[60].mxu0 %v344_v49 }
 0x128   : > { %2615 = vmatmul.mubr.f32.gmra.mrb[60].mxu1 %v344_v49  ;;  %1237 = vmatprep.mubr.f32.mxu0 %v350_v50  ;;  %v459_v49 = vld [vmem:[#allocation2 + $0x848] sm:$0xff] }
 0x129   : > { %2620 = vmatprep.mubr.f32.mxu1 %v350_v50  ;;  %v465_v50 = vld [vmem:[#allocation2 + $0x878] sm:$0xff] }
 0x12b   : > { %1238 = vmatmul.mubr.f32.gmra.mrb[62].mxu0 %v349_v51 }
 0x12c   : > { %2621 = vmatmul.mubr.f32.gmra.mrb[62].mxu1 %v349_v51  ;;  %1243 = vmatprep.mubr.f32.mxu0 %v355_v52  ;;  %v464_v51 = vld [vmem:[#allocation2 + $0x870] sm:$0xff] }
 0x12d   : > { %2626 = vmatprep.mubr.f32.mxu1 %v355_v52  ;;  %v470_v52 = vld [vmem:[#allocation2 + $0x8a0] sm:$0xff] }
 0x12f   : > { %1244 = vmatmul.mubr.f32.gmra.mrb[64].mxu0 %v354_v1 }
 0x130   : > { %2627 = vmatmul.mubr.f32.gmra.mrb[64].mxu1 %v354_v1  ;;  %1249 = vmatprep.mubr.f32.mxu0 %v360_v2  ;;  %v499_v1 = vld [vmem:[#allocation2 + $0x988] sm:$0xff] }
 0x131   : > { %2632 = vmatprep.mubr.f32.mxu1 %v360_v2  ;;  %v505_v2 = vld [vmem:[#allocation2 + $0x9b8] sm:$0xff] }
 0x133   : > { %1250 = vmatmul.mubr.f32.gmra.mrb[66].mxu0 %v359_v3 }
 0x134   : > { %2633 = vmatmul.mubr.f32.gmra.mrb[66].mxu1 %v359_v3  ;;  %1255 = vmatprep.mubr.f32.mxu0 %v365_v4  ;;  %v504_v3 = vld [vmem:[#allocation2 + $0x9b0] sm:$0xff] }
 0x135   : > { %2638 = vmatprep.mubr.f32.mxu1 %v365_v4  ;;  %v510_v4 = vld [vmem:[#allocation2 + $0x9e0] sm:$0xff] }
 0x137   : > { %1256 = vmatmul.mubr.f32.gmra.mrb[68].mxu0 %v364_v5 }
 0x138   : > { %2639 = vmatmul.mubr.f32.gmra.mrb[68].mxu1 %v364_v5  ;;  %1261 = vmatprep.mubr.f32.mxu0 %v370_v6  ;;  %v509_v5 = vld [vmem:[#allocation2 + $0x9d8] sm:$0xff] }
 0x139   : > { %2644 = vmatprep.mubr.f32.mxu1 %v370_v6  ;;  %v515_v6 = vld [vmem:[#allocation2 + $0xa08] sm:$0xff] }
 0x13b   : > { %1262 = vmatmul.mubr.f32.gmra.mrb[70].mxu0 %v369_v9 }
 0x13c   : > { %2645 = vmatmul.mubr.f32.gmra.mrb[70].mxu1 %v369_v9  ;;  %1267 = vmatprep.mubr.f32.mxu0 %v375_v13  ;;  %v519_v9 = vld [vmem:[#allocation2 + $0xa28] sm:$0xff] }
 0x13d   : > { %2650 = vmatprep.mubr.f32.mxu1 %v375_v13  ;;  %v782_v13 = vld [vmem:[%s5433_s29 + $0x810] sm:$0xff] }
 0x13f   : > { %1268 = vmatmul.mubr.f32.gmra.mrb[72].mxu0 %v374_v15 }
 0x140   : > { %2651 = vmatmul.mubr.f32.gmra.mrb[72].mxu1 %v374_v15  ;;  %1273 = vmatprep.mubr.f32.mxu0 %v380_v16  ;;  %v196_v15 = vld [vmem:[#allocation2 + $0x10] sm:$0xff] }
 0x141   : > { %2656 = vmatprep.mubr.f32.mxu1 %v380_v16  ;;  %v4407_v16 = vpack.c.bf16 %v784_v12, %v780_v11  ;;  %v341_v11 = vld [vmem:[#allocation2 + $0x498] sm:$0xff]  ;;  %v347_v12 = vld [vmem:[#allocation2 + $0x4c8] sm:$0xff] }
 0x143   : > { %1274 = vmatmul.mubr.f32.gmra.mrb[74].mxu0 %v379_v17 }
 0x144   : > { %2657 = vmatmul.mubr.f32.gmra.mrb[74].mxu1 %v379_v17  ;;  %1279 = vmatprep.mubr.f32.mxu0 %v385_v18  ;;  %v4539_v17 = vpack.c.bf16 %v786_v14, %v782_v13  ;;  %v346_v13 = vld [vmem:[#allocation2 + $0x4c0] sm:$0xff]  ;;  %v352_v14 = vld [vmem:[#allocation2 + $0x4f0] sm:$0xff] }
 0x145   : > { %2662 = vmatprep.mubr.f32.mxu1 %v385_v18  ;;  %v202_v18 = vld [vmem:[#allocation2 + $0x40] sm:$0xff] }
 0x147   : > { %1280 = vmatmul.mubr.f32.gmra.mrb[76].mxu0 %v384_v19 }
 0x148   : > { %2663 = vmatmul.mubr.f32.gmra.mrb[76].mxu1 %v384_v19  ;;  %1285 = vmatprep.mubr.f32.mxu0 %v390_v20  ;;  %v201_v19 = vld [vmem:[#allocation2 + $0x38] sm:$0xff] }
 0x149   : > { %2668 = vmatprep.mubr.f32.mxu1 %v390_v20  ;;  %v207_v20 = vld [vmem:[#allocation2 + $0x68] sm:$0xff] }
 0x14b   : > { %1286 = vmatmul.mubr.f32.gmra.mrb[78].mxu0 %v389_v21 }
 0x14c   : > { %2669 = vmatmul.mubr.f32.gmra.mrb[78].mxu1 %v389_v21  ;;  %1291 = vmatprep.mubr.f32.mxu0 %v395_v22  ;;  %v206_v21 = vld [vmem:[#allocation2 + $0x60] sm:$0xff] }
 0x14d   : > { %2674 = vmatprep.mubr.f32.mxu1 %v395_v22  ;;  %v212_v22 = vld [vmem:[#allocation2 + $0x90] sm:$0xff] }
 0x14f   : > { %1292 = vmatmul.mubr.f32.gmra.mrb[80].mxu0 %v394_v23 }
 0x150   : > { %2675 = vmatmul.mubr.f32.gmra.mrb[80].mxu1 %v394_v23  ;;  %1297 = vmatprep.mubr.f32.mxu0 %v400_v24  ;;  %v211_v23 = vld [vmem:[#allocation2 + $0x88] sm:$0xff] }
 0x151   : > { %2680 = vmatprep.mubr.f32.mxu1 %v400_v24  ;;  %v217_v24 = vld [vmem:[#allocation2 + $0xb8] sm:$0xff] }
 0x153   : > { %1298 = vmatmul.mubr.f32.gmra.mrb[82].mxu0 %v399_v25 }
 0x154   : > { %2681 = vmatmul.mubr.f32.gmra.mrb[82].mxu1 %v399_v25  ;;  %1303 = vmatprep.mubr.f32.mxu0 %v405_v26  ;;  %v216_v25 = vld [vmem:[#allocation2 + $0xb0] sm:$0xff] }
 0x155   : > { %2686 = vmatprep.mubr.f32.mxu1 %v405_v26  ;;  %v222_v26 = vld [vmem:[#allocation2 + $0xe0] sm:$0xff] }
 0x157   : > { %1304 = vmatmul.mubr.f32.gmra.mrb[84].mxu0 %v404_v27 }
 0x158   : > { %2687 = vmatmul.mubr.f32.gmra.mrb[84].mxu1 %v404_v27  ;;  %1309 = vmatprep.mubr.f32.mxu0 %v410_v28  ;;  %v221_v27 = vld [vmem:[#allocation2 + $0xd8] sm:$0xff] }
 0x159   : > { %2692 = vmatprep.mubr.f32.mxu1 %v410_v28  ;;  %v227_v28 = vld [vmem:[#allocation2 + $0x108] sm:$0xff] }
 0x15b   : > { %1310 = vmatmul.mubr.f32.gmra.mrb[86].mxu0 %v409_v29 }
 0x15c   : > { %2693 = vmatmul.mubr.f32.gmra.mrb[86].mxu1 %v409_v29  ;;  %1315 = vmatprep.mubr.f32.mxu0 %v415_v30  ;;  %v226_v29 = vld [vmem:[#allocation2 + $0x100] sm:$0xff] }
 0x15d   : > { %2698 = vmatprep.mubr.f32.mxu1 %v415_v30  ;;  %v232_v30 = vld [vmem:[#allocation2 + $0x130] sm:$0xff] }
 0x15f   : > { %1316 = vmatmul.mubr.f32.gmra.mrb[88].mxu0 %v414_v31 }
 0x160   : > { %2699 = vmatmul.mubr.f32.gmra.mrb[88].mxu1 %v414_v31  ;;  %1321 = vmatprep.mubr.f32.mxu0 %v420_v32  ;;  %v231_v31 = vld [vmem:[#allocation2 + $0x128] sm:$0xff] }
 0x161   : > { %2704 = vmatprep.mubr.f32.mxu1 %v420_v32  ;;  %v237_v32 = vld [vmem:[#allocation2 + $0x158] sm:$0xff] }
 0x163   : > { %1322 = vmatmul.mubr.f32.gmra.mrb[90].mxu0 %v419_v33 }
 0x164   : > { %2705 = vmatmul.mubr.f32.gmra.mrb[90].mxu1 %v419_v33  ;;  %1327 = vmatprep.mubr.f32.mxu0 %v425_v34  ;;  %v236_v33 = vld [vmem:[#allocation2 + $0x150] sm:$0xff] }
 0x165   : > { %2710 = vmatprep.mubr.f32.mxu1 %v425_v34  ;;  %v242_v34 = vld [vmem:[#allocation2 + $0x180] sm:$0xff] }
 0x167   : > { %1328 = vmatmul.mubr.f32.gmra.mrb[92].mxu0 %v424_v35 }
 0x168   : > { %2711 = vmatmul.mubr.f32.gmra.mrb[92].mxu1 %v424_v35  ;;  %1333 = vmatprep.mubr.f32.mxu0 %v430_v36  ;;  %v241_v35 = vld [vmem:[#allocation2 + $0x178] sm:$0xff] }
 0x169   : > { %2716 = vmatprep.mubr.f32.mxu1 %v430_v36  ;;  %v247_v36 = vld [vmem:[#allocation2 + $0x1a8] sm:$0xff] }
 0x16b   : > { %1334 = vmatmul.mubr.f32.gmra.mrb[94].mxu0 %v429_v37 }
 0x16c   : > { %2717 = vmatmul.mubr.f32.gmra.mrb[94].mxu1 %v429_v37  ;;  %1339 = vmatprep.mubr.f32.mxu0 %v435_v38  ;;  %v246_v37 = vld [vmem:[#allocation2 + $0x1a0] sm:$0xff] }
 0x16d   : > { %2722 = vmatprep.mubr.f32.mxu1 %v435_v38  ;;  %v252_v38 = vld [vmem:[#allocation2 + $0x1d0] sm:$0xff] }
 0x16f   : > { %1340 = vmatmul.mubr.f32.gmra.mrb[96].mxu0 %v434_v39 }
 0x170   : > { %2723 = vmatmul.mubr.f32.gmra.mrb[96].mxu1 %v434_v39  ;;  %1345 = vmatprep.mubr.f32.mxu0 %v440_v40  ;;  %v251_v39 = vld [vmem:[#allocation2 + $0x1c8] sm:$0xff] }
 0x171   : > { %2728 = vmatprep.mubr.f32.mxu1 %v440_v40  ;;  %v257_v40 = vld [vmem:[#allocation2 + $0x1f8] sm:$0xff] }
 0x173   : > { %1346 = vmatmul.mubr.f32.gmra.mrb[98].mxu0 %v439_v41 }
 0x174   : > { %2729 = vmatmul.mubr.f32.gmra.mrb[98].mxu1 %v439_v41  ;;  %1351 = vmatprep.mubr.f32.mxu0 %v445_v42  ;;  %v256_v41 = vld [vmem:[#allocation2 + $0x1f0] sm:$0xff] }
 0x175   : > { %2734 = vmatprep.mubr.f32.mxu1 %v445_v42  ;;  %v262_v42 = vld [vmem:[#allocation2 + $0x220] sm:$0xff] }
 0x177   : > { %1352 = vmatmul.mubr.f32.gmra.mrb[100].mxu0 %v444_v43 }
 0x178   : > { %2735 = vmatmul.mubr.f32.gmra.mrb[100].mxu1 %v444_v43  ;;  %1357 = vmatprep.mubr.f32.mxu0 %v450_v44  ;;  %v261_v43 = vld [vmem:[#allocation2 + $0x218] sm:$0xff] }
 0x179   : > { %2740 = vmatprep.mubr.f32.mxu1 %v450_v44  ;;  %v267_v44 = vld [vmem:[#allocation2 + $0x248] sm:$0xff] }
 0x17b   : > { %1358 = vmatmul.mubr.f32.gmra.mrb[102].mxu0 %v449_v45 }
 0x17c   : > { %2741 = vmatmul.mubr.f32.gmra.mrb[102].mxu1 %v449_v45  ;;  %1363 = vmatprep.mubr.f32.mxu0 %v455_v46  ;;  %v266_v45 = vld [vmem:[#allocation2 + $0x240] sm:$0xff] }
 0x17d   : > { %2746 = vmatprep.mubr.f32.mxu1 %v455_v46  ;;  %v272_v46 = vld [vmem:[#allocation2 + $0x270] sm:$0xff] }
 0x17f   : > { %1364 = vmatmul.mubr.f32.gmra.mrb[104].mxu0 %v454_v47 }
 0x180   : > { %2747 = vmatmul.mubr.f32.gmra.mrb[104].mxu1 %v454_v47  ;;  %1369 = vmatprep.mubr.f32.mxu0 %v460_v48  ;;  %v271_v47 = vld [vmem:[#allocation2 + $0x268] sm:$0xff] }
 0x181   : > { %2752 = vmatprep.mubr.f32.mxu1 %v460_v48  ;;  %v277_v48 = vld [vmem:[#allocation2 + $0x298] sm:$0xff] }
 0x183   : > { %1370 = vmatmul.mubr.f32.gmra.mrb[106].mxu0 %v459_v49 }
 0x184   : > { %2753 = vmatmul.mubr.f32.gmra.mrb[106].mxu1 %v459_v49  ;;  %1375 = vmatprep.mubr.f32.mxu0 %v465_v50  ;;  %v276_v49 = vld [vmem:[#allocation2 + $0x290] sm:$0xff] }
 0x185   : > { %2758 = vmatprep.mubr.f32.mxu1 %v465_v50  ;;  %v282_v50 = vld [vmem:[#allocation2 + $0x2c0] sm:$0xff] }
 0x187   : > { %1376 = vmatmul.mubr.f32.gmra.mrb[108].mxu0 %v464_v51 }
 0x188   : > { %2759 = vmatmul.mubr.f32.gmra.mrb[108].mxu1 %v464_v51  ;;  %1381 = vmatprep.mubr.f32.mxu0 %v470_v52  ;;  %v281_v51 = vld [vmem:[#allocation2 + $0x2b8] sm:$0xff] }
 0x189   : > { %2764 = vmatprep.mubr.f32.mxu1 %v470_v52  ;;  %v287_v52 = vld [vmem:[#allocation2 + $0x2e8] sm:$0xff] }
 0x18b   : > { %1382 = vmatmul.mubr.f32.gmra.mrb[110].mxu0 %v469_v53 }
 0x18c   : > { %2765 = vmatmul.mubr.f32.gmra.mrb[110].mxu1 %v469_v53  ;;  %1387 = vmatprep.mubr.f32.mxu0 %v475_v54  ;;  %v286_v53 = vld [vmem:[#allocation2 + $0x2e0] sm:$0xff] }
 0x18d   : > { %2770 = vmatprep.mubr.f32.mxu1 %v475_v54  ;;  %v292_v54 = vld [vmem:[#allocation2 + $0x310] sm:$0xff] }
 0x18f   : > { %1388 = vmatmul.mubr.f32.gmra.mrb[112].mxu0 %v474_v55 }
 0x190   : > { %2771 = vmatmul.mubr.f32.gmra.mrb[112].mxu1 %v474_v55  ;;  %1393 = vmatprep.mubr.f32.mxu0 %v480_v56  ;;  %v291_v55 = vld [vmem:[#allocation2 + $0x308] sm:$0xff] }
 0x191   : > { %2776 = vmatprep.mubr.f32.mxu1 %v480_v56  ;;  %v297_v56 = vld [vmem:[#allocation2 + $0x338] sm:$0xff] }
 0x193   : > { %1394 = vmatmul.mubr.f32.gmra.mrb[114].mxu0 %v479_v57 }
 0x194   : > { %2777 = vmatmul.mubr.f32.gmra.mrb[114].mxu1 %v479_v57  ;;  %1399 = vmatprep.mubr.f32.mxu0 %v485_v58  ;;  %v296_v57 = vld [vmem:[#allocation2 + $0x330] sm:$0xff] }
 0x195   : > { %2782 = vmatprep.mubr.f32.mxu1 %v485_v58  ;;  %v302_v58 = vld [vmem:[#allocation2 + $0x360] sm:$0xff] }
 0x197   : > { %1400 = vmatmul.mubr.f32.gmra.mrb[116].mxu0 %v484_v59 }
 0x198   : > { %2783 = vmatmul.mubr.f32.gmra.mrb[116].mxu1 %v484_v59  ;;  %1405 = vmatprep.mubr.f32.mxu0 %v490_v60  ;;  %v301_v59 = vld [vmem:[#allocation2 + $0x358] sm:$0xff] }
 0x199   : > { %2788 = vmatprep.mubr.f32.mxu1 %v490_v60  ;;  %v307_v60 = vld [vmem:[#allocation2 + $0x388] sm:$0xff] }
 0x19b   : > { %1406 = vmatmul.mubr.f32.gmra.mrb[118].mxu0 %v489_v61 }
 0x19c   : > { %2789 = vmatmul.mubr.f32.gmra.mrb[118].mxu1 %v489_v61  ;;  %1411 = vmatprep.mubr.f32.mxu0 %v495_v62  ;;  %v306_v61 = vld [vmem:[#allocation2 + $0x380] sm:$0xff] }
 0x19d   : > { %2794 = vmatprep.mubr.f32.mxu1 %v495_v62  ;;  %v312_v62 = vld [vmem:[#allocation2 + $0x3b0] sm:$0xff] }
 0x19f   : > { %1412 = vmatmul.mubr.f32.gmra.mrb[120].mxu0 %v494_v63 }
 0x1a0   : > { %2795 = vmatmul.mubr.f32.gmra.mrb[120].mxu1 %v494_v63  ;;  %1417 = vmatprep.mubr.f32.mxu0 %v500_v0  ;;  %v311_v63 = vld [vmem:[#allocation2 + $0x3a8] sm:$0xff] }
 0x1a1   : > { %2800 = vmatprep.mubr.f32.mxu1 %v500_v0  ;;  %v317_v0 = vld [vmem:[#allocation2 + $0x3d8] sm:$0xff] }
 0x1a3   : > { %1418 = vmatmul.mubr.f32.gmra.mrb[122].mxu0 %v499_v1 }
 0x1a4   : > { %2801 = vmatmul.mubr.f32.gmra.mrb[122].mxu1 %v499_v1  ;;  %1423 = vmatprep.mubr.f32.mxu0 %v505_v2  ;;  %v316_v1 = vld [vmem:[#allocation2 + $0x3d0] sm:$0xff] }
 0x1a5   : > { %2806 = vmatprep.mubr.f32.mxu1 %v505_v2  ;;  %v322_v2 = vld [vmem:[#allocation2 + $0x400] sm:$0xff] }
 0x1a7   : > { %1424 = vmatmul.mubr.f32.gmra.mrb[124].mxu0 %v504_v3 }
 0x1a8   : > { %2807 = vmatmul.mubr.f32.gmra.mrb[124].mxu1 %v504_v3  ;;  %1429 = vmatprep.mubr.f32.mxu0 %v510_v4  ;;  %v321_v3 = vld [vmem:[#allocation2 + $0x3f8] sm:$0xff] }
 0x1a9   : > { %2812 = vmatprep.mubr.f32.mxu1 %v510_v4  ;;  %v327_v4 = vld [vmem:[#allocation2 + $0x428] sm:$0xff] }
 0x1ab   : > { %1430 = vmatmul.mubr.f32.gmra.mrb[126].mxu0 %v509_v5 }
 0x1ac   : > { %2813 = vmatmul.mubr.f32.gmra.mrb[126].mxu1 %v509_v5  ;;  %1435 = vmatprep.mubr.f32.mxu0 %v515_v6  ;;  %v326_v5 = vld [vmem:[#allocation2 + $0x420] sm:$0xff] }
 0x1ad   : > { %2818 = vmatprep.mubr.f32.mxu1 %v515_v6  ;;  %v332_v6 = vld [vmem:[#allocation2 + $0x450] sm:$0xff] }
 0x1af   : > { %1436 = vmatmul.mubr.f32.gmra.mrb[128].mxu0 %v514_v7 }
 0x1b0   : > { %2819 = vmatmul.mubr.f32.gmra.mrb[128].mxu1 %v514_v7  ;;  %1441 = vmatprep.mubr.f32.mxu0 %v520_v8  ;;  %v331_v7 = vld [vmem:[#allocation2 + $0x448] sm:$0xff] }
 0x1b1   : > { %2824 = vmatprep.mubr.f32.mxu1 %v520_v8  ;;  %v337_v8 = vld [vmem:[#allocation2 + $0x478] sm:$0xff] }
 0x1b3   : > { %1442 = vmatmul.mubr.f32.gmra.mrb[130].mxu0 %v519_v9 }
 0x1b4   : > { %2825 = vmatmul.mubr.f32.gmra.mrb[130].mxu1 %v519_v9  ;;  %1512 = vmatprep.mubr.f32.mxu0 %v197_v10  ;;  %v336_v9 = vld [vmem:[#allocation2 + $0x470] sm:$0xff] }
 0x1b5   : > { %2895 = vmatprep.mubr.f32.mxu1 %v197_v10  ;;  %v342_v10 = vld [vmem:[#allocation2 + $0x4a0] sm:$0xff] }
 0x1b7   : > { %1513 = vmatmul.mubr.f32.vlgmr.msra.gmra.mrb[0].mxu0 %v196_v15 }
 0x1b8   : > { %2896 = vmatmul.mubr.f32.vlgmr.msra.gmra.mrb[0].mxu1 %v196_v15  ;;  %4408 = vmatpush1.bf16.msra.mxu0 %v4407_v16  ;;  %v351_v15 = vld [vmem:[#allocation2 + $0x4e8] sm:$0xff]  ;;  %v357_v16 = vld [vmem:[#allocation2 + $0x518] sm:$0xff] }
 0x1b9   : > { %4540 = vmatpush1.bf16.msra.mxu1 %v4539_v17  ;;  %1518 = vmatprep.mubr.f32.mxu0 %v202_v18  ;;  %v356_v17 = vld [vmem:[#allocation2 + $0x510] sm:$0xff] }
 0x1ba   : > { %2901 = vmatprep.mubr.f32.mxu1 %v202_v18  ;;  %v362_v18 = vld [vmem:[#allocation2 + $0x540] sm:$0xff] }
 0x1bb   : > { %1519 = vmatmul.mubr.f32.gmra.mrb[2].mxu0 %v201_v19 }
 0x1bc   : > { %2902 = vmatmul.mubr.f32.gmra.mrb[2].mxu1 %v201_v19  ;;  %1524 = vmatprep.mubr.f32.mxu0 %v207_v20  ;;  %v361_v19 = vld [vmem:[#allocation2 + $0x538] sm:$0xff] }
 0x1bd   : > { %2907 = vmatprep.mubr.f32.mxu1 %v207_v20  ;;  %v367_v20 = vld [vmem:[#allocation2 + $0x568] sm:$0xff] }
 0x1bf   : > { %1525 = vmatmul.mubr.f32.gmra.mrb[4].mxu0 %v206_v21 }
 0x1c0   : > { %2908 = vmatmul.mubr.f32.gmra.mrb[4].mxu1 %v206_v21  ;;  %1530 = vmatprep.mubr.f32.mxu0 %v212_v22  ;;  %v366_v21 = vld [vmem:[#allocation2 + $0x560] sm:$0xff] }
 0x1c1   : > { %2913 = vmatprep.mubr.f32.mxu1 %v212_v22  ;;  %v372_v22 = vld [vmem:[#allocation2 + $0x590] sm:$0xff] }
 0x1c3   : > { %1531 = vmatmul.mubr.f32.gmra.mrb[6].mxu0 %v211_v23 }
 0x1c4   : > { %2914 = vmatmul.mubr.f32.gmra.mrb[6].mxu1 %v211_v23  ;;  %1536 = vmatprep.mubr.f32.mxu0 %v217_v24  ;;  %v371_v23 = vld [vmem:[#allocation2 + $0x588] sm:$0xff] }
 0x1c5   : > { %2919 = vmatprep.mubr.f32.mxu1 %v217_v24  ;;  %v377_v24 = vld [vmem:[#allocation2 + $0x5b8] sm:$0xff] }
 0x1c7   : > { %1537 = vmatmul.mubr.f32.gmra.mrb[8].mxu0 %v216_v25 }
 0x1c8   : > { %2920 = vmatmul.mubr.f32.gmra.mrb[8].mxu1 %v216_v25  ;;  %1542 = vmatprep.mubr.f32.mxu0 %v222_v26  ;;  %v376_v25 = vld [vmem:[#allocation2 + $0x5b0] sm:$0xff] }
 0x1c9   : > { %2925 = vmatprep.mubr.f32.mxu1 %v222_v26  ;;  %v382_v26 = vld [vmem:[#allocation2 + $0x5e0] sm:$0xff] }
 0x1cb   : > { %1543 = vmatmul.mubr.f32.gmra.mrb[10].mxu0 %v221_v27 }
 0x1cc   : > { %2926 = vmatmul.mubr.f32.gmra.mrb[10].mxu1 %v221_v27  ;;  %1548 = vmatprep.mubr.f32.mxu0 %v227_v28  ;;  %v381_v27 = vld [vmem:[#allocation2 + $0x5d8] sm:$0xff] }
 0x1cd   : > { %2931 = vmatprep.mubr.f32.mxu1 %v227_v28  ;;  %v387_v28 = vld [vmem:[#allocation2 + $0x608] sm:$0xff] }
 0x1cf   : > { %1549 = vmatmul.mubr.f32.gmra.mrb[12].mxu0 %v226_v29 }
 0x1d0   : > { %2932 = vmatmul.mubr.f32.gmra.mrb[12].mxu1 %v226_v29  ;;  %1554 = vmatprep.mubr.f32.mxu0 %v232_v30  ;;  %v386_v29 = vld [vmem:[#allocation2 + $0x600] sm:$0xff] }
 0x1d1   : > { %2937 = vmatprep.mubr.f32.mxu1 %v232_v30  ;;  %v392_v30 = vld [vmem:[#allocation2 + $0x630] sm:$0xff] }
 0x1d3   : > { %1555 = vmatmul.mubr.f32.gmra.mrb[14].mxu0 %v231_v31 }
 0x1d4   : > { %2938 = vmatmul.mubr.f32.gmra.mrb[14].mxu1 %v231_v31  ;;  %1560 = vmatprep.mubr.f32.mxu0 %v237_v32  ;;  %v391_v31 = vld [vmem:[#allocation2 + $0x628] sm:$0xff] }
 0x1d5   : > { %2943 = vmatprep.mubr.f32.mxu1 %v237_v32  ;;  %v397_v32 = vld [vmem:[#allocation2 + $0x658] sm:$0xff] }
 0x1d7   : > { %1561 = vmatmul.mubr.f32.gmra.mrb[16].mxu0 %v236_v33 }
 0x1d8   : > { %2944 = vmatmul.mubr.f32.gmra.mrb[16].mxu1 %v236_v33  ;;  %1566 = vmatprep.mubr.f32.mxu0 %v242_v34  ;;  %v396_v33 = vld [vmem:[#allocation2 + $0x650] sm:$0xff] }
 0x1d9   : > { %2949 = vmatprep.mubr.f32.mxu1 %v242_v34  ;;  %v402_v34 = vld [vmem:[#allocation2 + $0x680] sm:$0xff] }
 0x1db   : > { %1567 = vmatmul.mubr.f32.gmra.mrb[18].mxu0 %v241_v35 }
 0x1dc   : > { %2950 = vmatmul.mubr.f32.gmra.mrb[18].mxu1 %v241_v35  ;;  %1572 = vmatprep.mubr.f32.mxu0 %v247_v36  ;;  %v401_v35 = vld [vmem:[#allocation2 + $0x678] sm:$0xff] }
 0x1dd   : > { %2955 = vmatprep.mubr.f32.mxu1 %v247_v36  ;;  %v407_v36 = vld [vmem:[#allocation2 + $0x6a8] sm:$0xff] }
 0x1df   : > { %1573 = vmatmul.mubr.f32.gmra.mrb[20].mxu0 %v246_v37 }
 0x1e0   : > { %2956 = vmatmul.mubr.f32.gmra.mrb[20].mxu1 %v246_v37  ;;  %1578 = vmatprep.mubr.f32.mxu0 %v252_v38  ;;  %v406_v37 = vld [vmem:[#allocation2 + $0x6a0] sm:$0xff] }
 0x1e1   : > { %2961 = vmatprep.mubr.f32.mxu1 %v252_v38  ;;  %v412_v38 = vld [vmem:[#allocation2 + $0x6d0] sm:$0xff] }
 0x1e3   : > { %1579 = vmatmul.mubr.f32.gmra.mrb[22].mxu0 %v251_v39 }
 0x1e4   : > { %2962 = vmatmul.mubr.f32.gmra.mrb[22].mxu1 %v251_v39  ;;  %1584 = vmatprep.mubr.f32.mxu0 %v257_v40  ;;  %v411_v39 = vld [vmem:[#allocation2 + $0x6c8] sm:$0xff] }
 0x1e5   : > { %2967 = vmatprep.mubr.f32.mxu1 %v257_v40  ;;  %v417_v40 = vld [vmem:[#allocation2 + $0x6f8] sm:$0xff] }
 0x1e7   : > { %1585 = vmatmul.mubr.f32.gmra.mrb[24].mxu0 %v256_v41 }
 0x1e8   : > { %2968 = vmatmul.mubr.f32.gmra.mrb[24].mxu1 %v256_v41  ;;  %1590 = vmatprep.mubr.f32.mxu0 %v262_v42  ;;  %v416_v41 = vld [vmem:[#allocation2 + $0x6f0] sm:$0xff] }
 0x1e9   : > { %2973 = vmatprep.mubr.f32.mxu1 %v262_v42  ;;  %v422_v42 = vld [vmem:[#allocation2 + $0x720] sm:$0xff] }
 0x1eb   : > { %1591 = vmatmul.mubr.f32.gmra.mrb[26].mxu0 %v261_v43 }
 0x1ec   : > { %2974 = vmatmul.mubr.f32.gmra.mrb[26].mxu1 %v261_v43  ;;  %1596 = vmatprep.mubr.f32.mxu0 %v267_v44  ;;  %v421_v43 = vld [vmem:[#allocation2 + $0x718] sm:$0xff] }
 0x1ed   : > { %2979 = vmatprep.mubr.f32.mxu1 %v267_v44  ;;  %v427_v44 = vld [vmem:[#allocation2 + $0x748] sm:$0xff] }
 0x1ef   : > { %1597 = vmatmul.mubr.f32.gmra.mrb[28].mxu0 %v266_v45 }
 0x1f0   : > { %2980 = vmatmul.mubr.f32.gmra.mrb[28].mxu1 %v266_v45  ;;  %1602 = vmatprep.mubr.f32.mxu0 %v272_v46  ;;  %v426_v45 = vld [vmem:[#allocation2 + $0x740] sm:$0xff] }
 0x1f1   : > { %2985 = vmatprep.mubr.f32.mxu1 %v272_v46  ;;  %v432_v46 = vld [vmem:[#allocation2 + $0x770] sm:$0xff] }
 0x1f3   : > { %1603 = vmatmul.mubr.f32.gmra.mrb[30].mxu0 %v271_v47 }
 0x1f4   : > { %2986 = vmatmul.mubr.f32.gmra.mrb[30].mxu1 %v271_v47  ;;  %1608 = vmatprep.mubr.f32.mxu0 %v277_v48  ;;  %v431_v47 = vld [vmem:[#allocation2 + $0x768] sm:$0xff] }
 0x1f5   : > { %2991 = vmatprep.mubr.f32.mxu1 %v277_v48  ;;  %v437_v48 = vld [vmem:[#allocation2 + $0x798] sm:$0xff] }
 0x1f7   : > { %1609 = vmatmul.mubr.f32.gmra.mrb[32].mxu0 %v276_v49 }
 0x1f8   : > { %2992 = vmatmul.mubr.f32.gmra.mrb[32].mxu1 %v276_v49  ;;  %1614 = vmatprep.mubr.f32.mxu0 %v282_v50  ;;  %v436_v49 = vld [vmem:[#allocation2 + $0x790] sm:$0xff] }
 0x1f9   : > { %2997 = vmatprep.mubr.f32.mxu1 %v282_v50  ;;  %v442_v50 = vld [vmem:[#allocation2 + $0x7c0] sm:$0xff] }
 0x1fb   : > { %1615 = vmatmul.mubr.f32.gmra.mrb[34].mxu0 %v281_v51 }
 0x1fc   : > { %2998 = vmatmul.mubr.f32.gmra.mrb[34].mxu1 %v281_v51  ;;  %1620 = vmatprep.mubr.f32.mxu0 %v287_v52  ;;  %v441_v51 = vld [vmem:[#allocation2 + $0x7b8] sm:$0xff] }
 0x1fd   : > { %3003 = vmatprep.mubr.f32.mxu1 %v287_v52  ;;  %v447_v52 = vld [vmem:[#allocation2 + $0x7e8] sm:$0xff] }
 0x1ff   : > { %1621 = vmatmul.mubr.f32.gmra.mrb[36].mxu0 %v286_v53 }
 0x200   : > { %3004 = vmatmul.mubr.f32.gmra.mrb[36].mxu1 %v286_v53  ;;  %1626 = vmatprep.mubr.f32.mxu0 %v292_v54  ;;  %v446_v53 = vld [vmem:[#allocation2 + $0x7e0] sm:$0xff] }
 0x201   : > { %3009 = vmatprep.mubr.f32.mxu1 %v292_v54  ;;  %v452_v54 = vld [vmem:[#allocation2 + $0x810] sm:$0xff] }
 0x203   : > { %1627 = vmatmul.mubr.f32.gmra.mrb[38].mxu0 %v291_v55 }
 0x204   : > { %3010 = vmatmul.mubr.f32.gmra.mrb[38].mxu1 %v291_v55  ;;  %1632 = vmatprep.mubr.f32.mxu0 %v297_v56  ;;  %v451_v55 = vld [vmem:[#allocation2 + $0x808] sm:$0xff] }
 0x205   : > { %3015 = vmatprep.mubr.f32.mxu1 %v297_v56  ;;  %v457_v56 = vld [vmem:[#allocation2 + $0x838] sm:$0xff] }
 0x207   : > { %1633 = vmatmul.mubr.f32.gmra.mrb[40].mxu0 %v296_v57 }
 0x208   : > { %3016 = vmatmul.mubr.f32.gmra.mrb[40].mxu1 %v296_v57  ;;  %1638 = vmatprep.mubr.f32.mxu0 %v302_v58  ;;  %v456_v57 = vld [vmem:[#allocation2 + $0x830] sm:$0xff] }
 0x209   : > { %3021 = vmatprep.mubr.f32.mxu1 %v302_v58  ;;  %v462_v58 = vld [vmem:[#allocation2 + $0x860] sm:$0xff] }
 0x20b   : > { %1639 = vmatmul.mubr.f32.gmra.mrb[42].mxu0 %v301_v59 }
 0x20c   : > { %3022 = vmatmul.mubr.f32.gmra.mrb[42].mxu1 %v301_v59  ;;  %1644 = vmatprep.mubr.f32.mxu0 %v307_v60  ;;  %v461_v59 = vld [vmem:[#allocation2 + $0x858] sm:$0xff] }
 0x20d   : > { %3027 = vmatprep.mubr.f32.mxu1 %v307_v60  ;;  %v467_v60 = vld [vmem:[#allocation2 + $0x888] sm:$0xff] }
 0x20f   : > { %1645 = vmatmul.mubr.f32.gmra.mrb[44].mxu0 %v306_v61 }
 0x210   : > { %3028 = vmatmul.mubr.f32.gmra.mrb[44].mxu1 %v306_v61  ;;  %1650 = vmatprep.mubr.f32.mxu0 %v312_v62  ;;  %v466_v61 = vld [vmem:[#allocation2 + $0x880] sm:$0xff] }
 0x211   : > { %3033 = vmatprep.mubr.f32.mxu1 %v312_v62  ;;  %v472_v62 = vld [vmem:[#allocation2 + $0x8b0] sm:$0xff] }
 0x213   : > { %1651 = vmatmul.mubr.f32.gmra.mrb[46].mxu0 %v311_v63 }
 0x214   : > { %3034 = vmatmul.mubr.f32.gmra.mrb[46].mxu1 %v311_v63  ;;  %1656 = vmatprep.mubr.f32.mxu0 %v317_v0  ;;  %v471_v63 = vld [vmem:[#allocation2 + $0x8a8] sm:$0xff] }
 0x215   : > { %3039 = vmatprep.mubr.f32.mxu1 %v317_v0  ;;  %v477_v0 = vld [vmem:[#allocation2 + $0x8d8] sm:$0xff] }
 0x217   : > { %1657 = vmatmul.mubr.f32.gmra.mrb[48].mxu0 %v316_v1 }
 0x218   : > { %3040 = vmatmul.mubr.f32.gmra.mrb[48].mxu1 %v316_v1  ;;  %1662 = vmatprep.mubr.f32.mxu0 %v322_v2  ;;  %v476_v1 = vld [vmem:[#allocation2 + $0x8d0] sm:$0xff] }
 0x219   : > { %3045 = vmatprep.mubr.f32.mxu1 %v322_v2  ;;  %v482_v2 = vld [vmem:[#allocation2 + $0x900] sm:$0xff] }
 0x21b   : > { %1663 = vmatmul.mubr.f32.gmra.mrb[50].mxu0 %v321_v3 }
 0x21c   : > { %3046 = vmatmul.mubr.f32.gmra.mrb[50].mxu1 %v321_v3  ;;  %1668 = vmatprep.mubr.f32.mxu0 %v327_v4  ;;  %v481_v3 = vld [vmem:[#allocation2 + $0x8f8] sm:$0xff] }
 0x21d   : > { %3051 = vmatprep.mubr.f32.mxu1 %v327_v4  ;;  %v487_v4 = vld [vmem:[#allocation2 + $0x928] sm:$0xff] }
 0x21f   : > { %1669 = vmatmul.mubr.f32.gmra.mrb[52].mxu0 %v326_v5 }
 0x220   : > { %3052 = vmatmul.mubr.f32.gmra.mrb[52].mxu1 %v326_v5  ;;  %1674 = vmatprep.mubr.f32.mxu0 %v332_v6  ;;  %v486_v5 = vld [vmem:[#allocation2 + $0x920] sm:$0xff] }
 0x221   : > { %3057 = vmatprep.mubr.f32.mxu1 %v332_v6  ;;  %v492_v6 = vld [vmem:[#allocation2 + $0x950] sm:$0xff] }
 0x223   : > { %1675 = vmatmul.mubr.f32.gmra.mrb[54].mxu0 %v331_v7 }
 0x224   : > { %3058 = vmatmul.mubr.f32.gmra.mrb[54].mxu1 %v331_v7  ;;  %1680 = vmatprep.mubr.f32.mxu0 %v337_v8  ;;  %v491_v7 = vld [vmem:[#allocation2 + $0x948] sm:$0xff] }
 0x225   : > { %3063 = vmatprep.mubr.f32.mxu1 %v337_v8  ;;  %v497_v8 = vld [vmem:[#allocation2 + $0x978] sm:$0xff] }
 0x227   : > { %1681 = vmatmul.mubr.f32.gmra.mrb[56].mxu0 %v336_v9 }
 0x228   : > { %3064 = vmatmul.mubr.f32.gmra.mrb[56].mxu1 %v336_v9  ;;  %1686 = vmatprep.mubr.f32.mxu0 %v342_v10  ;;  %v496_v9 = vld [vmem:[#allocation2 + $0x970] sm:$0xff] }
 0x229   : > { %3069 = vmatprep.mubr.f32.mxu1 %v342_v10  ;;  %v502_v10 = vld [vmem:[#allocation2 + $0x9a0] sm:$0xff] }
 0x22b   : > { %1687 = vmatmul.mubr.f32.gmra.mrb[58].mxu0 %v341_v11 }
 0x22c   : > { %3070 = vmatmul.mubr.f32.gmra.mrb[58].mxu1 %v341_v11  ;;  %1692 = vmatprep.mubr.f32.mxu0 %v347_v12  ;;  %v501_v11 = vld [vmem:[#allocation2 + $0x998] sm:$0xff] }
 0x22d   : > { %3075 = vmatprep.mubr.f32.mxu1 %v347_v12  ;;  %v507_v12 = vld [vmem:[#allocation2 + $0x9c8] sm:$0xff] }
 0x22f   : > { %1693 = vmatmul.mubr.f32.gmra.mrb[60].mxu0 %v346_v13 }
 0x230   : > { %3076 = vmatmul.mubr.f32.gmra.mrb[60].mxu1 %v346_v13  ;;  %1698 = vmatprep.mubr.f32.mxu0 %v352_v14  ;;  %v506_v13 = vld [vmem:[#allocation2 + $0x9c0] sm:$0xff] }
 0x231   : > { %3081 = vmatprep.mubr.f32.mxu1 %v352_v14  ;;  %v512_v14 = vld [vmem:[#allocation2 + $0x9f0] sm:$0xff] }
 0x233   : > { %1699 = vmatmul.mubr.f32.gmra.mrb[62].mxu0 %v351_v15 }
 0x234   : > { %3082 = vmatmul.mubr.f32.gmra.mrb[62].mxu1 %v351_v15  ;;  %1704 = vmatprep.mubr.f32.mxu0 %v357_v16  ;;  %v511_v15 = vld [vmem:[#allocation2 + $0x9e8] sm:$0xff] }
 0x235   : > { %3087 = vmatprep.mubr.f32.mxu1 %v357_v16  ;;  %v517_v16 = vld [vmem:[#allocation2 + $0xa18] sm:$0xff] }
 0x237   : > { %1705 = vmatmul.mubr.f32.gmra.mrb[64].mxu0 %v356_v17 }
 0x238   : > { %3088 = vmatmul.mubr.f32.gmra.mrb[64].mxu1 %v356_v17  ;;  %1710 = vmatprep.mubr.f32.mxu0 %v362_v18  ;;  %v516_v17 = vld [vmem:[#allocation2 + $0xa10] sm:$0xff] }
 0x239   : > { %3093 = vmatprep.mubr.f32.mxu1 %v362_v18  ;;  %v522_v18 = vld [vmem:[#allocation2 + $0xa40] sm:$0xff] }
 0x23b   : > { %1711 = vmatmul.mubr.f32.gmra.mrb[66].mxu0 %v361_v19 }
 0x23c   : > { %3094 = vmatmul.mubr.f32.gmra.mrb[66].mxu1 %v361_v19  ;;  %1716 = vmatprep.mubr.f32.mxu0 %v367_v20  ;;  %v521_v19 = vld [vmem:[#allocation2 + $0xa38] sm:$0xff] }
 0x23d   : > { %3099 = vmatprep.mubr.f32.mxu1 %v367_v20  ;;  %v5262_v20 = vmov 0.0  }
 0x23f   : > { %1717 = vmatmul.mubr.f32.gmra.mrb[68].mxu0 %v366_v21 }
 0x240   : > { %3100 = vmatmul.mubr.f32.gmra.mrb[68].mxu1 %v366_v21  ;;  %1722 = vmatprep.mubr.f32.mxu0 %v372_v22  ;;  %v198_v21 = vld [vmem:[#allocation2 + $0x20] sm:$0xff] }
 0x241   : > { %3105 = vmatprep.mubr.f32.mxu1 %v372_v22  ;;  %v203_v22 = vld [vmem:[#allocation2 + $0x48] sm:$0xff] }
 0x243   : > { %1723 = vmatmul.mubr.f32.gmra.mrb[70].mxu0 %v371_v23 }
 0x244   : > { %3106 = vmatmul.mubr.f32.gmra.mrb[70].mxu1 %v371_v23  ;;  %1728 = vmatprep.mubr.f32.mxu0 %v377_v24  ;;  %v208_v23 = vld [vmem:[#allocation2 + $0x70] sm:$0xff] }
 0x245   : > { %3111 = vmatprep.mubr.f32.mxu1 %v377_v24  ;;  %v213_v24 = vld [vmem:[#allocation2 + $0x98] sm:$0xff] }
 0x247   : > { %1729 = vmatmul.mubr.f32.gmra.mrb[72].mxu0 %v376_v25 }
 0x248   : > { %3112 = vmatmul.mubr.f32.gmra.mrb[72].mxu1 %v376_v25  ;;  %1734 = vmatprep.mubr.f32.mxu0 %v382_v26  ;;  %v218_v25 = vld [vmem:[#allocation2 + $0xc0] sm:$0xff] }
 0x249   : > { %3117 = vmatprep.mubr.f32.mxu1 %v382_v26  ;;  %v223_v26 = vld [vmem:[#allocation2 + $0xe8] sm:$0xff] }
 0x24b   : > { %1735 = vmatmul.mubr.f32.gmra.mrb[74].mxu0 %v381_v27 }
 0x24c   : > { %3118 = vmatmul.mubr.f32.gmra.mrb[74].mxu1 %v381_v27  ;;  %1740 = vmatprep.mubr.f32.mxu0 %v387_v28  ;;  %v228_v27 = vld [vmem:[#allocation2 + $0x110] sm:$0xff] }
 0x24d   : > { %3123 = vmatprep.mubr.f32.mxu1 %v387_v28  ;;  %v233_v28 = vld [vmem:[#allocation2 + $0x138] sm:$0xff] }
 0x24f   : > { %1741 = vmatmul.mubr.f32.gmra.mrb[76].mxu0 %v386_v29 }
 0x250   : > { %3124 = vmatmul.mubr.f32.gmra.mrb[76].mxu1 %v386_v29  ;;  %1746 = vmatprep.mubr.f32.mxu0 %v392_v30  ;;  %v238_v29 = vld [vmem:[#allocation2 + $0x160] sm:$0xff] }
 0x251   : > { %3129 = vmatprep.mubr.f32.mxu1 %v392_v30  ;;  %v243_v30 = vld [vmem:[#allocation2 + $0x188] sm:$0xff] }
 0x253   : > { %1747 = vmatmul.mubr.f32.gmra.mrb[78].mxu0 %v391_v31 }
 0x254   : > { %3130 = vmatmul.mubr.f32.gmra.mrb[78].mxu1 %v391_v31  ;;  %1752 = vmatprep.mubr.f32.mxu0 %v397_v32  ;;  %v248_v31 = vld [vmem:[#allocation2 + $0x1b0] sm:$0xff] }
 0x255   : > { %3135 = vmatprep.mubr.f32.mxu1 %v397_v32  ;;  %v253_v32 = vld [vmem:[#allocation2 + $0x1d8] sm:$0xff] }
 0x257   : > { %1753 = vmatmul.mubr.f32.gmra.mrb[80].mxu0 %v396_v33 }
 0x258   : > { %3136 = vmatmul.mubr.f32.gmra.mrb[80].mxu1 %v396_v33  ;;  %1758 = vmatprep.mubr.f32.mxu0 %v402_v34  ;;  %v258_v33 = vld [vmem:[#allocation2 + $0x200] sm:$0xff] }
 0x259   : > { %3141 = vmatprep.mubr.f32.mxu1 %v402_v34  ;;  %v263_v34 = vld [vmem:[#allocation2 + $0x228] sm:$0xff] }
 0x25b   : > { %1759 = vmatmul.mubr.f32.gmra.mrb[82].mxu0 %v401_v35 }
 0x25c   : > { %3142 = vmatmul.mubr.f32.gmra.mrb[82].mxu1 %v401_v35  ;;  %1764 = vmatprep.mubr.f32.mxu0 %v407_v36  ;;  %v268_v35 = vld [vmem:[#allocation2 + $0x250] sm:$0xff] }
 0x25d   : > { %3147 = vmatprep.mubr.f32.mxu1 %v407_v36  ;;  %v273_v36 = vld [vmem:[#allocation2 + $0x278] sm:$0xff] }
 0x25f   : > { %1765 = vmatmul.mubr.f32.gmra.mrb[84].mxu0 %v406_v37 }
 0x260   : > { %3148 = vmatmul.mubr.f32.gmra.mrb[84].mxu1 %v406_v37  ;;  %1770 = vmatprep.mubr.f32.mxu0 %v412_v38  ;;  %v278_v37 = vld [vmem:[#allocation2 + $0x2a0] sm:$0xff] }
 0x261   : > { %3153 = vmatprep.mubr.f32.mxu1 %v412_v38  ;;  %v283_v38 = vld [vmem:[#allocation2 + $0x2c8] sm:$0xff] }
 0x263   : > { %1771 = vmatmul.mubr.f32.gmra.mrb[86].mxu0 %v411_v39 }
 0x264   : > { %3154 = vmatmul.mubr.f32.gmra.mrb[86].mxu1 %v411_v39  ;;  %1776 = vmatprep.mubr.f32.mxu0 %v417_v40  ;;  %v288_v39 = vld [vmem:[#allocation2 + $0x2f0] sm:$0xff] }
 0x265   : > { %3159 = vmatprep.mubr.f32.mxu1 %v417_v40  ;;  %v293_v40 = vld [vmem:[#allocation2 + $0x318] sm:$0xff] }
 0x267   : > { %1777 = vmatmul.mubr.f32.gmra.mrb[88].mxu0 %v416_v41 }
 0x268   : > { %3160 = vmatmul.mubr.f32.gmra.mrb[88].mxu1 %v416_v41  ;;  %1782 = vmatprep.mubr.f32.mxu0 %v422_v42  ;;  %v298_v41 = vld [vmem:[#allocation2 + $0x340] sm:$0xff] }
 0x269   : > { %3165 = vmatprep.mubr.f32.mxu1 %v422_v42  ;;  %v303_v42 = vld [vmem:[#allocation2 + $0x368] sm:$0xff] }
 0x26b   : > { %1783 = vmatmul.mubr.f32.gmra.mrb[90].mxu0 %v421_v43 }
 0x26c   : > { %3166 = vmatmul.mubr.f32.gmra.mrb[90].mxu1 %v421_v43  ;;  %1788 = vmatprep.mubr.f32.mxu0 %v427_v44  ;;  %v308_v43 = vld [vmem:[#allocation2 + $0x390] sm:$0xff] }
 0x26d   : > { %3171 = vmatprep.mubr.f32.mxu1 %v427_v44  ;;  %v313_v44 = vld [vmem:[#allocation2 + $0x3b8] sm:$0xff] }
 0x26f   : > { %1789 = vmatmul.mubr.f32.gmra.mrb[92].mxu0 %v426_v45 }
 0x270   : > { %3172 = vmatmul.mubr.f32.gmra.mrb[92].mxu1 %v426_v45  ;;  %1794 = vmatprep.mubr.f32.mxu0 %v432_v46  ;;  %v318_v45 = vld [vmem:[#allocation2 + $0x3e0] sm:$0xff] }
 0x271   : > { %3177 = vmatprep.mubr.f32.mxu1 %v432_v46  ;;  %v323_v46 = vld [vmem:[#allocation2 + $0x408] sm:$0xff] }
 0x273   : > { %1795 = vmatmul.mubr.f32.gmra.mrb[94].mxu0 %v431_v47 }
 0x274   : > { %3178 = vmatmul.mubr.f32.gmra.mrb[94].mxu1 %v431_v47  ;;  %1800 = vmatprep.mubr.f32.mxu0 %v437_v48  ;;  %v328_v47 = vld [vmem:[#allocation2 + $0x430] sm:$0xff] }
 0x275   : > { %3183 = vmatprep.mubr.f32.mxu1 %v437_v48  ;;  %v333_v48 = vld [vmem:[#allocation2 + $0x458] sm:$0xff] }
 0x277   : > { %1801 = vmatmul.mubr.f32.gmra.mrb[96].mxu0 %v436_v49 }
 0x278   : > { %3184 = vmatmul.mubr.f32.gmra.mrb[96].mxu1 %v436_v49  ;;  %1806 = vmatprep.mubr.f32.mxu0 %v442_v50  ;;  %v338_v49 = vld [vmem:[#allocation2 + $0x480] sm:$0xff] }
 0x279   : > { %3189 = vmatprep.mubr.f32.mxu1 %v442_v50  ;;  %v343_v50 = vld [vmem:[#allocation2 + $0x4a8] sm:$0xff] }
 0x27b   : > { %1807 = vmatmul.mubr.f32.gmra.mrb[98].mxu0 %v441_v51 }
 0x27c   : > { %3190 = vmatmul.mubr.f32.gmra.mrb[98].mxu1 %v441_v51  ;;  %1812 = vmatprep.mubr.f32.mxu0 %v447_v52  ;;  %v348_v51 = vld [vmem:[#allocation2 + $0x4d0] sm:$0xff] }
 0x27d   : > { %3195 = vmatprep.mubr.f32.mxu1 %v447_v52  ;;  %v353_v52 = vld [vmem:[#allocation2 + $0x4f8] sm:$0xff] }
 0x27f   : > { %1813 = vmatmul.mubr.f32.gmra.mrb[100].mxu0 %v446_v53 }
 0x280   : > { %3196 = vmatmul.mubr.f32.gmra.mrb[100].mxu1 %v446_v53  ;;  %1818 = vmatprep.mubr.f32.mxu0 %v452_v54  ;;  %v358_v53 = vld [vmem:[#allocation2 + $0x520] sm:$0xff] }
 0x281   : > { %3201 = vmatprep.mubr.f32.mxu1 %v452_v54  ;;  %v363_v54 = vld [vmem:[#allocation2 + $0x548] sm:$0xff] }
 0x283   : > { %1819 = vmatmul.mubr.f32.gmra.mrb[102].mxu0 %v451_v55 }
 0x284   : > { %3202 = vmatmul.mubr.f32.gmra.mrb[102].mxu1 %v451_v55  ;;  %1824 = vmatprep.mubr.f32.mxu0 %v457_v56  ;;  %v368_v55 = vld [vmem:[#allocation2 + $0x570] sm:$0xff] }
 0x285   : > { %3207 = vmatprep.mubr.f32.mxu1 %v457_v56  ;;  %v373_v56 = vld [vmem:[#allocation2 + $0x598] sm:$0xff] }
 0x287   : > { %1825 = vmatmul.mubr.f32.gmra.mrb[104].mxu0 %v456_v57 }
 0x288   : > { %3208 = vmatmul.mubr.f32.gmra.mrb[104].mxu1 %v456_v57  ;;  %1830 = vmatprep.mubr.f32.mxu0 %v462_v58  ;;  %v378_v57 = vld [vmem:[#allocation2 + $0x5c0] sm:$0xff] }
 0x289   : > { %3213 = vmatprep.mubr.f32.mxu1 %v462_v58  ;;  %v383_v58 = vld [vmem:[#allocation2 + $0x5e8] sm:$0xff] }
 0x28b   : > { %1831 = vmatmul.mubr.f32.gmra.mrb[106].mxu0 %v461_v59 }
 0x28c   : > { %3214 = vmatmul.mubr.f32.gmra.mrb[106].mxu1 %v461_v59  ;;  %1836 = vmatprep.mubr.f32.mxu0 %v467_v60  ;;  %v388_v59 = vld [vmem:[#allocation2 + $0x610] sm:$0xff] }
 0x28d   : > { %3219 = vmatprep.mubr.f32.mxu1 %v467_v60  ;;  %v393_v60 = vld [vmem:[#allocation2 + $0x638] sm:$0xff] }
 0x28f   : > { %1837 = vmatmul.mubr.f32.gmra.mrb[108].mxu0 %v466_v61 }
 0x290   : > { %3220 = vmatmul.mubr.f32.gmra.mrb[108].mxu1 %v466_v61  ;;  %1842 = vmatprep.mubr.f32.mxu0 %v472_v62  ;;  %v398_v61 = vld [vmem:[#allocation2 + $0x660] sm:$0xff] }
 0x291   : > { %3225 = vmatprep.mubr.f32.mxu1 %v472_v62  ;;  %v403_v62 = vld [vmem:[#allocation2 + $0x688] sm:$0xff] }
 0x293   : > { %1843 = vmatmul.mubr.f32.gmra.mrb[110].mxu0 %v471_v63 }
 0x294   : > { %3226 = vmatmul.mubr.f32.gmra.mrb[110].mxu1 %v471_v63  ;;  %1848 = vmatprep.mubr.f32.mxu0 %v477_v0  ;;  %v408_v63 = vld [vmem:[#allocation2 + $0x6b0] sm:$0xff] }
 0x295   : > { %3231 = vmatprep.mubr.f32.mxu1 %v477_v0  ;;  %v413_v0 = vld [vmem:[#allocation2 + $0x6d8] sm:$0xff] }
 0x297   : > { %1849 = vmatmul.mubr.f32.gmra.mrb[112].mxu0 %v476_v1 }
 0x298   : > { %3232 = vmatmul.mubr.f32.gmra.mrb[112].mxu1 %v476_v1  ;;  %1854 = vmatprep.mubr.f32.mxu0 %v482_v2  ;;  %v418_v1 = vld [vmem:[#allocation2 + $0x700] sm:$0xff] }
 0x299   : > { %3237 = vmatprep.mubr.f32.mxu1 %v482_v2  ;;  %v423_v2 = vld [vmem:[#allocation2 + $0x728] sm:$0xff] }
 0x29b   : > { %1855 = vmatmul.mubr.f32.gmra.mrb[114].mxu0 %v481_v3 }
 0x29c   : > { %3238 = vmatmul.mubr.f32.gmra.mrb[114].mxu1 %v481_v3  ;;  %1860 = vmatprep.mubr.f32.mxu0 %v487_v4  ;;  %v428_v3 = vld [vmem:[#allocation2 + $0x750] sm:$0xff] }
 0x29d   : > { %3243 = vmatprep.mubr.f32.mxu1 %v487_v4  ;;  %v433_v4 = vld [vmem:[#allocation2 + $0x778] sm:$0xff] }
 0x29f   : > { %1861 = vmatmul.mubr.f32.gmra.mrb[116].mxu0 %v486_v5 }
 0x2a0   : > { %3244 = vmatmul.mubr.f32.gmra.mrb[116].mxu1 %v486_v5  ;;  %1866 = vmatprep.mubr.f32.mxu0 %v492_v6  ;;  %v438_v5 = vld [vmem:[#allocation2 + $0x7a0] sm:$0xff] }
 0x2a1   : > { %3249 = vmatprep.mubr.f32.mxu1 %v492_v6  ;;  %v443_v6 = vld [vmem:[#allocation2 + $0x7c8] sm:$0xff] }
 0x2a3   : > { %1867 = vmatmul.mubr.f32.gmra.mrb[118].mxu0 %v491_v7 }
 0x2a4   : > { %3250 = vmatmul.mubr.f32.gmra.mrb[118].mxu1 %v491_v7  ;;  %1872 = vmatprep.mubr.f32.mxu0 %v497_v8  ;;  %v448_v7 = vld [vmem:[#allocation2 + $0x7f0] sm:$0xff] }
 0x2a5   : > { %3255 = vmatprep.mubr.f32.mxu1 %v497_v8  ;;  %v453_v8 = vld [vmem:[#allocation2 + $0x818] sm:$0xff] }
 0x2a7   : > { %1873 = vmatmul.mubr.f32.gmra.mrb[120].mxu0 %v496_v9 }
 0x2a8   : > { %3256 = vmatmul.mubr.f32.gmra.mrb[120].mxu1 %v496_v9  ;;  %1878 = vmatprep.mubr.f32.mxu0 %v502_v10  ;;  %v458_v9 = vld [vmem:[#allocation2 + $0x840] sm:$0xff] }
 0x2a9   : > { %3261 = vmatprep.mubr.f32.mxu1 %v502_v10  ;;  %v463_v10 = vld [vmem:[#allocation2 + $0x868] sm:$0xff] }
 0x2ab   : > { %1879 = vmatmul.mubr.f32.gmra.mrb[122].mxu0 %v501_v11 }
 0x2ac   : > { %3262 = vmatmul.mubr.f32.gmra.mrb[122].mxu1 %v501_v11  ;;  %1884 = vmatprep.mubr.f32.mxu0 %v507_v12 }
 0x2ad   : > { %3267 = vmatprep.mubr.f32.mxu1 %v507_v12 }
 0x2af   : > { %1885 = vmatmul.mubr.f32.gmra.mrb[124].mxu0 %v506_v13 }
 0x2b0   : > { %3268 = vmatmul.mubr.f32.gmra.mrb[124].mxu1 %v506_v13  ;;  %1890 = vmatprep.mubr.f32.mxu0 %v512_v14 }
 0x2b1   : > { %3273 = vmatprep.mubr.f32.mxu1 %v512_v14 }
 0x2b3   : > { %1891 = vmatmul.mubr.f32.gmra.mrb[126].mxu0 %v511_v15 }
 0x2b4   : > { %3274 = vmatmul.mubr.f32.gmra.mrb[126].mxu1 %v511_v15  ;;  %1896 = vmatprep.mubr.f32.mxu0 %v517_v16  ;;  %v468_v15 = vld [vmem:[#allocation2 + $0x890] sm:$0xff] }
 0x2b5   : > { %3279 = vmatprep.mubr.f32.mxu1 %v517_v16 }
 0x2b7   : > { %1897 = vmatmul.mubr.f32.gmra.mrb[128].mxu0 %v516_v17 }
 0x2b8   : > { %3280 = vmatmul.mubr.f32.gmra.mrb[128].mxu1 %v516_v17  ;;  %1902 = vmatprep.mubr.f32.mxu0 %v522_v18 }
 0x2b9   : > { %3285 = vmatprep.mubr.f32.mxu1 %v522_v18 }
 0x2bb   : > { %1903 = vmatmul.mubr.f32.gmra.mrb[130].mxu0 %v521_v19 }
 0x2bc   : > { %3286 = vmatmul.mubr.f32.gmra.mrb[130].mxu1 %v521_v19  ;;  %1973 = vmatprep.mubr.f32.mxu0 %v5262_v20 }
 0x2bd   : > { %3356 = vmatprep.mubr.f32.mxu1 %v5262_v20 }
 0x2bf   : > { %4135 = vmatmul.mubr.msk.f32.vlgmr.msra.gmra.mrb[0].mxu0 %vm788_vm0, %v198_v21 }
 0x2c0   : > { %4201 = vmatmul.mubr.msk.f32.vlgmr.msra.gmra.mrb[0].mxu1 %vm788_vm0, %v198_v21  ;;  %1979 = vmatprep.mubr.f32.mxu0 %v5262_v20  ;;  %v473_v21 = vld [vmem:[#allocation2 + $0x8b8] sm:$0xff] }
 0x2c1   : > { %3362 = vmatprep.mubr.f32.mxu1 %v5262_v20 }
 0x2c3   : > { %4136 = vmatmul.mubr.msk.f32.gmra.mrb[2].mxu0 %vm788_vm0, %v203_v22 }
 0x2c4   : > { %4202 = vmatmul.mubr.msk.f32.gmra.mrb[2].mxu1 %vm788_vm0, %v203_v22  ;;  %1985 = vmatprep.mubr.f32.mxu0 %v5262_v20 }
 0x2c5   : > { %3368 = vmatprep.mubr.f32.mxu1 %v5262_v20 }
 0x2c7   : > { %4137 = vmatmul.mubr.msk.f32.gmra.mrb[4].mxu0 %vm788_vm0, %v208_v23 }
 0x2c8   : > { %4203 = vmatmul.mubr.msk.f32.gmra.mrb[4].mxu1 %vm788_vm0, %v208_v23  ;;  %1991 = vmatprep.mubr.f32.mxu0 %v5262_v20 }
 0x2c9   : > { %3374 = vmatprep.mubr.f32.mxu1 %v5262_v20 }
 0x2cb   : > { %4138 = vmatmul.mubr.msk.f32.gmra.mrb[6].mxu0 %vm788_vm0, %v213_v24 }
 0x2cc   : > { %4204 = vmatmul.mubr.msk.f32.gmra.mrb[6].mxu1 %vm788_vm0, %v213_v24  ;;  %1997 = vmatprep.mubr.f32.mxu0 %v5262_v20 }
 0x2cd   : > { %3380 = vmatprep.mubr.f32.mxu1 %v5262_v20 }
 0x2cf   : > { %4139 = vmatmul.mubr.msk.f32.gmra.mrb[8].mxu0 %vm788_vm0, %v218_v25 }
 0x2d0   : > { %4205 = vmatmul.mubr.msk.f32.gmra.mrb[8].mxu1 %vm788_vm0, %v218_v25  ;;  %2003 = vmatprep.mubr.f32.mxu0 %v5262_v20 }
 0x2d1   : > { %3386 = vmatprep.mubr.f32.mxu1 %v5262_v20 }
 0x2d3   : > { %4140 = vmatmul.mubr.msk.f32.gmra.mrb[10].mxu0 %vm788_vm0, %v223_v26 }
 0x2d4   : > { %4206 = vmatmul.mubr.msk.f32.gmra.mrb[10].mxu1 %vm788_vm0, %v223_v26  ;;  %2009 = vmatprep.mubr.f32.mxu0 %v5262_v20  ;;  %v478_v26 = vld [vmem:[#allocation2 + $0x8e0] sm:$0xff] }
 0x2d5   : > { %3392 = vmatprep.mubr.f32.mxu1 %v5262_v20 }
 0x2d7   : > { %4141 = vmatmul.mubr.msk.f32.gmra.mrb[12].mxu0 %vm788_vm0, %v228_v27 }
 0x2d8   : > { %4207 = vmatmul.mubr.msk.f32.gmra.mrb[12].mxu1 %vm788_vm0, %v228_v27  ;;  %2015 = vmatprep.mubr.f32.mxu0 %v5262_v20 }
 0x2d9   : > { %3398 = vmatprep.mubr.f32.mxu1 %v5262_v20 }
 0x2db   : > { %4142 = vmatmul.mubr.msk.f32.gmra.mrb[14].mxu0 %vm788_vm0, %v233_v28 }
 0x2dc   : > { %4208 = vmatmul.mubr.msk.f32.gmra.mrb[14].mxu1 %vm788_vm0, %v233_v28  ;;  %2021 = vmatprep.mubr.f32.mxu0 %v5262_v20 }
 0x2dd   : > { %3404 = vmatprep.mubr.f32.mxu1 %v5262_v20 }
 0x2df   : > { %4143 = vmatmul.mubr.msk.f32.gmra.mrb[16].mxu0 %vm788_vm0, %v238_v29 }
 0x2e0   : > { %4209 = vmatmul.mubr.msk.f32.gmra.mrb[16].mxu1 %vm788_vm0, %v238_v29  ;;  %2027 = vmatprep.mubr.f32.mxu0 %v5262_v20 }
 0x2e1   : > { %3410 = vmatprep.mubr.f32.mxu1 %v5262_v20 }
 0x2e3   : > { %4144 = vmatmul.mubr.msk.f32.gmra.mrb[18].mxu0 %vm788_vm0, %v243_v30 }
 0x2e4   : > { %4210 = vmatmul.mubr.msk.f32.gmra.mrb[18].mxu1 %vm788_vm0, %v243_v30  ;;  %2033 = vmatprep.mubr.f32.mxu0 %v5262_v20 }
 0x2e5   : > { %3416 = vmatprep.mubr.f32.mxu1 %v5262_v20 }
 0x2e7   : > { %4145 = vmatmul.mubr.msk.f32.gmra.mrb[20].mxu0 %vm788_vm0, %v248_v31 }
 0x2e8   : > { %4211 = vmatmul.mubr.msk.f32.gmra.mrb[20].mxu1 %vm788_vm0, %v248_v31  ;;  %2039 = vmatprep.mubr.f32.mxu0 %v5262_v20  ;;  %v483_v31 = vld [vmem:[#allocation2 + $0x908] sm:$0xff] }
 0x2e9   : > { %3422 = vmatprep.mubr.f32.mxu1 %v5262_v20 }
 0x2eb   : > { %4146 = vmatmul.mubr.msk.f32.gmra.mrb[22].mxu0 %vm788_vm0, %v253_v32 }
 0x2ec   : > { %4212 = vmatmul.mubr.msk.f32.gmra.mrb[22].mxu1 %vm788_vm0, %v253_v32  ;;  %2045 = vmatprep.mubr.f32.mxu0 %v5262_v20 }
 0x2ed   : > { %3428 = vmatprep.mubr.f32.mxu1 %v5262_v20 }
 0x2ef   : > { %4147 = vmatmul.mubr.msk.f32.gmra.mrb[24].mxu0 %vm788_vm0, %v258_v33 }
 0x2f0   : > { %4213 = vmatmul.mubr.msk.f32.gmra.mrb[24].mxu1 %vm788_vm0, %v258_v33  ;;  %2051 = vmatprep.mubr.f32.mxu0 %v5262_v20 }
 0x2f1   : > { %3434 = vmatprep.mubr.f32.mxu1 %v5262_v20 }
 0x2f3   : > { %4148 = vmatmul.mubr.msk.f32.gmra.mrb[26].mxu0 %vm788_vm0, %v263_v34 }
 0x2f4   : > { %4214 = vmatmul.mubr.msk.f32.gmra.mrb[26].mxu1 %vm788_vm0, %v263_v34  ;;  %2057 = vmatprep.mubr.f32.mxu0 %v5262_v20 }
 0x2f5   : > { %3440 = vmatprep.mubr.f32.mxu1 %v5262_v20 }
 0x2f7   : > { %4149 = vmatmul.mubr.msk.f32.gmra.mrb[28].mxu0 %vm788_vm0, %v268_v35 }
 0x2f8   : > { %4215 = vmatmul.mubr.msk.f32.gmra.mrb[28].mxu1 %vm788_vm0, %v268_v35  ;;  %2063 = vmatprep.mubr.f32.mxu0 %v5262_v20 }
 0x2f9   : > { %3446 = vmatprep.mubr.f32.mxu1 %v5262_v20 }
 0x2fb   : > { %4150 = vmatmul.mubr.msk.f32.gmra.mrb[30].mxu0 %vm788_vm0, %v273_v36 }
 0x2fc   : > { %4216 = vmatmul.mubr.msk.f32.gmra.mrb[30].mxu1 %vm788_vm0, %v273_v36  ;;  %2069 = vmatprep.mubr.f32.mxu0 %v5262_v20  ;;  %v488_v36 = vld [vmem:[#allocation2 + $0x930] sm:$0xff] }
 0x2fd   : > { %3452 = vmatprep.mubr.f32.mxu1 %v5262_v20 }
 0x2ff   : > { %4151 = vmatmul.mubr.msk.f32.gmra.mrb[32].mxu0 %vm788_vm0, %v278_v37 }
 0x300   : > { %4217 = vmatmul.mubr.msk.f32.gmra.mrb[32].mxu1 %vm788_vm0, %v278_v37  ;;  %2075 = vmatprep.mubr.f32.mxu0 %v5262_v20 }
 0x301   : > { %3458 = vmatprep.mubr.f32.mxu1 %v5262_v20 }
 0x303   : > { %4152 = vmatmul.mubr.msk.f32.gmra.mrb[34].mxu0 %vm788_vm0, %v283_v38 }
 0x304   : > { %4218 = vmatmul.mubr.msk.f32.gmra.mrb[34].mxu1 %vm788_vm0, %v283_v38  ;;  %2081 = vmatprep.mubr.f32.mxu0 %v5262_v20 }
 0x305   : > { %3464 = vmatprep.mubr.f32.mxu1 %v5262_v20 }
 0x307   : > { %4153 = vmatmul.mubr.msk.f32.gmra.mrb[36].mxu0 %vm788_vm0, %v288_v39 }
 0x308   : > { %4219 = vmatmul.mubr.msk.f32.gmra.mrb[36].mxu1 %vm788_vm0, %v288_v39  ;;  %2087 = vmatprep.mubr.f32.mxu0 %v5262_v20 }
 0x309   : > { %3470 = vmatprep.mubr.f32.mxu1 %v5262_v20 }
 0x30b   : > { %4154 = vmatmul.mubr.msk.f32.gmra.mrb[38].mxu0 %vm788_vm0, %v293_v40 }
 0x30c   : > { %4220 = vmatmul.mubr.msk.f32.gmra.mrb[38].mxu1 %vm788_vm0, %v293_v40  ;;  %2093 = vmatprep.mubr.f32.mxu0 %v5262_v20 }
 0x30d   : > { %3476 = vmatprep.mubr.f32.mxu1 %v5262_v20 }
 0x30f   : > { %4155 = vmatmul.mubr.msk.f32.gmra.mrb[40].mxu0 %vm788_vm0, %v298_v41 }
 0x310   : > { %4221 = vmatmul.mubr.msk.f32.gmra.mrb[40].mxu1 %vm788_vm0, %v298_v41  ;;  %2099 = vmatprep.mubr.f32.mxu0 %v5262_v20  ;;  %v493_v41 = vld [vmem:[#allocation2 + $0x958] sm:$0xff] }
 0x311   : > { %3482 = vmatprep.mubr.f32.mxu1 %v5262_v20 }
 0x313   : > { %4156 = vmatmul.mubr.msk.f32.gmra.mrb[42].mxu0 %vm788_vm0, %v303_v42 }
 0x314   : > { %4222 = vmatmul.mubr.msk.f32.gmra.mrb[42].mxu1 %vm788_vm0, %v303_v42  ;;  %2105 = vmatprep.mubr.f32.mxu0 %v5262_v20 }
 0x315   : > { %3488 = vmatprep.mubr.f32.mxu1 %v5262_v20 }
 0x317   : > { %4157 = vmatmul.mubr.msk.f32.gmra.mrb[44].mxu0 %vm788_vm0, %v308_v43 }
 0x318   : > { %4223 = vmatmul.mubr.msk.f32.gmra.mrb[44].mxu1 %vm788_vm0, %v308_v43  ;;  %2111 = vmatprep.mubr.f32.mxu0 %v5262_v20 }
 0x319   : > { %3494 = vmatprep.mubr.f32.mxu1 %v5262_v20 }
 0x31b   : > { %4158 = vmatmul.mubr.msk.f32.gmra.mrb[46].mxu0 %vm788_vm0, %v313_v44 }
 0x31c   : > { %4224 = vmatmul.mubr.msk.f32.gmra.mrb[46].mxu1 %vm788_vm0, %v313_v44  ;;  %2117 = vmatprep.mubr.f32.mxu0 %v5262_v20 }
 0x31d   : > { %3500 = vmatprep.mubr.f32.mxu1 %v5262_v20 }
 0x31f   : > { %4159 = vmatmul.mubr.msk.f32.gmra.mrb[48].mxu0 %vm788_vm0, %v318_v45 }
 0x320   : > { %4225 = vmatmul.mubr.msk.f32.gmra.mrb[48].mxu1 %vm788_vm0, %v318_v45  ;;  %2123 = vmatprep.mubr.f32.mxu0 %v5262_v20 }
 0x321   : > { %3506 = vmatprep.mubr.f32.mxu1 %v5262_v20 }
 0x323   : > { %4160 = vmatmul.mubr.msk.f32.gmra.mrb[50].mxu0 %vm788_vm0, %v323_v46 }
 0x324   : > { %4226 = vmatmul.mubr.msk.f32.gmra.mrb[50].mxu1 %vm788_vm0, %v323_v46  ;;  %2129 = vmatprep.mubr.f32.mxu0 %v5262_v20  ;;  %v498_v46 = vld [vmem:[#allocation2 + $0x980] sm:$0xff] }
 0x325   : > { %3512 = vmatprep.mubr.f32.mxu1 %v5262_v20 }
 0x327   : > { %4161 = vmatmul.mubr.msk.f32.gmra.mrb[52].mxu0 %vm788_vm0, %v328_v47 }
 0x328   : > { %4227 = vmatmul.mubr.msk.f32.gmra.mrb[52].mxu1 %vm788_vm0, %v328_v47  ;;  %2135 = vmatprep.mubr.f32.mxu0 %v5262_v20 }
 0x329   : > { %3518 = vmatprep.mubr.f32.mxu1 %v5262_v20 }
 0x32b   : > { %4162 = vmatmul.mubr.msk.f32.gmra.mrb[54].mxu0 %vm788_vm0, %v333_v48 }
 0x32c   : > { %4228 = vmatmul.mubr.msk.f32.gmra.mrb[54].mxu1 %vm788_vm0, %v333_v48  ;;  %2141 = vmatprep.mubr.f32.mxu0 %v5262_v20 }
 0x32d   : > { %3524 = vmatprep.mubr.f32.mxu1 %v5262_v20 }
 0x32f   : > { %4163 = vmatmul.mubr.msk.f32.gmra.mrb[56].mxu0 %vm788_vm0, %v338_v49 }
 0x330   : > { %4229 = vmatmul.mubr.msk.f32.gmra.mrb[56].mxu1 %vm788_vm0, %v338_v49  ;;  %2147 = vmatprep.mubr.f32.mxu0 %v5262_v20 }
 0x331   : > { %3530 = vmatprep.mubr.f32.mxu1 %v5262_v20 }
 0x333   : > { %4164 = vmatmul.mubr.msk.f32.gmra.mrb[58].mxu0 %vm788_vm0, %v343_v50 }
 0x334   : > { %4230 = vmatmul.mubr.msk.f32.gmra.mrb[58].mxu1 %vm788_vm0, %v343_v50  ;;  %2153 = vmatprep.mubr.f32.mxu0 %v5262_v20 }
 0x335   : > { %3536 = vmatprep.mubr.f32.mxu1 %v5262_v20 }
 0x337   : > { %4165 = vmatmul.mubr.msk.f32.gmra.mrb[60].mxu0 %vm788_vm0, %v348_v51 }
 0x338   : > { %4231 = vmatmul.mubr.msk.f32.gmra.mrb[60].mxu1 %vm788_vm0, %v348_v51  ;;  %2159 = vmatprep.mubr.f32.mxu0 %v5262_v20  ;;  %v503_v51 = vld [vmem:[#allocation2 + $0x9a8] sm:$0xff] }
 0x339   : > { %3542 = vmatprep.mubr.f32.mxu1 %v5262_v20 }
 0x33b   : > { %4166 = vmatmul.mubr.msk.f32.gmra.mrb[62].mxu0 %vm788_vm0, %v353_v52 }
 0x33c   : > { %4232 = vmatmul.mubr.msk.f32.gmra.mrb[62].mxu1 %vm788_vm0, %v353_v52  ;;  %2165 = vmatprep.mubr.f32.mxu0 %v5262_v20 }
 0x33d   : > { %3548 = vmatprep.mubr.f32.mxu1 %v5262_v20 }
 0x33f   : > { %4167 = vmatmul.mubr.msk.f32.gmra.mrb[64].mxu0 %vm788_vm0, %v358_v53 }
 0x340   : > { %4233 = vmatmul.mubr.msk.f32.gmra.mrb[64].mxu1 %vm788_vm0, %v358_v53  ;;  %2171 = vmatprep.mubr.f32.mxu0 %v5262_v20 }
 0x341   : > { %3554 = vmatprep.mubr.f32.mxu1 %v5262_v20 }
 0x343   : > { %4168 = vmatmul.mubr.msk.f32.gmra.mrb[66].mxu0 %vm788_vm0, %v363_v54 }
 0x344   : > { %4234 = vmatmul.mubr.msk.f32.gmra.mrb[66].mxu1 %vm788_vm0, %v363_v54  ;;  %2177 = vmatprep.mubr.f32.mxu0 %v5262_v20 }
 0x345   : > { %3560 = vmatprep.mubr.f32.mxu1 %v5262_v20 }
 0x347   : > { %4169 = vmatmul.mubr.msk.f32.gmra.mrb[68].mxu0 %vm788_vm0, %v368_v55 }
 0x348   : > { %4235 = vmatmul.mubr.msk.f32.gmra.mrb[68].mxu1 %vm788_vm0, %v368_v55  ;;  %2183 = vmatprep.mubr.f32.mxu0 %v5262_v20 }
 0x349   : > { %3566 = vmatprep.mubr.f32.mxu1 %v5262_v20 }
 0x34b   : > { %4170 = vmatmul.mubr.msk.f32.gmra.mrb[70].mxu0 %vm788_vm0, %v373_v56 }
 0x34c   : > { %4236 = vmatmul.mubr.msk.f32.gmra.mrb[70].mxu1 %vm788_vm0, %v373_v56  ;;  %2189 = vmatprep.mubr.f32.mxu0 %v5262_v20  ;;  %v508_v56 = vld [vmem:[#allocation2 + $0x9d0] sm:$0xff] }
 0x34d   : > { %3572 = vmatprep.mubr.f32.mxu1 %v5262_v20 }
 0x34f   : > { %4171 = vmatmul.mubr.msk.f32.gmra.mrb[72].mxu0 %vm788_vm0, %v378_v57 }
 0x350   : > { %4237 = vmatmul.mubr.msk.f32.gmra.mrb[72].mxu1 %vm788_vm0, %v378_v57  ;;  %2195 = vmatprep.mubr.f32.mxu0 %v5262_v20 }
 0x351   : > { %3578 = vmatprep.mubr.f32.mxu1 %v5262_v20 }
 0x353   : > { %4172 = vmatmul.mubr.msk.f32.gmra.mrb[74].mxu0 %vm788_vm0, %v383_v58 }
 0x354   : > { %4238 = vmatmul.mubr.msk.f32.gmra.mrb[74].mxu1 %vm788_vm0, %v383_v58  ;;  %2201 = vmatprep.mubr.f32.mxu0 %v5262_v20 }
 0x355   : > { %3584 = vmatprep.mubr.f32.mxu1 %v5262_v20 }
 0x357   : > { %4173 = vmatmul.mubr.msk.f32.gmra.mrb[76].mxu0 %vm788_vm0, %v388_v59 }
 0x358   : > { %4239 = vmatmul.mubr.msk.f32.gmra.mrb[76].mxu1 %vm788_vm0, %v388_v59  ;;  %2207 = vmatprep.mubr.f32.mxu0 %v5262_v20 }
 0x359   : > { %3590 = vmatprep.mubr.f32.mxu1 %v5262_v20 }
 0x35b   : > { %4174 = vmatmul.mubr.msk.f32.gmra.mrb[78].mxu0 %vm788_vm0, %v393_v60 }
 0x35c   : > { %4240 = vmatmul.mubr.msk.f32.gmra.mrb[78].mxu1 %vm788_vm0, %v393_v60  ;;  %2213 = vmatprep.mubr.f32.mxu0 %v5262_v20 }
 0x35d   : > { %3596 = vmatprep.mubr.f32.mxu1 %v5262_v20 }
 0x35f   : > { %4175 = vmatmul.mubr.msk.f32.gmra.mrb[80].mxu0 %vm788_vm0, %v398_v61 }
 0x360   : > { %4241 = vmatmul.mubr.msk.f32.gmra.mrb[80].mxu1 %vm788_vm0, %v398_v61  ;;  %2219 = vmatprep.mubr.f32.mxu0 %v5262_v20  ;;  %v513_v61 = vld [vmem:[#allocation2 + $0x9f8] sm:$0xff] }
 0x361   : > { %3602 = vmatprep.mubr.f32.mxu1 %v5262_v20 }
 0x363   : > { %4176 = vmatmul.mubr.msk.f32.gmra.mrb[82].mxu0 %vm788_vm0, %v403_v62 }
 0x364   : > { %4242 = vmatmul.mubr.msk.f32.gmra.mrb[82].mxu1 %vm788_vm0, %v403_v62  ;;  %2225 = vmatprep.mubr.f32.mxu0 %v5262_v20 }
 0x365   : > { %3608 = vmatprep.mubr.f32.mxu1 %v5262_v20 }
 0x367   : > { %4177 = vmatmul.mubr.msk.f32.gmra.mrb[84].mxu0 %vm788_vm0, %v408_v63 }
 0x368   : > { %4243 = vmatmul.mubr.msk.f32.gmra.mrb[84].mxu1 %vm788_vm0, %v408_v63  ;;  %2231 = vmatprep.mubr.f32.mxu0 %v5262_v20 }
 0x369   : > { %3614 = vmatprep.mubr.f32.mxu1 %v5262_v20 }
 0x36b   : > { %4178 = vmatmul.mubr.msk.f32.gmra.mrb[86].mxu0 %vm788_vm0, %v413_v0 }
 0x36c   : > { %4244 = vmatmul.mubr.msk.f32.gmra.mrb[86].mxu1 %vm788_vm0, %v413_v0  ;;  %2237 = vmatprep.mubr.f32.mxu0 %v5262_v20 }
 0x36d   : > { %3620 = vmatprep.mubr.f32.mxu1 %v5262_v20 }
 0x36f   : > { %4179 = vmatmul.mubr.msk.f32.gmra.mrb[88].mxu0 %vm788_vm0, %v418_v1 }
 0x370   : > { %4245 = vmatmul.mubr.msk.f32.gmra.mrb[88].mxu1 %vm788_vm0, %v418_v1  ;;  %2243 = vmatprep.mubr.f32.mxu0 %v5262_v20 }
 0x371   : > { %3626 = vmatprep.mubr.f32.mxu1 %v5262_v20 }
 0x373   : > { %4180 = vmatmul.mubr.msk.f32.gmra.mrb[90].mxu0 %vm788_vm0, %v423_v2 }
 0x374   : > { %4246 = vmatmul.mubr.msk.f32.gmra.mrb[90].mxu1 %vm788_vm0, %v423_v2  ;;  %2249 = vmatprep.mubr.f32.mxu0 %v5262_v20  ;;  %v518_v2 = vld [vmem:[#allocation2 + $0xa20] sm:$0xff] }
 0x375   : > { %3632 = vmatprep.mubr.f32.mxu1 %v5262_v20 }
 0x377   : > { %4181 = vmatmul.mubr.msk.f32.gmra.mrb[92].mxu0 %vm788_vm0, %v428_v3 }
 0x378   : > { %4247 = vmatmul.mubr.msk.f32.gmra.mrb[92].mxu1 %vm788_vm0, %v428_v3  ;;  %2255 = vmatprep.mubr.f32.mxu0 %v5262_v20 }
 0x379   : > { %3638 = vmatprep.mubr.f32.mxu1 %v5262_v20 }
 0x37b   : > { %4182 = vmatmul.mubr.msk.f32.gmra.mrb[94].mxu0 %vm788_vm0, %v433_v4 }
 0x37c   : > { %4248 = vmatmul.mubr.msk.f32.gmra.mrb[94].mxu1 %vm788_vm0, %v433_v4  ;;  %2261 = vmatprep.mubr.f32.mxu0 %v5262_v20 }
 0x37d   : > { %3644 = vmatprep.mubr.f32.mxu1 %v5262_v20 }
 0x37f   : > { %4183 = vmatmul.mubr.msk.f32.gmra.mrb[96].mxu0 %vm788_vm0, %v438_v5 }
 0x380   : > { %4249 = vmatmul.mubr.msk.f32.gmra.mrb[96].mxu1 %vm788_vm0, %v438_v5  ;;  %2267 = vmatprep.mubr.f32.mxu0 %v5262_v20 }
 0x381   : > { %3650 = vmatprep.mubr.f32.mxu1 %v5262_v20 }
 0x383   : > { %4184 = vmatmul.mubr.msk.f32.gmra.mrb[98].mxu0 %vm788_vm0, %v443_v6 }
 0x384   : > { %4250 = vmatmul.mubr.msk.f32.gmra.mrb[98].mxu1 %vm788_vm0, %v443_v6  ;;  %2273 = vmatprep.mubr.f32.mxu0 %v5262_v20 }
 0x385   : > { %3656 = vmatprep.mubr.f32.mxu1 %v5262_v20 }
 0x387   : > { %4185 = vmatmul.mubr.msk.f32.gmra.mrb[100].mxu0 %vm788_vm0, %v448_v7 }
 0x388   : > { %4251 = vmatmul.mubr.msk.f32.gmra.mrb[100].mxu1 %vm788_vm0, %v448_v7  ;;  %2279 = vmatprep.mubr.f32.mxu0 %v5262_v20  ;;  %v523_v7 = vld [vmem:[#allocation2 + $0xa48] sm:$0xff] }
 0x389   : > { %3662 = vmatprep.mubr.f32.mxu1 %v5262_v20 }
 0x38b   : > { %4186 = vmatmul.mubr.msk.f32.gmra.mrb[102].mxu0 %vm788_vm0, %v453_v8 }
 0x38c   : > { %4252 = vmatmul.mubr.msk.f32.gmra.mrb[102].mxu1 %vm788_vm0, %v453_v8  ;;  %2285 = vmatprep.mubr.f32.mxu0 %v5262_v20 }
 0x38d   : > { %3668 = vmatprep.mubr.f32.mxu1 %v5262_v20 }
 0x38f   : > { %4187 = vmatmul.mubr.msk.f32.gmra.mrb[104].mxu0 %vm788_vm0, %v458_v9 }
 0x390   : > { %4253 = vmatmul.mubr.msk.f32.gmra.mrb[104].mxu1 %vm788_vm0, %v458_v9  ;;  %2291 = vmatprep.mubr.f32.mxu0 %v5262_v20 }
 0x391   : > { %3674 = vmatprep.mubr.f32.mxu1 %v5262_v20 }
 0x392   : > { %v1975_v11 = vpop.f32.mrb[0].mxu0 }
 0x393   : > { %3753 = vst [vmem:[%s5919_s20] sm:$0xff] %v1975_v11  ;;  %v3358_v12 = vpop.f32.mrb[0].mxu1  ;;  %v1977_v13 = vpop.f32.mrb[1].mxu0  ;;  %4188 = vmatmul.mubr.msk.f32.gmra.mrb[106].mxu0 %vm788_vm0, %v463_v10 }
 0x394   : > { %3755 = vst [vmem:[%s5919_s20 + $0x10] sm:$0xff] %v3358_v12  ;;  %3754 = vst [vmem:[%s5919_s20 + $0x8] sm:$0xff] %v1977_v13  ;;  %v3360_v14 = vpop.f32.mrb[1].mxu1  ;;  %4254 = vmatmul.mubr.msk.f32.gmra.mrb[106].mxu1 %vm788_vm0, %v463_v10  ;;  %2297 = vmatprep.mubr.f32.mxu0 %v5262_v20 }
 0x395   : > { %3756 = vst [vmem:[%s5919_s20 + $0x18] sm:$0xff] %v3360_v14  ;;  %3680 = vmatprep.mubr.f32.mxu1 %v5262_v20 }
 0x396   : > { %v1981_v16 = vpop.f32.mrb[2].mxu0 }
 0x397   : > { %3757 = vst [vmem:[%s5919_s20 + $0x20] sm:$0xff] %v1981_v16  ;;  %v3364_v17 = vpop.f32.mrb[2].mxu1  ;;  %v1983_v18 = vpop.f32.mrb[3].mxu0  ;;  %4189 = vmatmul.mubr.msk.f32.gmra.mrb[108].mxu0 %vm788_vm0, %v468_v15 }
 0x398   : > { %3759 = vst [vmem:[%s5919_s20 + $0x30] sm:$0xff] %v3364_v17  ;;  %3758 = vst [vmem:[%s5919_s20 + $0x28] sm:$0xff] %v1983_v18  ;;  %v3366_v19 = vpop.f32.mrb[3].mxu1  ;;  %4255 = vmatmul.mubr.msk.f32.gmra.mrb[108].mxu1 %vm788_vm0, %v468_v15  ;;  %2303 = vmatprep.mubr.f32.mxu0 %v5262_v20 }
 0x399   : > { %3760 = vst [vmem:[%s5919_s20 + $0x38] sm:$0xff] %v3366_v19  ;;  %3686 = vmatprep.mubr.f32.mxu1 %v5262_v20 }
 0x39a   : > { %v1987_v22 = vpop.f32.mrb[4].mxu0 }
 0x39b   : > { %3761 = vst [vmem:[%s5919_s20 + $0x40] sm:$0xff] %v1987_v22  ;;  %v3370_v23 = vpop.f32.mrb[4].mxu1  ;;  %v1989_v24 = vpop.f32.mrb[5].mxu0  ;;  %4190 = vmatmul.mubr.msk.f32.gmra.mrb[110].mxu0 %vm788_vm0, %v473_v21 }
 0x39c   : > { %3763 = vst [vmem:[%s5919_s20 + $0x50] sm:$0xff] %v3370_v23  ;;  %3762 = vst [vmem:[%s5919_s20 + $0x48] sm:$0xff] %v1989_v24  ;;  %v3372_v25 = vpop.f32.mrb[5].mxu1  ;;  %4256 = vmatmul.mubr.msk.f32.gmra.mrb[110].mxu1 %vm788_vm0, %v473_v21  ;;  %2309 = vmatprep.mubr.f32.mxu0 %v5262_v20 }
 0x39d   : > { %3764 = vst [vmem:[%s5919_s20 + $0x58] sm:$0xff] %v3372_v25  ;;  %3692 = vmatprep.mubr.f32.mxu1 %v5262_v20 }
 0x39e   : > { %v1993_v27 = vpop.f32.mrb[6].mxu0 }
 0x39f   : > { %3765 = vst [vmem:[%s5919_s20 + $0x60] sm:$0xff] %v1993_v27  ;;  %v3376_v28 = vpop.f32.mrb[6].mxu1  ;;  %v1995_v29 = vpop.f32.mrb[7].mxu0  ;;  %4191 = vmatmul.mubr.msk.f32.gmra.mrb[112].mxu0 %vm788_vm0, %v478_v26 }
 0x3a0   : > { %3767 = vst [vmem:[%s5919_s20 + $0x70] sm:$0xff] %v3376_v28  ;;  %3766 = vst [vmem:[%s5919_s20 + $0x68] sm:$0xff] %v1995_v29  ;;  %v3378_v30 = vpop.f32.mrb[7].mxu1  ;;  %4257 = vmatmul.mubr.msk.f32.gmra.mrb[112].mxu1 %vm788_vm0, %v478_v26  ;;  %2315 = vmatprep.mubr.f32.mxu0 %v5262_v20 }
 0x3a1   : > { %3768 = vst [vmem:[%s5919_s20 + $0x78] sm:$0xff] %v3378_v30  ;;  %3698 = vmatprep.mubr.f32.mxu1 %v5262_v20 }
 0x3a2   : > { %v1999_v32 = vpop.f32.mrb[8].mxu0 }
 0x3a3   : > { %3769 = vst [vmem:[%s5919_s20 + $0x80] sm:$0xff] %v1999_v32  ;;  %v3382_v33 = vpop.f32.mrb[8].mxu1  ;;  %v2001_v34 = vpop.f32.mrb[9].mxu0  ;;  %4192 = vmatmul.mubr.msk.f32.gmra.mrb[114].mxu0 %vm788_vm0, %v483_v31 }
 0x3a4   : > { %3771 = vst [vmem:[%s5919_s20 + $0x90] sm:$0xff] %v3382_v33  ;;  %3770 = vst [vmem:[%s5919_s20 + $0x88] sm:$0xff] %v2001_v34  ;;  %v3384_v35 = vpop.f32.mrb[9].mxu1  ;;  %4258 = vmatmul.mubr.msk.f32.gmra.mrb[114].mxu1 %vm788_vm0, %v483_v31  ;;  %2321 = vmatprep.mubr.f32.mxu0 %v5262_v20 }
 0x3a5   : > { %3772 = vst [vmem:[%s5919_s20 + $0x98] sm:$0xff] %v3384_v35  ;;  %3704 = vmatprep.mubr.f32.mxu1 %v5262_v20 }
 0x3a6   : > { %v2005_v37 = vpop.f32.mrb[10].mxu0 }
 0x3a7   : > { %3773 = vst [vmem:[%s5919_s20 + $0xa0] sm:$0xff] %v2005_v37  ;;  %v3388_v38 = vpop.f32.mrb[10].mxu1  ;;  %v2007_v39 = vpop.f32.mrb[11].mxu0  ;;  %4193 = vmatmul.mubr.msk.f32.gmra.mrb[116].mxu0 %vm788_vm0, %v488_v36 }
 0x3a8   : > { %3775 = vst [vmem:[%s5919_s20 + $0xb0] sm:$0xff] %v3388_v38  ;;  %3774 = vst [vmem:[%s5919_s20 + $0xa8] sm:$0xff] %v2007_v39  ;;  %v3390_v40 = vpop.f32.mrb[11].mxu1  ;;  %4259 = vmatmul.mubr.msk.f32.gmra.mrb[116].mxu1 %vm788_vm0, %v488_v36  ;;  %2327 = vmatprep.mubr.f32.mxu0 %v5262_v20 }
 0x3a9   : > { %3776 = vst [vmem:[%s5919_s20 + $0xb8] sm:$0xff] %v3390_v40  ;;  %3710 = vmatprep.mubr.f32.mxu1 %v5262_v20 }
 0x3aa   : > { %v2011_v42 = vpop.f32.mrb[12].mxu0 }
 0x3ab   : > { %3777 = vst [vmem:[%s5919_s20 + $0xc0] sm:$0xff] %v2011_v42  ;;  %v3394_v43 = vpop.f32.mrb[12].mxu1  ;;  %v2013_v44 = vpop.f32.mrb[13].mxu0  ;;  %4194 = vmatmul.mubr.msk.f32.gmra.mrb[118].mxu0 %vm788_vm0, %v493_v41 }
 0x3ac   : > { %3779 = vst [vmem:[%s5919_s20 + $0xd0] sm:$0xff] %v3394_v43  ;;  %3778 = vst [vmem:[%s5919_s20 + $0xc8] sm:$0xff] %v2013_v44  ;;  %v3396_v45 = vpop.f32.mrb[13].mxu1  ;;  %4260 = vmatmul.mubr.msk.f32.gmra.mrb[118].mxu1 %vm788_vm0, %v493_v41  ;;  %2333 = vmatprep.mubr.f32.mxu0 %v5262_v20 }
 0x3ad   : > { %3780 = vst [vmem:[%s5919_s20 + $0xd8] sm:$0xff] %v3396_v45  ;;  %3716 = vmatprep.mubr.f32.mxu1 %v5262_v20 }
 0x3ae   : > { %v2017_v47 = vpop.f32.mrb[14].mxu0 }
 0x3af   : > { %3781 = vst [vmem:[%s5919_s20 + $0xe0] sm:$0xff] %v2017_v47  ;;  %v3400_v48 = vpop.f32.mrb[14].mxu1  ;;  %v2019_v49 = vpop.f32.mrb[15].mxu0  ;;  %4195 = vmatmul.mubr.msk.f32.gmra.mrb[120].mxu0 %vm788_vm0, %v498_v46 }
 0x3b0   : > { %3783 = vst [vmem:[%s5919_s20 + $0xf0] sm:$0xff] %v3400_v48  ;;  %3782 = vst [vmem:[%s5919_s20 + $0xe8] sm:$0xff] %v2019_v49  ;;  %v3402_v50 = vpop.f32.mrb[15].mxu1  ;;  %4261 = vmatmul.mubr.msk.f32.gmra.mrb[120].mxu1 %vm788_vm0, %v498_v46  ;;  %2339 = vmatprep.mubr.f32.mxu0 %v5262_v20 }
 0x3b1   : > { %3784 = vst [vmem:[%s5919_s20 + $0xf8] sm:$0xff] %v3402_v50  ;;  %3722 = vmatprep.mubr.f32.mxu1 %v5262_v20 }
 0x3b2   : > { %v2023_v52 = vpop.f32.mrb[16].mxu0 }
 0x3b3   : > { %3785 = vst [vmem:[%s5919_s20 + $0x100] sm:$0xff] %v2023_v52  ;;  %v3406_v53 = vpop.f32.mrb[16].mxu1  ;;  %v2025_v54 = vpop.f32.mrb[17].mxu0  ;;  %4196 = vmatmul.mubr.msk.f32.gmra.mrb[122].mxu0 %vm788_vm0, %v503_v51 }
 0x3b4   : > { %3787 = vst [vmem:[%s5919_s20 + $0x110] sm:$0xff] %v3406_v53  ;;  %3786 = vst [vmem:[%s5919_s20 + $0x108] sm:$0xff] %v2025_v54  ;;  %v3408_v55 = vpop.f32.mrb[17].mxu1  ;;  %4262 = vmatmul.mubr.msk.f32.gmra.mrb[122].mxu1 %vm788_vm0, %v503_v51  ;;  %2345 = vmatprep.mubr.f32.mxu0 %v5262_v20 }
 0x3b5   : > { %3788 = vst [vmem:[%s5919_s20 + $0x118] sm:$0xff] %v3408_v55  ;;  %3728 = vmatprep.mubr.f32.mxu1 %v5262_v20 }
 0x3b6   : > { %v2029_v57 = vpop.f32.mrb[18].mxu0 }
 0x3b7   : > { %3789 = vst [vmem:[%s5919_s20 + $0x120] sm:$0xff] %v2029_v57  ;;  %v3412_v58 = vpop.f32.mrb[18].mxu1  ;;  %v2031_v59 = vpop.f32.mrb[19].mxu0  ;;  %4197 = vmatmul.mubr.msk.f32.gmra.mrb[124].mxu0 %vm788_vm0, %v508_v56 }
 0x3b8   : > { %3791 = vst [vmem:[%s5919_s20 + $0x130] sm:$0xff] %v3412_v58  ;;  %3790 = vst [vmem:[%s5919_s20 + $0x128] sm:$0xff] %v2031_v59  ;;  %v3414_v60 = vpop.f32.mrb[19].mxu1  ;;  %4263 = vmatmul.mubr.msk.f32.gmra.mrb[124].mxu1 %vm788_vm0, %v508_v56  ;;  %2351 = vmatprep.mubr.f32.mxu0 %v5262_v20 }
 0x3b9   : > { %3792 = vst [vmem:[%s5919_s20 + $0x138] sm:$0xff] %v3414_v60  ;;  %3734 = vmatprep.mubr.f32.mxu1 %v5262_v20 }
 0x3ba   : > { %v2035_v62 = vpop.f32.mrb[20].mxu0 }
 0x3bb   : > { %3793 = vst [vmem:[%s5919_s20 + $0x140] sm:$0xff] %v2035_v62  ;;  %v3418_v63 = vpop.f32.mrb[20].mxu1  ;;  %v2037_v0 = vpop.f32.mrb[21].mxu0  ;;  %4198 = vmatmul.mubr.msk.f32.gmra.mrb[126].mxu0 %vm788_vm0, %v513_v61 }
 0x3bc   : > { %3795 = vst [vmem:[%s5919_s20 + $0x150] sm:$0xff] %v3418_v63  ;;  %3794 = vst [vmem:[%s5919_s20 + $0x148] sm:$0xff] %v2037_v0  ;;  %v3420_v1 = vpop.f32.mrb[21].mxu1  ;;  %4264 = vmatmul.mubr.msk.f32.gmra.mrb[126].mxu1 %vm788_vm0, %v513_v61  ;;  %2357 = vmatprep.mubr.f32.mxu0 %v5262_v20 }
 0x3bd   : > { %3796 = vst [vmem:[%s5919_s20 + $0x158] sm:$0xff] %v3420_v1  ;;  %3740 = vmatprep.mubr.f32.mxu1 %v5262_v20 }
 0x3be   : > { %v2041_v3 = vpop.f32.mrb[22].mxu0 }
 0x3bf   : > { %3797 = vst [vmem:[%s5919_s20 + $0x160] sm:$0xff] %v2041_v3  ;;  %v3424_v4 = vpop.f32.mrb[22].mxu1  ;;  %v2043_v5 = vpop.f32.mrb[23].mxu0  ;;  %4199 = vmatmul.mubr.msk.f32.gmra.mrb[128].mxu0 %vm788_vm0, %v518_v2 }
 0x3c0   : > { %3799 = vst [vmem:[%s5919_s20 + $0x170] sm:$0xff] %v3424_v4  ;;  %3798 = vst [vmem:[%s5919_s20 + $0x168] sm:$0xff] %v2043_v5  ;;  %v3426_v6 = vpop.f32.mrb[23].mxu1  ;;  %4265 = vmatmul.mubr.msk.f32.gmra.mrb[128].mxu1 %vm788_vm0, %v518_v2  ;;  %2363 = vmatprep.mubr.f32.mxu0 %v5262_v20 }
 0x3c1   : > { %3800 = vst [vmem:[%s5919_s20 + $0x178] sm:$0xff] %v3426_v6  ;;  %3746 = vmatprep.mubr.f32.mxu1 %v5262_v20 }
 0x3c2   : > { %v2047_v8 = vpop.f32.mrb[24].mxu0 }
 0x3c3   : > { %3801 = vst [vmem:[%s5919_s20 + $0x180] sm:$0xff] %v2047_v8  ;;  %v3430_v9 = vpop.f32.mrb[24].mxu1  ;;  %v2049_v10 = vpop.f32.mrb[25].mxu0  ;;  %4200 = vmatmul.mubr.msk.f32.gmra.mrb[130].mxu0 %vm788_vm0, %v523_v7 }
 0x3c4   : > { %3803 = vst [vmem:[%s5919_s20 + $0x190] sm:$0xff] %v3430_v9  ;;  %3802 = vst [vmem:[%s5919_s20 + $0x188] sm:$0xff] %v2049_v10  ;;  %v3432_v11 = vpop.f32.mrb[25].mxu1  ;;  %4266 = vmatmul.mubr.msk.f32.gmra.mrb[130].mxu1 %vm788_vm0, %v523_v7 }
 0x3c5   : > { %3804 = vst [vmem:[%s5919_s20 + $0x198] sm:$0xff] %v3432_v11 }
 0x3c6   : > { %v2053_v12 = vpop.f32.mrb[26].mxu0 }
 0x3c7   : > { %3805 = vst [vmem:[%s5919_s20 + $0x1a0] sm:$0xff] %v2053_v12  ;;  %v3436_v20 = vpop.f32.mrb[26].mxu1  ;;  %v2055_v13 = vpop.f32.mrb[27].mxu0 }
 0x3c8   : > { %3807 = vst [vmem:[%s5919_s20 + $0x1b0] sm:$0xff] %v3436_v20  ;;  %3806 = vst [vmem:[%s5919_s20 + $0x1a8] sm:$0xff] %v2055_v13  ;;  %v3438_v14 = vpop.f32.mrb[27].mxu1 }
 0x3c9   : > { %3808 = vst [vmem:[%s5919_s20 + $0x1b8] sm:$0xff] %v3438_v14 }
 0x3ca   : > { %v2059_v15 = vpop.f32.mrb[28].mxu0 }
 0x3cb   : > { %3809 = vst [vmem:[%s5919_s20 + $0x1c0] sm:$0xff] %v2059_v15  ;;  %v3442_v16 = vpop.f32.mrb[28].mxu1  ;;  %v2061_v17 = vpop.f32.mrb[29].mxu0 }
 0x3cc   : > { %3811 = vst [vmem:[%s5919_s20 + $0x1d0] sm:$0xff] %v3442_v16  ;;  %3810 = vst [vmem:[%s5919_s20 + $0x1c8] sm:$0xff] %v2061_v17  ;;  %v3444_v18 = vpop.f32.mrb[29].mxu1 }
 0x3cd   : > { %3812 = vst [vmem:[%s5919_s20 + $0x1d8] sm:$0xff] %v3444_v18 }
 0x3ce   : > { %v2065_v19 = vpop.f32.mrb[30].mxu0 }
 0x3cf   : > { %3813 = vst [vmem:[%s5919_s20 + $0x1e0] sm:$0xff] %v2065_v19  ;;  %v3448_v21 = vpop.f32.mrb[30].mxu1  ;;  %v2067_v22 = vpop.f32.mrb[31].mxu0 }
 0x3d0   : > { %3815 = vst [vmem:[%s5919_s20 + $0x1f0] sm:$0xff] %v3448_v21  ;;  %3814 = vst [vmem:[%s5919_s20 + $0x1e8] sm:$0xff] %v2067_v22  ;;  %v3450_v23 = vpop.f32.mrb[31].mxu1 }
 0x3d1   : > { %3816 = vst [vmem:[%s5919_s20 + $0x1f8] sm:$0xff] %v3450_v23 }
 0x3d2   : > { %v2071_v24 = vpop.f32.mrb[32].mxu0 }
 0x3d3   : > { %3817 = vst [vmem:[%s5919_s20 + $0x200] sm:$0xff] %v2071_v24  ;;  %v3454_v25 = vpop.f32.mrb[32].mxu1  ;;  %v2073_v26 = vpop.f32.mrb[33].mxu0 }
 0x3d4   : > { %3819 = vst [vmem:[%s5919_s20 + $0x210] sm:$0xff] %v3454_v25  ;;  %3818 = vst [vmem:[%s5919_s20 + $0x208] sm:$0xff] %v2073_v26  ;;  %v3456_v27 = vpop.f32.mrb[33].mxu1 }
 0x3d5   : > { %3820 = vst [vmem:[%s5919_s20 + $0x218] sm:$0xff] %v3456_v27 }
 0x3d6   : > { %v2077_v28 = vpop.f32.mrb[34].mxu0 }
 0x3d7   : > { %3821 = vst [vmem:[%s5919_s20 + $0x220] sm:$0xff] %v2077_v28  ;;  %v3460_v29 = vpop.f32.mrb[34].mxu1  ;;  %v2079_v30 = vpop.f32.mrb[35].mxu0 }
 0x3d8   : > { %3823 = vst [vmem:[%s5919_s20 + $0x230] sm:$0xff] %v3460_v29  ;;  %3822 = vst [vmem:[%s5919_s20 + $0x228] sm:$0xff] %v2079_v30  ;;  %v3462_v31 = vpop.f32.mrb[35].mxu1 }
 0x3d9   : > { %3824 = vst [vmem:[%s5919_s20 + $0x238] sm:$0xff] %v3462_v31 }
 0x3da   : > { %v2083_v32 = vpop.f32.mrb[36].mxu0 }
 0x3db   : > { %3825 = vst [vmem:[%s5919_s20 + $0x240] sm:$0xff] %v2083_v32  ;;  %v3466_v33 = vpop.f32.mrb[36].mxu1  ;;  %v2085_v34 = vpop.f32.mrb[37].mxu0 }
 0x3dc   : > { %3827 = vst [vmem:[%s5919_s20 + $0x250] sm:$0xff] %v3466_v33  ;;  %3826 = vst [vmem:[%s5919_s20 + $0x248] sm:$0xff] %v2085_v34  ;;  %v3468_v35 = vpop.f32.mrb[37].mxu1 }
 0x3dd   : > { %3828 = vst [vmem:[%s5919_s20 + $0x258] sm:$0xff] %v3468_v35 }
 0x3de   : > { %v2089_v36 = vpop.f32.mrb[38].mxu0 }
 0x3df   : > { %3829 = vst [vmem:[%s5919_s20 + $0x260] sm:$0xff] %v2089_v36  ;;  %v3472_v37 = vpop.f32.mrb[38].mxu1  ;;  %v2091_v38 = vpop.f32.mrb[39].mxu0 }
 0x3e0   : > { %3831 = vst [vmem:[%s5919_s20 + $0x270] sm:$0xff] %v3472_v37  ;;  %3830 = vst [vmem:[%s5919_s20 + $0x268] sm:$0xff] %v2091_v38  ;;  %v3474_v39 = vpop.f32.mrb[39].mxu1 }
 0x3e1   : > { %3832 = vst [vmem:[%s5919_s20 + $0x278] sm:$0xff] %v3474_v39 }
 0x3e2   : > { %v2095_v40 = vpop.f32.mrb[40].mxu0 }
 0x3e3   : > { %3833 = vst [vmem:[%s5919_s20 + $0x280] sm:$0xff] %v2095_v40  ;;  %v3478_v41 = vpop.f32.mrb[40].mxu1  ;;  %v2097_v42 = vpop.f32.mrb[41].mxu0 }
 0x3e4   : > { %3835 = vst [vmem:[%s5919_s20 + $0x290] sm:$0xff] %v3478_v41  ;;  %3834 = vst [vmem:[%s5919_s20 + $0x288] sm:$0xff] %v2097_v42  ;;  %v3480_v43 = vpop.f32.mrb[41].mxu1 }
 0x3e5   : > { %3836 = vst [vmem:[%s5919_s20 + $0x298] sm:$0xff] %v3480_v43 }
 0x3e6   : > { %v2101_v44 = vpop.f32.mrb[42].mxu0 }
 0x3e7   : > { %3837 = vst [vmem:[%s5919_s20 + $0x2a0] sm:$0xff] %v2101_v44  ;;  %v3484_v45 = vpop.f32.mrb[42].mxu1  ;;  %v2103_v46 = vpop.f32.mrb[43].mxu0 }
 0x3e8   : > { %3839 = vst [vmem:[%s5919_s20 + $0x2b0] sm:$0xff] %v3484_v45  ;;  %3838 = vst [vmem:[%s5919_s20 + $0x2a8] sm:$0xff] %v2103_v46  ;;  %v3486_v47 = vpop.f32.mrb[43].mxu1 }
 0x3e9   : > { %3840 = vst [vmem:[%s5919_s20 + $0x2b8] sm:$0xff] %v3486_v47 }
 0x3ea   : > { %v2107_v48 = vpop.f32.mrb[44].mxu0 }
 0x3eb   : > { %3841 = vst [vmem:[%s5919_s20 + $0x2c0] sm:$0xff] %v2107_v48  ;;  %v3490_v49 = vpop.f32.mrb[44].mxu1  ;;  %v2109_v50 = vpop.f32.mrb[45].mxu0 }
 0x3ec   : > { %3843 = vst [vmem:[%s5919_s20 + $0x2d0] sm:$0xff] %v3490_v49  ;;  %3842 = vst [vmem:[%s5919_s20 + $0x2c8] sm:$0xff] %v2109_v50  ;;  %v3492_v51 = vpop.f32.mrb[45].mxu1 }
 0x3ed   : > { %3844 = vst [vmem:[%s5919_s20 + $0x2d8] sm:$0xff] %v3492_v51 }
 0x3ee   : > { %v2113_v52 = vpop.f32.mrb[46].mxu0 }
 0x3ef   : > { %3845 = vst [vmem:[%s5919_s20 + $0x2e0] sm:$0xff] %v2113_v52  ;;  %v3496_v53 = vpop.f32.mrb[46].mxu1  ;;  %v2115_v54 = vpop.f32.mrb[47].mxu0 }
 0x3f0   : > { %3847 = vst [vmem:[%s5919_s20 + $0x2f0] sm:$0xff] %v3496_v53  ;;  %3846 = vst [vmem:[%s5919_s20 + $0x2e8] sm:$0xff] %v2115_v54  ;;  %v3498_v55 = vpop.f32.mrb[47].mxu1 }
 0x3f1   : > { %3848 = vst [vmem:[%s5919_s20 + $0x2f8] sm:$0xff] %v3498_v55 }
 0x3f2   : > { %v2119_v56 = vpop.f32.mrb[48].mxu0 }
 0x3f3   : > { %3849 = vst [vmem:[%s5919_s20 + $0x300] sm:$0xff] %v2119_v56  ;;  %v3502_v57 = vpop.f32.mrb[48].mxu1  ;;  %v2121_v58 = vpop.f32.mrb[49].mxu0 }
 0x3f4   : > { %3851 = vst [vmem:[%s5919_s20 + $0x310] sm:$0xff] %v3502_v57  ;;  %3850 = vst [vmem:[%s5919_s20 + $0x308] sm:$0xff] %v2121_v58  ;;  %v3504_v59 = vpop.f32.mrb[49].mxu1 }
 0x3f5   : > { %3852 = vst [vmem:[%s5919_s20 + $0x318] sm:$0xff] %v3504_v59 }
 0x3f6   : > { %v2125_v60 = vpop.f32.mrb[50].mxu0 }
 0x3f7   : > { %3853 = vst [vmem:[%s5919_s20 + $0x320] sm:$0xff] %v2125_v60  ;;  %v3508_v61 = vpop.f32.mrb[50].mxu1  ;;  %v2127_v62 = vpop.f32.mrb[51].mxu0 }
 0x3f8   : > { %3855 = vst [vmem:[%s5919_s20 + $0x330] sm:$0xff] %v3508_v61  ;;  %3854 = vst [vmem:[%s5919_s20 + $0x328] sm:$0xff] %v2127_v62  ;;  %v3510_v63 = vpop.f32.mrb[51].mxu1 }
 0x3f9   : > { %3856 = vst [vmem:[%s5919_s20 + $0x338] sm:$0xff] %v3510_v63 }
 0x3fa   : > { %v2131_v0 = vpop.f32.mrb[52].mxu0 }
 0x3fb   : > { %3857 = vst [vmem:[%s5919_s20 + $0x340] sm:$0xff] %v2131_v0  ;;  %v3514_v1 = vpop.f32.mrb[52].mxu1  ;;  %v2133_v2 = vpop.f32.mrb[53].mxu0 }
 0x3fc   : > { %3859 = vst [vmem:[%s5919_s20 + $0x350] sm:$0xff] %v3514_v1  ;;  %3858 = vst [vmem:[%s5919_s20 + $0x348] sm:$0xff] %v2133_v2  ;;  %v3516_v3 = vpop.f32.mrb[53].mxu1 }
 0x3fd   : > { %3860 = vst [vmem:[%s5919_s20 + $0x358] sm:$0xff] %v3516_v3 }
 0x3fe   : > { %v2137_v4 = vpop.f32.mrb[54].mxu0 }
 0x3ff   : > { %3861 = vst [vmem:[%s5919_s20 + $0x360] sm:$0xff] %v2137_v4  ;;  %v3520_v5 = vpop.f32.mrb[54].mxu1  ;;  %v2139_v6 = vpop.f32.mrb[55].mxu0 }
 0x400   : > { %3863 = vst [vmem:[%s5919_s20 + $0x370] sm:$0xff] %v3520_v5  ;;  %3862 = vst [vmem:[%s5919_s20 + $0x368] sm:$0xff] %v2139_v6  ;;  %v3522_v7 = vpop.f32.mrb[55].mxu1 }
 0x401   : > { %3864 = vst [vmem:[%s5919_s20 + $0x378] sm:$0xff] %v3522_v7 }
 0x402   : > { %v2143_v8 = vpop.f32.mrb[56].mxu0 }
 0x403   : > { %3865 = vst [vmem:[%s5919_s20 + $0x380] sm:$0xff] %v2143_v8  ;;  %v3526_v9 = vpop.f32.mrb[56].mxu1  ;;  %v2145_v10 = vpop.f32.mrb[57].mxu0 }
 0x404   : > { %3867 = vst [vmem:[%s5919_s20 + $0x390] sm:$0xff] %v3526_v9  ;;  %3866 = vst [vmem:[%s5919_s20 + $0x388] sm:$0xff] %v2145_v10  ;;  %v3528_v11 = vpop.f32.mrb[57].mxu1 }
 0x405   : > { %3868 = vst [vmem:[%s5919_s20 + $0x398] sm:$0xff] %v3528_v11 }
 0x406   : > { %v2149_v12 = vpop.f32.mrb[58].mxu0 }
 0x407   : > { %3869 = vst [vmem:[%s5919_s20 + $0x3a0] sm:$0xff] %v2149_v12  ;;  %v3532_v20 = vpop.f32.mrb[58].mxu1  ;;  %v2151_v13 = vpop.f32.mrb[59].mxu0 }
 0x408   : > { %3871 = vst [vmem:[%s5919_s20 + $0x3b0] sm:$0xff] %v3532_v20  ;;  %3870 = vst [vmem:[%s5919_s20 + $0x3a8] sm:$0xff] %v2151_v13  ;;  %v3534_v14 = vpop.f32.mrb[59].mxu1 }
 0x409   : > { %3872 = vst [vmem:[%s5919_s20 + $0x3b8] sm:$0xff] %v3534_v14 }
 0x40a   : > { %v2155_v15 = vpop.f32.mrb[60].mxu0 }
 0x40b   : > { %3873 = vst [vmem:[%s5919_s20 + $0x3c0] sm:$0xff] %v2155_v15  ;;  %v3538_v16 = vpop.f32.mrb[60].mxu1  ;;  %v2157_v17 = vpop.f32.mrb[61].mxu0 }
 0x40c   : > { %3875 = vst [vmem:[%s5919_s20 + $0x3d0] sm:$0xff] %v3538_v16  ;;  %3874 = vst [vmem:[%s5919_s20 + $0x3c8] sm:$0xff] %v2157_v17  ;;  %v3540_v18 = vpop.f32.mrb[61].mxu1 }
 0x40d   : > { %3876 = vst [vmem:[%s5919_s20 + $0x3d8] sm:$0xff] %v3540_v18 }
 0x40e   : > { %v2161_v19 = vpop.f32.mrb[62].mxu0 }
 0x40f   : > { %3877 = vst [vmem:[%s5919_s20 + $0x3e0] sm:$0xff] %v2161_v19  ;;  %v3544_v21 = vpop.f32.mrb[62].mxu1  ;;  %v2163_v22 = vpop.f32.mrb[63].mxu0 }
 0x410   : > { %3879 = vst [vmem:[%s5919_s20 + $0x3f0] sm:$0xff] %v3544_v21  ;;  %3878 = vst [vmem:[%s5919_s20 + $0x3e8] sm:$0xff] %v2163_v22  ;;  %v3546_v23 = vpop.f32.mrb[63].mxu1 }
 0x411   : > { %3880 = vst [vmem:[%s5919_s20 + $0x3f8] sm:$0xff] %v3546_v23 }
 0x412   : > { %v2167_v24 = vpop.f32.mrb[64].mxu0 }
 0x413   : > { %3881 = vst [vmem:[%s5919_s20 + $0x400] sm:$0xff] %v2167_v24  ;;  %v3550_v25 = vpop.f32.mrb[64].mxu1  ;;  %v2169_v26 = vpop.f32.mrb[65].mxu0 }
 0x414   : > { %3883 = vst [vmem:[%s5919_s20 + $0x410] sm:$0xff] %v3550_v25  ;;  %3882 = vst [vmem:[%s5919_s20 + $0x408] sm:$0xff] %v2169_v26  ;;  %v3552_v27 = vpop.f32.mrb[65].mxu1 }
 0x415   : > { %3884 = vst [vmem:[%s5919_s20 + $0x418] sm:$0xff] %v3552_v27 }
 0x416   : > { %v2173_v28 = vpop.f32.mrb[66].mxu0 }
 0x417   : > { %3885 = vst [vmem:[%s5919_s20 + $0x420] sm:$0xff] %v2173_v28  ;;  %v3556_v29 = vpop.f32.mrb[66].mxu1  ;;  %v2175_v30 = vpop.f32.mrb[67].mxu0 }
 0x418   : > { %3887 = vst [vmem:[%s5919_s20 + $0x430] sm:$0xff] %v3556_v29  ;;  %3886 = vst [vmem:[%s5919_s20 + $0x428] sm:$0xff] %v2175_v30  ;;  %v3558_v31 = vpop.f32.mrb[67].mxu1 }
 0x419   : > { %3888 = vst [vmem:[%s5919_s20 + $0x438] sm:$0xff] %v3558_v31 }
 0x41a   : > { %v2179_v32 = vpop.f32.mrb[68].mxu0 }
 0x41b   : > { %3889 = vst [vmem:[%s5919_s20 + $0x440] sm:$0xff] %v2179_v32  ;;  %v3562_v33 = vpop.f32.mrb[68].mxu1  ;;  %v2181_v34 = vpop.f32.mrb[69].mxu0 }
 0x41c   : > { %3891 = vst [vmem:[%s5919_s20 + $0x450] sm:$0xff] %v3562_v33  ;;  %3890 = vst [vmem:[%s5919_s20 + $0x448] sm:$0xff] %v2181_v34  ;;  %v3564_v35 = vpop.f32.mrb[69].mxu1 }
 0x41d   : > { %3892 = vst [vmem:[%s5919_s20 + $0x458] sm:$0xff] %v3564_v35 }
 0x41e   : > { %v2185_v36 = vpop.f32.mrb[70].mxu0 }
 0x41f   : > { %3893 = vst [vmem:[%s5919_s20 + $0x460] sm:$0xff] %v2185_v36  ;;  %v3568_v37 = vpop.f32.mrb[70].mxu1  ;;  %v2187_v38 = vpop.f32.mrb[71].mxu0 }
 0x420   : > { %3895 = vst [vmem:[%s5919_s20 + $0x470] sm:$0xff] %v3568_v37  ;;  %3894 = vst [vmem:[%s5919_s20 + $0x468] sm:$0xff] %v2187_v38  ;;  %v3570_v39 = vpop.f32.mrb[71].mxu1 }
 0x421   : > { %3896 = vst [vmem:[%s5919_s20 + $0x478] sm:$0xff] %v3570_v39 }
 0x422   : > { %v2191_v40 = vpop.f32.mrb[72].mxu0 }
 0x423   : > { %3897 = vst [vmem:[%s5919_s20 + $0x480] sm:$0xff] %v2191_v40  ;;  %v3574_v41 = vpop.f32.mrb[72].mxu1  ;;  %v2193_v42 = vpop.f32.mrb[73].mxu0 }
 0x424   : > { %3899 = vst [vmem:[%s5919_s20 + $0x490] sm:$0xff] %v3574_v41  ;;  %3898 = vst [vmem:[%s5919_s20 + $0x488] sm:$0xff] %v2193_v42  ;;  %v3576_v43 = vpop.f32.mrb[73].mxu1 }
 0x425   : > { %3900 = vst [vmem:[%s5919_s20 + $0x498] sm:$0xff] %v3576_v43 }
 0x426   : > { %v2197_v44 = vpop.f32.mrb[74].mxu0 }
 0x427   : > { %3901 = vst [vmem:[%s5919_s20 + $0x4a0] sm:$0xff] %v2197_v44  ;;  %v3580_v45 = vpop.f32.mrb[74].mxu1  ;;  %v2199_v46 = vpop.f32.mrb[75].mxu0 }
 0x428   : > { %3903 = vst [vmem:[%s5919_s20 + $0x4b0] sm:$0xff] %v3580_v45  ;;  %3902 = vst [vmem:[%s5919_s20 + $0x4a8] sm:$0xff] %v2199_v46  ;;  %v3582_v47 = vpop.f32.mrb[75].mxu1 }
 0x429   : > { %3904 = vst [vmem:[%s5919_s20 + $0x4b8] sm:$0xff] %v3582_v47 }
 0x42a   : > { %v2203_v48 = vpop.f32.mrb[76].mxu0 }
 0x42b   : > { %3905 = vst [vmem:[%s5919_s20 + $0x4c0] sm:$0xff] %v2203_v48  ;;  %v3586_v49 = vpop.f32.mrb[76].mxu1  ;;  %v2205_v50 = vpop.f32.mrb[77].mxu0 }
 0x42c   : > { %3907 = vst [vmem:[%s5919_s20 + $0x4d0] sm:$0xff] %v3586_v49  ;;  %3906 = vst [vmem:[%s5919_s20 + $0x4c8] sm:$0xff] %v2205_v50  ;;  %v3588_v51 = vpop.f32.mrb[77].mxu1 }
 0x42d   : > { %3908 = vst [vmem:[%s5919_s20 + $0x4d8] sm:$0xff] %v3588_v51 }
 0x42e   : > { %v2209_v52 = vpop.f32.mrb[78].mxu0 }
 0x42f   : > { %3909 = vst [vmem:[%s5919_s20 + $0x4e0] sm:$0xff] %v2209_v52  ;;  %v3592_v53 = vpop.f32.mrb[78].mxu1  ;;  %v2211_v54 = vpop.f32.mrb[79].mxu0 }
 0x430   : > { %3911 = vst [vmem:[%s5919_s20 + $0x4f0] sm:$0xff] %v3592_v53  ;;  %3910 = vst [vmem:[%s5919_s20 + $0x4e8] sm:$0xff] %v2211_v54  ;;  %v3594_v55 = vpop.f32.mrb[79].mxu1 }
 0x431   : > { %3912 = vst [vmem:[%s5919_s20 + $0x4f8] sm:$0xff] %v3594_v55 }
 0x432   : > { %v2215_v56 = vpop.f32.mrb[80].mxu0 }
 0x433   : > { %3913 = vst [vmem:[%s5919_s20 + $0x500] sm:$0xff] %v2215_v56  ;;  %v3598_v57 = vpop.f32.mrb[80].mxu1  ;;  %v2217_v58 = vpop.f32.mrb[81].mxu0 }
 0x434   : > { %3915 = vst [vmem:[%s5919_s20 + $0x510] sm:$0xff] %v3598_v57  ;;  %3914 = vst [vmem:[%s5919_s20 + $0x508] sm:$0xff] %v2217_v58  ;;  %v3600_v59 = vpop.f32.mrb[81].mxu1 }
 0x435   : > { %3916 = vst [vmem:[%s5919_s20 + $0x518] sm:$0xff] %v3600_v59 }
 0x436   : > { %v2221_v60 = vpop.f32.mrb[82].mxu0 }
 0x437   : > { %3917 = vst [vmem:[%s5919_s20 + $0x520] sm:$0xff] %v2221_v60  ;;  %v3604_v61 = vpop.f32.mrb[82].mxu1  ;;  %v2223_v62 = vpop.f32.mrb[83].mxu0 }
 0x438   : > { %3919 = vst [vmem:[%s5919_s20 + $0x530] sm:$0xff] %v3604_v61  ;;  %3918 = vst [vmem:[%s5919_s20 + $0x528] sm:$0xff] %v2223_v62  ;;  %v3606_v63 = vpop.f32.mrb[83].mxu1 }
 0x439   : > { %3920 = vst [vmem:[%s5919_s20 + $0x538] sm:$0xff] %v3606_v63 }
 0x43a   : > { %v2227_v0 = vpop.f32.mrb[84].mxu0 }
 0x43b   : > { %3921 = vst [vmem:[%s5919_s20 + $0x540] sm:$0xff] %v2227_v0  ;;  %v3610_v1 = vpop.f32.mrb[84].mxu1  ;;  %v2229_v2 = vpop.f32.mrb[85].mxu0 }
 0x43c   : > { %3923 = vst [vmem:[%s5919_s20 + $0x550] sm:$0xff] %v3610_v1  ;;  %3922 = vst [vmem:[%s5919_s20 + $0x548] sm:$0xff] %v2229_v2  ;;  %v3612_v3 = vpop.f32.mrb[85].mxu1 }
 0x43d   : > { %3924 = vst [vmem:[%s5919_s20 + $0x558] sm:$0xff] %v3612_v3 }
 0x43e   : > { %v2233_v4 = vpop.f32.mrb[86].mxu0 }
 0x43f   : > { %3925 = vst [vmem:[%s5919_s20 + $0x560] sm:$0xff] %v2233_v4  ;;  %v3616_v5 = vpop.f32.mrb[86].mxu1  ;;  %v2235_v6 = vpop.f32.mrb[87].mxu0 }
 0x440   : > { %3927 = vst [vmem:[%s5919_s20 + $0x570] sm:$0xff] %v3616_v5  ;;  %3926 = vst [vmem:[%s5919_s20 + $0x568] sm:$0xff] %v2235_v6  ;;  %v3618_v7 = vpop.f32.mrb[87].mxu1 }
 0x441   : > { %3928 = vst [vmem:[%s5919_s20 + $0x578] sm:$0xff] %v3618_v7 }
 0x442   : > { %v2239_v8 = vpop.f32.mrb[88].mxu0 }
 0x443   : > { %3929 = vst [vmem:[%s5919_s20 + $0x580] sm:$0xff] %v2239_v8  ;;  %v3622_v9 = vpop.f32.mrb[88].mxu1  ;;  %v2241_v10 = vpop.f32.mrb[89].mxu0 }
 0x444   : > { %3931 = vst [vmem:[%s5919_s20 + $0x590] sm:$0xff] %v3622_v9  ;;  %3930 = vst [vmem:[%s5919_s20 + $0x588] sm:$0xff] %v2241_v10  ;;  %v3624_v11 = vpop.f32.mrb[89].mxu1 }
 0x445   : > { %3932 = vst [vmem:[%s5919_s20 + $0x598] sm:$0xff] %v3624_v11 }
 0x446   : > { %v2245_v12 = vpop.f32.mrb[90].mxu0 }
 0x447   : > { %3933 = vst [vmem:[%s5919_s20 + $0x5a0] sm:$0xff] %v2245_v12  ;;  %v3628_v20 = vpop.f32.mrb[90].mxu1  ;;  %v2247_v13 = vpop.f32.mrb[91].mxu0 }
 0x448   : > { %3935 = vst [vmem:[%s5919_s20 + $0x5b0] sm:$0xff] %v3628_v20  ;;  %3934 = vst [vmem:[%s5919_s20 + $0x5a8] sm:$0xff] %v2247_v13  ;;  %v3630_v14 = vpop.f32.mrb[91].mxu1 }
 0x449   : > { %3936 = vst [vmem:[%s5919_s20 + $0x5b8] sm:$0xff] %v3630_v14 }
 0x44a   : > { %v2251_v15 = vpop.f32.mrb[92].mxu0 }
 0x44b   : > { %3937 = vst [vmem:[%s5919_s20 + $0x5c0] sm:$0xff] %v2251_v15  ;;  %v3634_v16 = vpop.f32.mrb[92].mxu1  ;;  %v2253_v17 = vpop.f32.mrb[93].mxu0 }
 0x44c   : > { %3939 = vst [vmem:[%s5919_s20 + $0x5d0] sm:$0xff] %v3634_v16  ;;  %3938 = vst [vmem:[%s5919_s20 + $0x5c8] sm:$0xff] %v2253_v17  ;;  %v3636_v18 = vpop.f32.mrb[93].mxu1 }
 0x44d   : > { %3940 = vst [vmem:[%s5919_s20 + $0x5d8] sm:$0xff] %v3636_v18 }
 0x44e   : > { %v2257_v19 = vpop.f32.mrb[94].mxu0 }
 0x44f   : > { %3941 = vst [vmem:[%s5919_s20 + $0x5e0] sm:$0xff] %v2257_v19  ;;  %v3640_v21 = vpop.f32.mrb[94].mxu1  ;;  %v2259_v22 = vpop.f32.mrb[95].mxu0 }
 0x450   : > { %3943 = vst [vmem:[%s5919_s20 + $0x5f0] sm:$0xff] %v3640_v21  ;;  %3942 = vst [vmem:[%s5919_s20 + $0x5e8] sm:$0xff] %v2259_v22  ;;  %v3642_v23 = vpop.f32.mrb[95].mxu1 }
 0x451   : > { %3944 = vst [vmem:[%s5919_s20 + $0x5f8] sm:$0xff] %v3642_v23 }
 0x452   : > { %v2263_v24 = vpop.f32.mrb[96].mxu0 }
 0x453   : > { %3945 = vst [vmem:[%s5919_s20 + $0x600] sm:$0xff] %v2263_v24  ;;  %v3646_v25 = vpop.f32.mrb[96].mxu1  ;;  %v2265_v26 = vpop.f32.mrb[97].mxu0 }
 0x454   : > { %3947 = vst [vmem:[%s5919_s20 + $0x610] sm:$0xff] %v3646_v25  ;;  %3946 = vst [vmem:[%s5919_s20 + $0x608] sm:$0xff] %v2265_v26  ;;  %v3648_v27 = vpop.f32.mrb[97].mxu1 }
 0x455   : > { %3948 = vst [vmem:[%s5919_s20 + $0x618] sm:$0xff] %v3648_v27 }
 0x456   : > { %v2269_v28 = vpop.f32.mrb[98].mxu0 }
 0x457   : > { %3949 = vst [vmem:[%s5919_s20 + $0x620] sm:$0xff] %v2269_v28  ;;  %v3652_v29 = vpop.f32.mrb[98].mxu1  ;;  %v2271_v30 = vpop.f32.mrb[99].mxu0 }
 0x458   : > { %3951 = vst [vmem:[%s5919_s20 + $0x630] sm:$0xff] %v3652_v29  ;;  %3950 = vst [vmem:[%s5919_s20 + $0x628] sm:$0xff] %v2271_v30  ;;  %v3654_v31 = vpop.f32.mrb[99].mxu1 }
 0x459   : > { %3952 = vst [vmem:[%s5919_s20 + $0x638] sm:$0xff] %v3654_v31 }
 0x45a   : > { %v2275_v32 = vpop.f32.mrb[100].mxu0 }
 0x45b   : > { %3953 = vst [vmem:[%s5919_s20 + $0x640] sm:$0xff] %v2275_v32  ;;  %v3658_v33 = vpop.f32.mrb[100].mxu1  ;;  %v2277_v34 = vpop.f32.mrb[101].mxu0 }
 0x45c   : > { %3955 = vst [vmem:[%s5919_s20 + $0x650] sm:$0xff] %v3658_v33  ;;  %3954 = vst [vmem:[%s5919_s20 + $0x648] sm:$0xff] %v2277_v34  ;;  %v3660_v35 = vpop.f32.mrb[101].mxu1 }
 0x45d   : > { %3956 = vst [vmem:[%s5919_s20 + $0x658] sm:$0xff] %v3660_v35 }
 0x45e   : > { %v2281_v36 = vpop.f32.mrb[102].mxu0 }
 0x45f   : > { %3957 = vst [vmem:[%s5919_s20 + $0x660] sm:$0xff] %v2281_v36  ;;  %v3664_v37 = vpop.f32.mrb[102].mxu1  ;;  %v2283_v38 = vpop.f32.mrb[103].mxu0 }
 0x460   : > { %3959 = vst [vmem:[%s5919_s20 + $0x670] sm:$0xff] %v3664_v37  ;;  %3958 = vst [vmem:[%s5919_s20 + $0x668] sm:$0xff] %v2283_v38  ;;  %v3666_v39 = vpop.f32.mrb[103].mxu1 }
 0x461   : > { %3960 = vst [vmem:[%s5919_s20 + $0x678] sm:$0xff] %v3666_v39 }
 0x462   : > { %v2287_v40 = vpop.f32.mrb[104].mxu0 }
 0x463   : > { %3961 = vst [vmem:[%s5919_s20 + $0x680] sm:$0xff] %v2287_v40  ;;  %v3670_v41 = vpop.f32.mrb[104].mxu1  ;;  %v2289_v42 = vpop.f32.mrb[105].mxu0 }
 0x464   : > { %3963 = vst [vmem:[%s5919_s20 + $0x690] sm:$0xff] %v3670_v41  ;;  %3962 = vst [vmem:[%s5919_s20 + $0x688] sm:$0xff] %v2289_v42  ;;  %v3672_v43 = vpop.f32.mrb[105].mxu1 }
 0x465   : > { %3964 = vst [vmem:[%s5919_s20 + $0x698] sm:$0xff] %v3672_v43 }
 0x466   : > { %v2293_v44 = vpop.f32.mrb[106].mxu0 }
 0x467   : > { %3965 = vst [vmem:[%s5919_s20 + $0x6a0] sm:$0xff] %v2293_v44  ;;  %v3676_v45 = vpop.f32.mrb[106].mxu1  ;;  %v2295_v46 = vpop.f32.mrb[107].mxu0 }
 0x468   : > { %3967 = vst [vmem:[%s5919_s20 + $0x6b0] sm:$0xff] %v3676_v45  ;;  %3966 = vst [vmem:[%s5919_s20 + $0x6a8] sm:$0xff] %v2295_v46  ;;  %v3678_v47 = vpop.f32.mrb[107].mxu1 }
 0x469   : > { %3968 = vst [vmem:[%s5919_s20 + $0x6b8] sm:$0xff] %v3678_v47 }
 0x46a   : > { %v2299_v48 = vpop.f32.mrb[108].mxu0 }
 0x46b   : > { %3969 = vst [vmem:[%s5919_s20 + $0x6c0] sm:$0xff] %v2299_v48  ;;  %v3682_v49 = vpop.f32.mrb[108].mxu1  ;;  %v2301_v50 = vpop.f32.mrb[109].mxu0 }
 0x46c   : > { %3971 = vst [vmem:[%s5919_s20 + $0x6d0] sm:$0xff] %v3682_v49  ;;  %3970 = vst [vmem:[%s5919_s20 + $0x6c8] sm:$0xff] %v2301_v50  ;;  %v3684_v51 = vpop.f32.mrb[109].mxu1 }
 0x46d   : > { %3972 = vst [vmem:[%s5919_s20 + $0x6d8] sm:$0xff] %v3684_v51 }
 0x46e   : > { %v2305_v52 = vpop.f32.mrb[110].mxu0 }
 0x46f   : > { %3973 = vst [vmem:[%s5919_s20 + $0x6e0] sm:$0xff] %v2305_v52  ;;  %v3688_v53 = vpop.f32.mrb[110].mxu1  ;;  %v2307_v54 = vpop.f32.mrb[111].mxu0 }
 0x470   : > { %3975 = vst [vmem:[%s5919_s20 + $0x6f0] sm:$0xff] %v3688_v53  ;;  %3974 = vst [vmem:[%s5919_s20 + $0x6e8] sm:$0xff] %v2307_v54  ;;  %v3690_v55 = vpop.f32.mrb[111].mxu1 }
 0x471   : > { %3976 = vst [vmem:[%s5919_s20 + $0x6f8] sm:$0xff] %v3690_v55 }
 0x472   : > { %v2311_v56 = vpop.f32.mrb[112].mxu0 }
 0x473   : > { %3977 = vst [vmem:[%s5919_s20 + $0x700] sm:$0xff] %v2311_v56  ;;  %v3694_v57 = vpop.f32.mrb[112].mxu1  ;;  %v2313_v58 = vpop.f32.mrb[113].mxu0 }
 0x474   : > { %3979 = vst [vmem:[%s5919_s20 + $0x710] sm:$0xff] %v3694_v57  ;;  %3978 = vst [vmem:[%s5919_s20 + $0x708] sm:$0xff] %v2313_v58  ;;  %v3696_v59 = vpop.f32.mrb[113].mxu1 }
 0x475   : > { %3980 = vst [vmem:[%s5919_s20 + $0x718] sm:$0xff] %v3696_v59 }
 0x476   : > { %v2317_v60 = vpop.f32.mrb[114].mxu0 }
 0x477   : > { %3981 = vst [vmem:[%s5919_s20 + $0x720] sm:$0xff] %v2317_v60  ;;  %v3700_v61 = vpop.f32.mrb[114].mxu1  ;;  %v2319_v62 = vpop.f32.mrb[115].mxu0 }
 0x478   : > { %3983 = vst [vmem:[%s5919_s20 + $0x730] sm:$0xff] %v3700_v61  ;;  %3982 = vst [vmem:[%s5919_s20 + $0x728] sm:$0xff] %v2319_v62  ;;  %v3702_v63 = vpop.f32.mrb[115].mxu1 }
 0x479   : > { %3984 = vst [vmem:[%s5919_s20 + $0x738] sm:$0xff] %v3702_v63 }
 0x47a   : > { %v2323_v0 = vpop.f32.mrb[116].mxu0 }
 0x47b   : > { %3985 = vst [vmem:[%s5919_s20 + $0x740] sm:$0xff] %v2323_v0  ;;  %v3706_v1 = vpop.f32.mrb[116].mxu1  ;;  %v2325_v2 = vpop.f32.mrb[117].mxu0 }
 0x47c   : > { %3987 = vst [vmem:[%s5919_s20 + $0x750] sm:$0xff] %v3706_v1  ;;  %3986 = vst [vmem:[%s5919_s20 + $0x748] sm:$0xff] %v2325_v2  ;;  %v3708_v3 = vpop.f32.mrb[117].mxu1 }
 0x47d   : > { %3988 = vst [vmem:[%s5919_s20 + $0x758] sm:$0xff] %v3708_v3 }
 0x47e   : > { %v2329_v4 = vpop.f32.mrb[118].mxu0 }
 0x47f   : > { %3989 = vst [vmem:[%s5919_s20 + $0x760] sm:$0xff] %v2329_v4  ;;  %v3712_v5 = vpop.f32.mrb[118].mxu1  ;;  %v2331_v6 = vpop.f32.mrb[119].mxu0 }
 0x480   : > { %3991 = vst [vmem:[%s5919_s20 + $0x770] sm:$0xff] %v3712_v5  ;;  %3990 = vst [vmem:[%s5919_s20 + $0x768] sm:$0xff] %v2331_v6  ;;  %v3714_v7 = vpop.f32.mrb[119].mxu1 }
 0x481   : > { %3992 = vst [vmem:[%s5919_s20 + $0x778] sm:$0xff] %v3714_v7 }
 0x482   : > { %v2335_v8 = vpop.f32.mrb[120].mxu0 }
 0x483   : > { %3993 = vst [vmem:[%s5919_s20 + $0x780] sm:$0xff] %v2335_v8  ;;  %v3718_v9 = vpop.f32.mrb[120].mxu1  ;;  %v2337_v10 = vpop.f32.mrb[121].mxu0 }
 0x484   : > { %3995 = vst [vmem:[%s5919_s20 + $0x790] sm:$0xff] %v3718_v9  ;;  %3994 = vst [vmem:[%s5919_s20 + $0x788] sm:$0xff] %v2337_v10  ;;  %v3720_v11 = vpop.f32.mrb[121].mxu1 }
 0x485   : > { %3996 = vst [vmem:[%s5919_s20 + $0x798] sm:$0xff] %v3720_v11 }
 0x486   : > { %v2341_v12 = vpop.f32.mrb[122].mxu0 }
 0x487   : > { %3997 = vst [vmem:[%s5919_s20 + $0x7a0] sm:$0xff] %v2341_v12  ;;  %v3724_v20 = vpop.f32.mrb[122].mxu1  ;;  %v2343_v13 = vpop.f32.mrb[123].mxu0 }
 0x488   : > { %3999 = vst [vmem:[%s5919_s20 + $0x7b0] sm:$0xff] %v3724_v20  ;;  %3998 = vst [vmem:[%s5919_s20 + $0x7a8] sm:$0xff] %v2343_v13  ;;  %v3726_v14 = vpop.f32.mrb[123].mxu1 }
 0x489   : > { %4000 = vst [vmem:[%s5919_s20 + $0x7b8] sm:$0xff] %v3726_v14 }
 0x48a   : > { %v2347_v15 = vpop.f32.mrb[124].mxu0 }
 0x48b   : > { %4001 = vst [vmem:[%s5919_s20 + $0x7c0] sm:$0xff] %v2347_v15  ;;  %v3730_v16 = vpop.f32.mrb[124].mxu1  ;;  %v2349_v17 = vpop.f32.mrb[125].mxu0 }
 0x48c   : > { %4003 = vst [vmem:[%s5919_s20 + $0x7d0] sm:$0xff] %v3730_v16  ;;  %4002 = vst [vmem:[%s5919_s20 + $0x7c8] sm:$0xff] %v2349_v17  ;;  %v3732_v18 = vpop.f32.mrb[125].mxu1 }
 0x48d   : > { %4004 = vst [vmem:[%s5919_s20 + $0x7d8] sm:$0xff] %v3732_v18 }
 0x48e   : > { %v2353_v19 = vpop.f32.mrb[126].mxu0 }
 0x48f   : > { %4005 = vst [vmem:[%s5919_s20 + $0x7e0] sm:$0xff] %v2353_v19  ;;  %v3736_v21 = vpop.f32.mrb[126].mxu1  ;;  %v2355_v22 = vpop.f32.mrb[127].mxu0 }
 0x490   : > { %4007 = vst [vmem:[%s5919_s20 + $0x7f0] sm:$0xff] %v3736_v21  ;;  %4006 = vst [vmem:[%s5919_s20 + $0x7e8] sm:$0xff] %v2355_v22  ;;  %v3738_v23 = vpop.f32.mrb[127].mxu1 }
 0x491   : > { %4008 = vst [vmem:[%s5919_s20 + $0x7f8] sm:$0xff] %v3738_v23 }
 0x492   : > { %v2359_v24 = vpop.f32.mrb[128].mxu0 }
 0x493   : > { %4009 = vst [vmem:[%s5919_s20 + $0x800] sm:$0xff] %v2359_v24  ;;  %v3742_v25 = vpop.f32.mrb[128].mxu1  ;;  %v2361_v26 = vpop.f32.mrb[129].mxu0  ;;  %4024 = sbr.rel (!%p6320_p8) target bundleno = 1208 (0x4b8), region = 40 }
 0x494   : > { %4011 = vst [vmem:[%s5919_s20 + $0x810] sm:$0xff] %v3742_v25  ;;  %4010 = vst [vmem:[%s5919_s20 + $0x808] sm:$0xff] %v2361_v26  ;;  %v3744_v27 = vpop.f32.mrb[129].mxu1 }
 0x495   : > { %4012 = vst [vmem:[%s5919_s20 + $0x818] sm:$0xff] %v3744_v27 }
 0x496   : > { %v2365_v28 = vpop.f32.mrb[130].mxu0 }
 0x497   : > { %4013 = vst [vmem:[%s5919_s20 + $0x820] sm:$0xff] %v2365_v28  ;;  %v3748_v29 = vpop.f32.mrb[130].mxu1  ;;  %v2367_v30 = vpop.f32.mrb[131].mxu0 }
 0x498   : > { %4015 = vst [vmem:[%s5919_s20 + $0x830] sm:$0xff] %v3748_v29  ;;  %4014 = vst [vmem:[%s5919_s20 + $0x828] sm:$0xff] %v2367_v30  ;;  %v3750_v31 = vpop.f32.mrb[131].mxu1 }
 0x499   : > { %4016 = vst [vmem:[%s5919_s20 + $0x838] sm:$0xff] %v3750_v31 }
 0x49a   : > { %s6329_s6 = smov (!%p4027_p9, %s4026_s6), 4 }
 0x49b   : > { %s6242_s7 = smul.u32 8448, %s6329_s6 }
 0x49d   : > { %s4031_s16 = ssub.s32 33792, %s6242_s7 }
 0x49e   : > { %4032 = vsyncadd %s4018_s23, %s4031_s16  ;;  %p4268_p10 = scmp.ne.s32.totalorder %s6242_s7, 0  ;;  %s4276_s21 = sshll.u32 %s5302_s13, 9 }
 0x49f   : > { %s6252_s27 = scalar_lea.hbm %s6305_s2, %s4276_s21  ;;  %s4270_s25 = sshll.u32 %s6329_s6, 3 }
 0x4a0   : > { %s4038_s30 = sshll.u32 %s5919_s20, 4  ;;  %s5263_s3 = smov [#allocation7]   ;;  %s6256_s30 = int_to_ptr.vmem [resolvable:$true] %s4038_s30 }
 0x4a1   : > { %s5184_s19 = scalar_lea.vmem %s6256_s30, %s6242_s7  ;;  %s5188_s4 = sshll.u32 %s5263_s3, 4  ;;  %s5189_s4 = int_to_ptr.vmem [resolvable:$false] %s5188_s4 }
 0x4a2   : > { %p5185_p1 = scmp.ne.s32.totalorder %s6256_s30, %s5184_s19  ;;  %s5190_s13 = scalar_lea.vmem %s5189_s4, 67584 }
 0x4a3   : > { %p5191_p4 = scmp.lt.s32.totalorder %s6256_s30, %s5189_s4  ;;  %p5192_p6 = scmp.lt.s32.totalorder %s5190_s13, %s5184_s19 }
 0x4a4   : > { %p5186_p0 = pnand %p5185_p1, %p4268_p10 }
 0x4a5   : > { %p5193_p11 = por %p5192_p6, %p5191_p4 }
 0x4a6   : > { %p5187_p7 = pneg %p5186_p0 }
 0x4a8   : > { %p5194_p13 = pnand %p5193_p11, %p5187_p7 }
 0x4aa   : > { %5197 = shalt.err (!%p5194_p13)
}
 0x4ab   : > { %s5198_s8 = scalar_lea.hbm %s6252_s27, %s6242_s7  ;;  %s5202_s29 = scalar_lea.hbm %s6305_s2, 211200 }
 0x4ac   : > { %p5199_p12 = scmp.ne.s32.totalorder %s6252_s27, %s5198_s8  ;;  %p5203_p5 = scmp.lt.u32.totalorder %s6252_s27, %s6305_s2 }
 0x4ad   : > { %p5204_p8 = scmp.lt.u32.totalorder %s5202_s29, %s5198_s8  ;;  %p5206_p1 = scmp.lt.u32.totalorder %s5198_s8, %s6252_s27 }
 0x4ae   : > { %p5200_p2 = pnand %p5199_p12, %p4268_p10 }
 0x4af   : > { %p5205_p9 = por %p5204_p8, %p5203_p5 }
 0x4b0   : > { %p5201_p3 = pneg %p5200_p2 }
 0x4b1   : > { %p5207_p0 = por %p5206_p1, %p5205_p9 }
 0x4b3   : > { %p5208_p7 = pnand %p5207_p0, %p5201_p3 }
 0x4b5   : > { %5211 = shalt.err (!%p5208_p7)
}
 0x4b6   : > { %s5264_s16 = smov 512   ;;  %s5265_s21 = smov 3200  }
 0x4b7   : > { %4044 = dma.vmem_to_hbm [thread:$0]  (%p4268_p10), %s6256_s30, %s6242_s7, %s6252_s27, %s4018_s23, %s5264_s16, %s5265_s21, %s4270_s25  }
 0x4b8 PF: > { %p5087_p4 = scmp.ge.s32.totalorder %s5254_s12, 2  ;;  %s4053_s17 = sand.u32 1, %s5242_s9  }
 0x4b9   : > { %p6321_p6 = scmp.ne.s32.totalorder %s6312_s22, 0  ;;  %s4054_s24 = scalar_lea.sflag [#allocation4], %s4053_s17 }
 0x4bb   : > { %p5082_p11 = pnand %p5087_p4, %p6321_p6 }
 0x4bd   : > { %5237 = dma.done.wait (!%p5082_p11), %s4054_s24, 33792  }
 0x4be   : > { %5239 = vsyncadd (!%p5082_p11), %s4054_s24, 4294933504  ;;  %p16_p13 = scmp.ge.s32.totalorder %s5306_s15, 9   ;;  %s6322_s9 = smov %s5246_s10 }
 0x4bf   : > { %s6323_s10 = smov %s5250_s11  ;;  %s6324_s11 = smov %s5318_s18 }
 0x4c0   : > { %s6325_s12 = smov %s5306_s15  ;;  %18 = sbr.rel (!%p16_p13) target bundleno = 6 (0x6), region = 78 }
 0x4c7   :  { %4059 = vsyncpa [#allocation3], 1 }
 0x4c8   :  { %4061 = vsyncpa [#allocation3 + $0x1], 1 }
 0x4c9   :  { %4062 = vsyncpa [#allocation6], 1 }
 0x4ca   :  { %4064 = vsyncpa [#allocation6 + $0x1], 1 }
 0x4cb   :  { %4065 = vsyncpa [#allocation4], 1 }
 0x4cc   :  { %4067 = vsyncpa [#allocation4 + $0x1], 1 }

</bundles_post_ra>
